<compile_context>
chip_gen: v6e
topology: v6e:2x2x1
jax: 0.10.0
libtpu: 0.0.40
codegen_flags: <defaults>
</compile_context>

<pallas_src>
import functools

import jax
import jax.numpy as jnp
from jax.experimental import pallas as pl
from jax.experimental.pallas import tpu as pltpu


NUM_LAYERS = 2                      # kernel is specialized to the 2-layer spec
MATMUL_DTYPE = jnp.bfloat16         # MXU operand dtype (accumulation stays f32)


# ----------------------------------------------------------------------------
# Fused forward kernel: token ids -> logits (gather, 2 BiLSTM layers, decoder).
# ----------------------------------------------------------------------------
def _fused_sentiment_kernel(
        ids_ref,                        # SMEM (B*T,) int32   [scalar prefetch]
        emb_ref,                        # VMEM (V, E) f32     frozen embedding table
        w_ih1_ref, w_hh1_ref, b1_ref,   # layer 0, fwd+bwd merged
        w_ih2_ref, w_hh2_ref, b2_ref,   # layer 1, fwd+bwd merged
        dw_ref, db_ref,                 # decoder (rows pre-reordered)
        out_ref,                        # VMEM (B, labels) f32
        x_ref,                          # scratch (T*Bp, E)  f32: gathered, time-major
        xp_ref,                         # scratch (T*Bp, 8H) f32: hoisted x@W_ih + b
        l1_ref,                         # scratch (T*Bp, 2H) f32: layer-0 output slab
        *, seq_len, batch, batch_padded, hidden):
    T, B, Bp, H = seq_len, batch, batch_padded, hidden
    G = 8 * H                                   # merged fwd+bwd gate width

    # --- fused embedding gather + permute: (B,T) ids -> time-major (T*Bp, E) ---
    x_ref[...] = jnp.zeros_like(x_ref)          # zero the batch-pad rows
    for t in range(T):                          # static unroll (T*B tiny row loads)
        for b in range(B):
            idx = ids_ref[b * T + t]            # scalar read from SMEM
            x_ref[pl.ds(t * Bp + b, 1), :] = emb_ref[pl.ds(idx, 1), :]

    # Column selector for the merged gate layout [i_f,i_b,f_f,f_b,g_f,g_b,o_f,o_b]:
    # "fwd" columns use the forward-time x-projection, "bwd" the reversed-time one.
    col = jax.lax.broadcasted_iota(jnp.int32, (Bp, G), 1)
    fwd_cols = (col % (2 * H)) < H

    def run_layer(x_in, w_ih_ref, w_hh_ref, b_ref, l_out_ref):
        """One bidirectional layer; both directions fused into ONE recurrence."""
        # Hoisted input projection (+ pre-summed biases) for all T steps at once.
        xp_ref[...] = (
            jnp.dot(x_in.astype(MATMUL_DTYPE), w_ih_ref[...],
                    preferred_element_type=jnp.float32)
            + b_ref[...])
        w_hh = w_hh_ref[...]                            # (2H, 8H) block-diag per dir
        hc = jnp.zeros((Bp, 2 * H), jnp.float32)        # [h_fwd | h_bwd]
        cc = jnp.zeros((Bp, 2 * H), jnp.float32)        # [c_fwd | c_bwd]
        hc_first = hc_last = None
        for s in range(T):                              # static unroll, T serial steps
            r = T - 1 - s                               # timestep the bwd dir handles
            addend = jnp.where(fwd_cols,
                               xp_ref[pl.ds(s * Bp, Bp), :],
                               xp_ref[pl.ds(r * Bp, Bp), :])
            # ONE MXU matmul per step drives both directions' gates.
            gates = addend + jnp.dot(hc.astype(MATMUL_DTYPE), w_hh,
                                     preferred_element_type=jnp.float32)
            sig = jax.nn.sigmoid(gates)                 # single full-width EUP pass
            i = sig[:, 0:2 * H]
            f = sig[:, 2 * H:4 * H]
            g = 2.0 * sig[:, 4 * H:6 * H] - 1.0         # == tanh (g cols prescaled x2)
            o = sig[:, 6 * H:8 * H]
            cc = f * cc + i * g
            hc = o * jnp.tanh(cc)
            if l_out_ref is not None:                   # layer output, indexed by time
                l_out_ref[pl.ds(s * Bp, Bp), 0:H] = hc[:, 0:H]          # h_fwd(s)
                l_out_ref[pl.ds(r * Bp, Bp), H:2 * H] = hc[:, H:2 * H]  # h_bwd(r)
            if s == 0:
                hc_first = hc                           # [h_f(0)   | h_b(T-1)]
            if s == T - 1:
                hc_last = hc                            # [h_f(T-1) | h_b(0)]
        return hc_first, hc_last

    # layer 0: input = gathered embeddings; writes the full (T*Bp, 2H) sequence slab.
    run_layer(x_ref[...], w_ih1_ref, w_hh1_ref, b1_ref, l1_ref)
    # layer 1: input = layer-0 outputs; only states at t=0 and t=T-1 are needed.
    hc_first, hc_last = run_layer(l1_ref[...], w_ih2_ref, w_hh2_ref, b2_ref, None)

    # decoder: encoding = cat([states[0], states[-1]]) @ W_dec + b_dec, realised as
    # two matmuls against a row-reordered W_dec (no lane concatenation needed).
    dw = dw_ref[...]
    logits = (jnp.dot(hc_first.astype(MATMUL_DTYPE), dw[0:2 * H, :],
                      preferred_element_type=jnp.float32)
              + jnp.dot(hc_last.astype(MATMUL_DTYPE), dw[2 * H:4 * H, :],
                        preferred_element_type=jnp.float32)
              + db_ref[...])
    out_ref[...] = logits[0:B, :].astype(out_ref.dtype)


# ----------------------------------------------------------------------------
# Full forward: ONE pallas_call, no out-of-kernel glue ops.
# ----------------------------------------------------------------------------
@jax.jit
def sentiment_forward(token_ids, packed):
    B, T = token_ids.shape
    E = packed["embedding"].shape[1]
    H = packed["lstm"][0]["w_hh"].shape[0] // 2
    labels = packed["dec_w"].shape[1]
    Bp = ((B + 7) // 8) * 8            # pad batch to a sublane multiple

    kernel = functools.partial(_fused_sentiment_kernel, seq_len=T, batch=B,
                               batch_padded=Bp, hidden=H)
    vmem = lambda: pl.BlockSpec(memory_space=pltpu.MemorySpace.VMEM)
    lp = packed["lstm"]

    # VMEM budget (toy shapes): table 6.4K + weights ~90K + scratch ~90K  << limits.
    # TODO(synk): at production batch/seq sizes add a batch grid axis with
    # dimension_semantics=("parallel",) (uses both v7x TensorCores) and chunk the
    # hoisted projection slabs over time to stay inside v7x's 64 MiB VMEM.
    return pl.pallas_call(
        kernel,
        out_shape=jax.ShapeDtypeStruct((B, labels), jnp.float32),
        grid_spec=pltpu.PrefetchScalarGridSpec(
            num_scalar_prefetch=1,                         # token ids -> SMEM
            grid=(1,),
            in_specs=[vmem() for _ in range(9)],
            out_specs=vmem(),
            scratch_shapes=[
                pltpu.VMEM((T * Bp, E), jnp.float32),      # gathered embeddings
                pltpu.VMEM((T * Bp, 8 * H), jnp.float32),  # hoisted x@W_ih (+ bias)
                pltpu.VMEM((T * Bp, 2 * H), jnp.float32),  # layer-0 output slab
            ]),
        compiler_params=pltpu.CompilerParams(dimension_semantics=("arbitrary",)),
    )(token_ids.reshape(-1).astype(jnp.int32),
      packed["embedding"],
      lp[0]["w_ih"], lp[0]["w_hh"], lp[0]["b"],
      lp[1]["w_ih"], lp[1]["w_hh"], lp[1]["b"],
      packed["dec_w"], packed["dec_b"])


# ----------------------------------------------------------------------------
# PyTorch-layout parameters (as a real checkpoint would store them).
# ----------------------------------------------------------------------------
def init_raw_params(key, vocab, embed, hidden, num_layers, labels):
    keys = iter(jax.random.split(key, 1 + num_layers * 2 * 4 + 2))
    scale = 1.0 / float(hidden) ** 0.5
    p = {"embedding": jax.random.normal(next(keys), (vocab, embed), jnp.float32)}
    lstm = []
    for layer in range(num_layers):
        din = embed if layer == 0 else 2 * hidden
        layer_p = {}
        for direction in ("fwd", "bwd"):
            layer_p[direction] = {
                "w_ih": jax.random.uniform(next(keys), (4 * hidden, din),
                                           jnp.float32, -scale, scale),
                "w_hh": jax.random.uniform(next(keys), (4 * hidden, hidden),
                                           jnp.float32, -scale, scale),
                "b_ih": jax.random.uniform(next(keys), (4 * hidden,),
                                           jnp.float32, -scale, scale),
                "b_hh": jax.random.uniform(next(keys), (4 * hidden,),
                                           jnp.float32, -scale, scale),
            }
        lstm.append(layer_p)
    p["lstm"] = lstm
    dscale = 1.0 / float(4 * hidden) ** 0.5
    p["dec_w"] = jax.random.uniform(next(keys), (labels, 4 * hidden),
                                    jnp.float32, -dscale, dscale)
    p["dec_b"] = jax.random.uniform(next(keys), (labels,), jnp.float32,
                                    -dscale, dscale)
    return p


# ----------------------------------------------------------------------------
# Repack PyTorch-layout weights into the kernel's fused layout (done once):
#  * fwd/bwd merged: W_ih (Din,8H), block-diagonal W_hh (2H,8H), bias (1,8H),
#    gate-major columns [i_f,i_b,f_f,f_b,g_f,g_b,o_f,o_b];
#  * b_ih + b_hh pre-summed (folded into the hoisted input projection);
#  * g-gate columns pre-scaled by 2 so tanh(x) = 2*sigmoid(2x) - 1;
#  * matmul operands cast to MATMUL_DTYPE (bf16) for the MXU;
#  * decoder rows reordered to match [h_f(0) | h_b(T-1)] / [h_f(T-1) | h_b(0)].
# ----------------------------------------------------------------------------
def pack_params(raw, hidden):
    H = hidden
    packed = {"embedding": raw["embedding"].astype(jnp.float32)}
    layers = []
    for lp in raw["lstm"]:
        din = lp["fwd"]["w_ih"].shape[1]
        w_ih = jnp.zeros((din, 8 * H), jnp.float32)
        w_hh = jnp.zeros((2 * H, 8 * H), jnp.float32)
        b = jnp.zeros((8 * H,), jnp.float32)
        for d, name in enumerate(("fwd", "bwd")):
            wi = lp[name]["w_ih"].T                          # (Din, 4H)
            wh = lp[name]["w_hh"].T                          # (H, 4H)
            bb = lp[name]["b_ih"] + lp[name]["b_hh"]         # (4H,)
            for q in range(4):                               # gates i, f, g, o
                s = 2.0 if q == 2 else 1.0                   # tanh-as-sigmoid prescale
                cols = slice(q * 2 * H + d * H, q * 2 * H + (d + 1) * H)
                w_ih = w_ih.at[:, cols].set(s * wi[:, q * H:(q + 1) * H])
                w_hh = w_hh.at[d * H:(d + 1) * H, cols].set(
                    s * wh[:, q * H:(q + 1) * H])
                b = b.at[cols].set(s * bb[q * H:(q + 1) * H])
        layers.append({"w_ih": w_ih.astype(MATMUL_DTYPE),
                       "w_hh": w_hh.astype(MATMUL_DTYPE),
                       "b": b.reshape(1, 8 * H)})
    packed["lstm"] = layers
    wt = raw["dec_w"].T                                      # (4H, labels)
    packed["dec_w"] = jnp.concatenate(
        [wt[0:H], wt[3 * H:4 * H], wt[2 * H:3 * H], wt[H:2 * H]],
        axis=0).astype(MATMUL_DTYPE)
    packed["dec_b"] = raw["dec_b"].reshape(1, -1).astype(jnp.float32)
    return packed


# ----------------------------------------------------------------------------
# Pure-JAX f32 reference with exact PyTorch SentimentNet semantics.
# ----------------------------------------------------------------------------
def reference_forward(token_ids, raw, *, hidden):
    B, T = token_ids.shape
    H = hidden
    emb = jnp.take(raw["embedding"], token_ids, axis=0)      # (B, T, E)
    seq = jnp.transpose(emb, (1, 0, 2))                      # (T, B, E)

    def run_dir(xs, p, reverse):
        h = jnp.zeros((B, H), jnp.float32)
        c = jnp.zeros((B, H), jnp.float32)
        hs = [None] * T
        order = range(T - 1, -1, -1) if reverse else range(T)
        for t in order:
            gates = xs[t] @ p["w_ih"].T + h @ p["w_hh"].T + p["b_ih"] + p["b_hh"]
            i = jax.nn.sigmoid(gates[:, 0:H])
            f = jax.nn.sigmoid(gates[:, H:2 * H])
            g = jnp.tanh(gates[:, 2 * H:3 * H])
            o = jax.nn.sigmoid(gates[:, 3 * H:4 * H])
            c = f * c + i * g
            h = o * jnp.tanh(c)
            hs[t] = h
        return jnp.stack(hs, axis=0)

    for layer in range(NUM_LAYERS):
        seq = jnp.concatenate(
            [run_dir(seq, raw["lstm"][layer]["fwd"], False),
             run_dir(seq, raw["lstm"][layer]["bwd"], True)], axis=-1)

    enc = jnp.concatenate([seq[0], seq[-1]], axis=1)         # (B, 4H)
    return enc @ raw["dec_w"].T + raw["dec_b"]


if __name__ == "__main__":
    VOCAB, EMBED, HIDDEN, LABELS = 50, 32, 32, 2
    BATCH, SEQ = 2, 8

    key = jax.random.PRNGKey(0)
    k_params, k_tokens = jax.random.split(key)

    raw = init_raw_params(k_params, VOCAB, EMBED, HIDDEN, NUM_LAYERS, LABELS)
    packed = pack_params(raw, HIDDEN)
    token_ids = jax.random.randint(k_tokens, (BATCH, SEQ), 0, VOCAB, dtype=jnp.int32)

    logits = jax.block_until_ready(sentiment_forward(token_ids, packed))
    assert logits.shape == (BATCH, LABELS), logits.shape

    ref = jax.block_until_ready(reference_forward(token_ids, raw, hidden=HIDDEN))
    max_err = float(jnp.max(jnp.abs(logits - ref)))
    # bf16 MXU operands (f32 accumulation) vs the all-f32 reference; set
    # MATMUL_DTYPE = jnp.float32 above for ~1e-5 agreement.
    assert max_err < 5e-2, f"kernel/reference mismatch: max abs err = {max_err}"

    print("KERNEL_OK")
</pallas_src>

<mosaic_0001>
module attributes {stable_mosaic.version = 11 : i64} {
  func.func @_fused_sentiment_kernel(%arg0: i32, %arg1: memref<16xi32, #tpu.memory_space<smem>>, %arg2: memref<50x32xf32, #tpu.memory_space<vmem>>, %arg3: memref<32x256xbf16, #tpu.memory_space<vmem>>, %arg4: memref<64x256xbf16, #tpu.memory_space<vmem>>, %arg5: memref<1x256xf32, #tpu.memory_space<vmem>>, %arg6: memref<64x256xbf16, #tpu.memory_space<vmem>>, %arg7: memref<64x256xbf16, #tpu.memory_space<vmem>>, %arg8: memref<1x256xf32, #tpu.memory_space<vmem>>, %arg9: memref<128x2xbf16, #tpu.memory_space<vmem>>, %arg10: memref<1x2xf32, #tpu.memory_space<vmem>>, %arg11: memref<2x2xf32, #tpu.memory_space<vmem>>, %arg12: memref<64x32xf32, #tpu.memory_space<vmem>>, %arg13: memref<64x256xf32, #tpu.memory_space<vmem>>, %arg14: memref<64x64xf32, #tpu.memory_space<vmem>>) attributes {dimension_semantics = [#tpu.dimension_semantics<arbitrary>], iteration_bounds = array<i64: 1>, scalar_prefetch = 1 : i64, scratch_operands = 3 : i64, tpu.core_type = #tpu.core_type<tc>, window_params = [{pipeline_mode = #tpu.pipeline_mode<synchronous>, transform_indices = @transform_0, window_bounds = array<i64: 50, 32>}, {pipeline_mode = #tpu.pipeline_mode<synchronous>, transform_indices = @transform_1, window_bounds = array<i64: 32, 256>}, {pipeline_mode = #tpu.pipeline_mode<synchronous>, transform_indices = @transform_2, window_bounds = array<i64: 64, 256>}, {pipeline_mode = #tpu.pipeline_mode<synchronous>, transform_indices = @transform_3, window_bounds = array<i64: 1, 256>}, {pipeline_mode = #tpu.pipeline_mode<synchronous>, transform_indices = @transform_4, window_bounds = array<i64: 64, 256>}, {pipeline_mode = #tpu.pipeline_mode<synchronous>, transform_indices = @transform_5, window_bounds = array<i64: 64, 256>}, {pipeline_mode = #tpu.pipeline_mode<synchronous>, transform_indices = @transform_6, window_bounds = array<i64: 1, 256>}, {pipeline_mode = #tpu.pipeline_mode<synchronous>, transform_indices = @transform_7, window_bounds = array<i64: 128, 2>}, {pipeline_mode = #tpu.pipeline_mode<synchronous>, transform_indices = @transform_8, window_bounds = array<i64: 1, 2>}, {pipeline_mode = #tpu.pipeline_mode<synchronous>, transform_indices = @transform_9, window_bounds = array<i64: 2, 2>}]} {
    %cst = arith.constant 0.000000e+00 : f32
    %0 = vector.broadcast %cst : f32 to vector<64x32xf32>
    %c0 = arith.constant 0 : index
    %c0_0 = arith.constant 0 : index
    %1 = vector.load %arg12[%c0, %c0_0] : memref<64x32xf32, #tpu.memory_space<vmem>>, vector<64x32xf32>
    tpu.vector_store %arg12[%c0, %c0_0], %0 {strides = array<i32>} : memref<64x32xf32, #tpu.memory_space<vmem>>, vector<64x32xf32>,
    %c0_1 = arith.constant 0 : index
    %2 = memref.load %arg1[%c0_1] : memref<16xi32, #tpu.memory_space<smem>>
    %3 = arith.index_cast %2 : i32 to index
    %c0_2 = arith.constant 0 : index
    %4 = vector.load %arg2[%3, %c0_2] : memref<50x32xf32, #tpu.memory_space<vmem>>, vector<1x32xf32>
    %c0_3 = arith.constant 0 : index
    %c0_4 = arith.constant 0 : index
    %5 = vector.load %arg12[%c0_3, %c0_4] : memref<64x32xf32, #tpu.memory_space<vmem>>, vector<1x32xf32>
    tpu.vector_store %arg12[%c0_3, %c0_4], %4 {strides = array<i32>} : memref<64x32xf32, #tpu.memory_space<vmem>>, vector<1x32xf32>,
    %c8 = arith.constant 8 : index
    %6 = memref.load %arg1[%c8] : memref<16xi32, #tpu.memory_space<smem>>
    %7 = arith.index_cast %6 : i32 to index
    %c0_5 = arith.constant 0 : index
    %8 = vector.load %arg2[%7, %c0_5] : memref<50x32xf32, #tpu.memory_space<vmem>>, vector<1x32xf32>
    %c1 = arith.constant 1 : index
    %c0_6 = arith.constant 0 : index
    %9 = vector.load %arg12[%c1, %c0_6] : memref<64x32xf32, #tpu.memory_space<vmem>>, vector<1x32xf32>
    tpu.vector_store %arg12[%c1, %c0_6], %8 {strides = array<i32>} : memref<64x32xf32, #tpu.memory_space<vmem>>, vector<1x32xf32>,
    %c1_7 = arith.constant 1 : index
    %10 = memref.load %arg1[%c1_7] : memref<16xi32, #tpu.memory_space<smem>>
    %11 = arith.index_cast %10 : i32 to index
    %c0_8 = arith.constant 0 : index
    %12 = vector.load %arg2[%11, %c0_8] : memref<50x32xf32, #tpu.memory_space<vmem>>, vector<1x32xf32>
    %c8_9 = arith.constant 8 : index
    %c0_10 = arith.constant 0 : index
    %13 = vector.load %arg12[%c8_9, %c0_10] : memref<64x32xf32, #tpu.memory_space<vmem>>, vector<1x32xf32>
    tpu.vector_store %arg12[%c8_9, %c0_10], %12 {strides = array<i32>} : memref<64x32xf32, #tpu.memory_space<vmem>>, vector<1x32xf32>,
    %c9 = arith.constant 9 : index
    %14 = memref.load %arg1[%c9] : memref<16xi32, #tpu.memory_space<smem>>
    %15 = arith.index_cast %14 : i32 to index
    %c0_11 = arith.constant 0 : index
    %16 = vector.load %arg2[%15, %c0_11] : memref<50x32xf32, #tpu.memory_space<vmem>>, vector<1x32xf32>
    %c9_12 = arith.constant 9 : index
    %c0_13 = arith.constant 0 : index
    %17 = vector.load %arg12[%c9_12, %c0_13] : memref<64x32xf32, #tpu.memory_space<vmem>>, vector<1x32xf32>
    tpu.vector_store %arg12[%c9_12, %c0_13], %16 {strides = array<i32>} : memref<64x32xf32, #tpu.memory_space<vmem>>, vector<1x32xf32>,
    %c2 = arith.constant 2 : index
    %18 = memref.load %arg1[%c2] : memref<16xi32, #tpu.memory_space<smem>>
    %19 = arith.index_cast %18 : i32 to index
    %c0_14 = arith.constant 0 : index
    %20 = vector.load %arg2[%19, %c0_14] : memref<50x32xf32, #tpu.memory_space<vmem>>, vector<1x32xf32>
    %c16 = arith.constant 16 : index
    %c0_15 = arith.constant 0 : index
    %21 = vector.load %arg12[%c16, %c0_15] : memref<64x32xf32, #tpu.memory_space<vmem>>, vector<1x32xf32>
    tpu.vector_store %arg12[%c16, %c0_15], %20 {strides = array<i32>} : memref<64x32xf32, #tpu.memory_space<vmem>>, vector<1x32xf32>,
    %c10 = arith.constant 10 : index
    %22 = memref.load %arg1[%c10] : memref<16xi32, #tpu.memory_space<smem>>
    %23 = arith.index_cast %22 : i32 to index
    %c0_16 = arith.constant 0 : index
    %24 = vector.load %arg2[%23, %c0_16] : memref<50x32xf32, #tpu.memory_space<vmem>>, vector<1x32xf32>
    %c17 = arith.constant 17 : index
    %c0_17 = arith.constant 0 : index
    %25 = vector.load %arg12[%c17, %c0_17] : memref<64x32xf32, #tpu.memory_space<vmem>>, vector<1x32xf32>
    tpu.vector_store %arg12[%c17, %c0_17], %24 {strides = array<i32>} : memref<64x32xf32, #tpu.memory_space<vmem>>, vector<1x32xf32>,
    %c3 = arith.constant 3 : index
    %26 = memref.load %arg1[%c3] : memref<16xi32, #tpu.memory_space<smem>>
    %27 = arith.index_cast %26 : i32 to index
    %c0_18 = arith.constant 0 : index
    %28 = vector.load %arg2[%27, %c0_18] : memref<50x32xf32, #tpu.memory_space<vmem>>, vector<1x32xf32>
    %c24 = arith.constant 24 : index
    %c0_19 = arith.constant 0 : index
    %29 = vector.load %arg12[%c24, %c0_19] : memref<64x32xf32, #tpu.memory_space<vmem>>, vector<1x32xf32>
    tpu.vector_store %arg12[%c24, %c0_19], %28 {strides = array<i32>} : memref<64x32xf32, #tpu.memory_space<vmem>>, vector<1x32xf32>,
    %c11 = arith.constant 11 : index
    %30 = memref.load %arg1[%c11] : memref<16xi32, #tpu.memory_space<smem>>
    %31 = arith.index_cast %30 : i32 to index
    %c0_20 = arith.constant 0 : index
    %32 = vector.load %arg2[%31, %c0_20] : memref<50x32xf32, #tpu.memory_space<vmem>>, vector<1x32xf32>
    %c25 = arith.constant 25 : index
    %c0_21 = arith.constant 0 : index
    %33 = vector.load %arg12[%c25, %c0_21] : memref<64x32xf32, #tpu.memory_space<vmem>>, vector<1x32xf32>
    tpu.vector_store %arg12[%c25, %c0_21], %32 {strides = array<i32>} : memref<64x32xf32, #tpu.memory_space<vmem>>, vector<1x32xf32>,
    %c4 = arith.constant 4 : index
    %34 = memref.load %arg1[%c4] : memref<16xi32, #tpu.memory_space<smem>>
    %35 = arith.index_cast %34 : i32 to index
    %c0_22 = arith.constant 0 : index
    %36 = vector.load %arg2[%35, %c0_22] : memref<50x32xf32, #tpu.memory_space<vmem>>, vector<1x32xf32>
    %c32 = arith.constant 32 : index
    %c0_23 = arith.constant 0 : index
    %37 = vector.load %arg12[%c32, %c0_23] : memref<64x32xf32, #tpu.memory_space<vmem>>, vector<1x32xf32>
    tpu.vector_store %arg12[%c32, %c0_23], %36 {strides = array<i32>} : memref<64x32xf32, #tpu.memory_space<vmem>>, vector<1x32xf32>,
    %c12 = arith.constant 12 : index
    %38 = memref.load %arg1[%c12] : memref<16xi32, #tpu.memory_space<smem>>
    %39 = arith.index_cast %38 : i32 to index
    %c0_24 = arith.constant 0 : index
    %40 = vector.load %arg2[%39, %c0_24] : memref<50x32xf32, #tpu.memory_space<vmem>>, vector<1x32xf32>
    %c33 = arith.constant 33 : index
    %c0_25 = arith.constant 0 : index
    %41 = vector.load %arg12[%c33, %c0_25] : memref<64x32xf32, #tpu.memory_space<vmem>>, vector<1x32xf32>
    tpu.vector_store %arg12[%c33, %c0_25], %40 {strides = array<i32>} : memref<64x32xf32, #tpu.memory_space<vmem>>, vector<1x32xf32>,
    %c5 = arith.constant 5 : index
    %42 = memref.load %arg1[%c5] : memref<16xi32, #tpu.memory_space<smem>>
    %43 = arith.index_cast %42 : i32 to index
    %c0_26 = arith.constant 0 : index
    %44 = vector.load %arg2[%43, %c0_26] : memref<50x32xf32, #tpu.memory_space<vmem>>, vector<1x32xf32>
    %c40 = arith.constant 40 : index
    %c0_27 = arith.constant 0 : index
    %45 = vector.load %arg12[%c40, %c0_27] : memref<64x32xf32, #tpu.memory_space<vmem>>, vector<1x32xf32>
    tpu.vector_store %arg12[%c40, %c0_27], %44 {strides = array<i32>} : memref<64x32xf32, #tpu.memory_space<vmem>>, vector<1x32xf32>,
    %c13 = arith.constant 13 : index
    %46 = memref.load %arg1[%c13] : memref<16xi32, #tpu.memory_space<smem>>
    %47 = arith.index_cast %46 : i32 to index
    %c0_28 = arith.constant 0 : index
    %48 = vector.load %arg2[%47, %c0_28] : memref<50x32xf32, #tpu.memory_space<vmem>>, vector<1x32xf32>
    %c41 = arith.constant 41 : index
    %c0_29 = arith.constant 0 : index
    %49 = vector.load %arg12[%c41, %c0_29] : memref<64x32xf32, #tpu.memory_space<vmem>>, vector<1x32xf32>
    tpu.vector_store %arg12[%c41, %c0_29], %48 {strides = array<i32>} : memref<64x32xf32, #tpu.memory_space<vmem>>, vector<1x32xf32>,
    %c6 = arith.constant 6 : index
    %50 = memref.load %arg1[%c6] : memref<16xi32, #tpu.memory_space<smem>>
    %51 = arith.index_cast %50 : i32 to index
    %c0_30 = arith.constant 0 : index
    %52 = vector.load %arg2[%51, %c0_30] : memref<50x32xf32, #tpu.memory_space<vmem>>, vector<1x32xf32>
    %c48 = arith.constant 48 : index
    %c0_31 = arith.constant 0 : index
    %53 = vector.load %arg12[%c48, %c0_31] : memref<64x32xf32, #tpu.memory_space<vmem>>, vector<1x32xf32>
    tpu.vector_store %arg12[%c48, %c0_31], %52 {strides = array<i32>} : memref<64x32xf32, #tpu.memory_space<vmem>>, vector<1x32xf32>,
    %c14 = arith.constant 14 : index
    %54 = memref.load %arg1[%c14] : memref<16xi32, #tpu.memory_space<smem>>
    %55 = arith.index_cast %54 : i32 to index
    %c0_32 = arith.constant 0 : index
    %56 = vector.load %arg2[%55, %c0_32] : memref<50x32xf32, #tpu.memory_space<vmem>>, vector<1x32xf32>
    %c49 = arith.constant 49 : index
    %c0_33 = arith.constant 0 : index
    %57 = vector.load %arg12[%c49, %c0_33] : memref<64x32xf32, #tpu.memory_space<vmem>>, vector<1x32xf32>
    tpu.vector_store %arg12[%c49, %c0_33], %56 {strides = array<i32>} : memref<64x32xf32, #tpu.memory_space<vmem>>, vector<1x32xf32>,
    %c7 = arith.constant 7 : index
    %58 = memref.load %arg1[%c7] : memref<16xi32, #tpu.memory_space<smem>>
    %59 = arith.index_cast %58 : i32 to index
    %c0_34 = arith.constant 0 : index
    %60 = vector.load %arg2[%59, %c0_34] : memref<50x32xf32, #tpu.memory_space<vmem>>, vector<1x32xf32>
    %c56 = arith.constant 56 : index
    %c0_35 = arith.constant 0 : index
    %61 = vector.load %arg12[%c56, %c0_35] : memref<64x32xf32, #tpu.memory_space<vmem>>, vector<1x32xf32>
    tpu.vector_store %arg12[%c56, %c0_35], %60 {strides = array<i32>} : memref<64x32xf32, #tpu.memory_space<vmem>>, vector<1x32xf32>,
    %c15 = arith.constant 15 : index
    %62 = memref.load %arg1[%c15] : memref<16xi32, #tpu.memory_space<smem>>
    %63 = arith.index_cast %62 : i32 to index
    %c0_36 = arith.constant 0 : index
    %64 = vector.load %arg2[%63, %c0_36] : memref<50x32xf32, #tpu.memory_space<vmem>>, vector<1x32xf32>
    %c57 = arith.constant 57 : index
    %c0_37 = arith.constant 0 : index
    %65 = vector.load %arg12[%c57, %c0_37] : memref<64x32xf32, #tpu.memory_space<vmem>>, vector<1x32xf32>
    tpu.vector_store %arg12[%c57, %c0_37], %64 {strides = array<i32>} : memref<64x32xf32, #tpu.memory_space<vmem>>, vector<1x32xf32>,
    %66 = tpu.iota {dimensions = array<i32: 1>} : vector<8x256xi32>
    %c64_i32 = arith.constant 64 : i32
    %c0_i32 = arith.constant 0 : i32
    %67 = arith.cmpi eq, %c64_i32, %c0_i32 : i32
    %c1_i32 = arith.constant 1 : i32
    %68 = arith.select %67, %c1_i32, %c64_i32 : i32
    %69 = vector.broadcast %68 : i32 to vector<8x256xi32>
    %70 = arith.remsi %66, %69 : vector<8x256xi32>
    %c0_i32_38 = arith.constant 0 : i32
    %71 = vector.broadcast %c0_i32_38 : i32 to vector<8x256xi32>
    %72 = arith.cmpi ne, %70, %71 : vector<8x256xi32>
    %c0_i32_39 = arith.constant 0 : i32
    %73 = vector.broadcast %c0_i32_39 : i32 to vector<8x256xi32>
    %74 = arith.cmpi slt, %70, %73 : vector<8x256xi32>
    %c0_i32_40 = arith.constant 0 : i32
    %75 = arith.cmpi slt, %68, %c0_i32_40 : i32
    %76 = vector.broadcast %75 : i1 to vector<8x256xi1>
    %77 = vector.broadcast %76 : vector<8x256xi1> to vector<8x256xi1>
    %78 = arith.xori %74, %77 : vector<8x256xi1>
    %79 = arith.andi %78, %72 : vector<8x256xi1>
    %80 = vector.broadcast %68 : i32 to vector<8x256xi32>
    %81 = arith.addi %70, %80 : vector<8x256xi32>
    %82 = arith.select %79, %81, %70 : vector<8x256xi1>, vector<8x256xi32>
    %c32_i32 = arith.constant 32 : i32
    %83 = vector.broadcast %c32_i32 : i32 to vector<8x256xi32>
    %84 = arith.cmpi slt, %82, %83 : vector<8x256xi32>
    %c0_41 = arith.constant 0 : index
    %c0_42 = arith.constant 0 : index
    %85 = vector.load %arg12[%c0_41, %c0_42] : memref<64x32xf32, #tpu.memory_space<vmem>>, vector<64x32xf32>
    %86 = arith.truncf %85 : vector<64x32xf32> to vector<64x32xbf16>
    %c0_43 = arith.constant 0 : index
    %c0_44 = arith.constant 0 : index
    %87 = vector.load %arg3[%c0_43, %c0_44] : memref<32x256xbf16, #tpu.memory_space<vmem>>, vector<32x256xbf16>
    %cst_45 = arith.constant dense<0.000000e+00> : vector<64x256xf32>
    %88 = tpu.matmul %86, %87, %cst_45 {dimension_numbers = #tpu.dot_dimension_numbers<[1], [0], [0], [1], [0, 0, 1, 1], [], []>} : vector<64x32xbf16>, vector<32x256xbf16>, vector<64x256xf32> -> vector<64x256xf32>
    %c0_46 = arith.constant 0 : index
    %c0_47 = arith.constant 0 : index
    %89 = vector.load %arg5[%c0_46, %c0_47] : memref<1x256xf32, #tpu.memory_space<vmem>>, vector<1x256xf32>
    %90 = vector.broadcast %89 : vector<1x256xf32> to vector<64x256xf32>
    %91 = arith.addf %88, %90 : vector<64x256xf32>
    %c0_48 = arith.constant 0 : index
    %c0_49 = arith.constant 0 : index
    %92 = vector.load %arg13[%c0_48, %c0_49] : memref<64x256xf32, #tpu.memory_space<vmem>>, vector<64x256xf32>
    tpu.vector_store %arg13[%c0_48, %c0_49], %91 {strides = array<i32>} : memref<64x256xf32, #tpu.memory_space<vmem>>, vector<64x256xf32>,
    %c0_50 = arith.constant 0 : index
    %c0_51 = arith.constant 0 : index
    %93 = vector.load %arg4[%c0_50, %c0_51] : memref<64x256xbf16, #tpu.memory_space<vmem>>, vector<64x256xbf16>
    %cst_52 = arith.constant 0.000000e+00 : f32
    %94 = vector.broadcast %cst_52 : f32 to vector<8x64xf32>
    %cst_53 = arith.constant 0.000000e+00 : f32
    %95 = vector.broadcast %cst_53 : f32 to vector<8x64xf32>
    %c0_54 = arith.constant 0 : index
    %c0_55 = arith.constant 0 : index
    %96 = vector.load %arg13[%c0_54, %c0_55] : memref<64x256xf32, #tpu.memory_space<vmem>>, vector<8x256xf32>
    %c56_56 = arith.constant 56 : index
    %c0_57 = arith.constant 0 : index
    %97 = vector.load %arg13[%c56_56, %c0_57] : memref<64x256xf32, #tpu.memory_space<vmem>>, vector<8x256xf32>
    %98 = arith.select %84, %96, %97 : vector<8x256xi1>, vector<8x256xf32>
    %99 = arith.truncf %94 : vector<8x64xf32> to vector<8x64xbf16>
    %cst_58 = arith.constant dense<0.000000e+00> : vector<8x256xf32>
    %100 = tpu.matmul %99, %93, %cst_58 {dimension_numbers = #tpu.dot_dimension_numbers<[1], [0], [0], [1], [0, 0, 1, 1], [], []>} : vector<8x64xbf16>, vector<64x256xbf16>, vector<8x256xf32> -> vector<8x256xf32>
    %101 = arith.addf %98, %100 : vector<8x256xf32>
    %102 = arith.negf %101 : vector<8x256xf32>
    %103 = math.exp %102 : vector<8x256xf32>
    %cst_59 = arith.constant 1.000000e+00 : f32
    %104 = vector.broadcast %cst_59 : f32 to vector<8x256xf32>
    %105 = arith.addf %104, %103 : vector<8x256xf32>
    %106 = arith.divf %104, %105 : vector<8x256xf32>
    %107 = vector.extract_strided_slice %106 {offsets = [0, 0], sizes = [8, 64], strides = [1, 1]} : vector<8x256xf32> to vector<8x64xf32>
    %108 = vector.extract_strided_slice %106 {offsets = [0, 64], sizes = [8, 64], strides = [1, 1]} : vector<8x256xf32> to vector<8x64xf32>
    %109 = vector.extract_strided_slice %106 {offsets = [0, 128], sizes = [8, 64], strides = [1, 1]} : vector<8x256xf32> to vector<8x64xf32>
    %cst_60 = arith.constant 2.000000e+00 : f32
    %110 = vector.broadcast %cst_60 : f32 to vector<8x64xf32>
    %111 = arith.mulf %110, %109 : vector<8x64xf32>
    %cst_61 = arith.constant 1.000000e+00 : f32
    %112 = vector.broadcast %cst_61 : f32 to vector<8x64xf32>
    %113 = arith.subf %111, %112 : vector<8x64xf32>
    %114 = vector.extract_strided_slice %106 {offsets = [0, 192], sizes = [8, 64], strides = [1, 1]} : vector<8x256xf32> to vector<8x64xf32>
    %115 = arith.mulf %108, %95 : vector<8x64xf32>
    %116 = arith.mulf %107, %113 : vector<8x64xf32>
    %117 = arith.addf %115, %116 : vector<8x64xf32>
    %118 = math.tanh %117 : vector<8x64xf32>
    %119 = arith.mulf %114, %118 : vector<8x64xf32>
    %120 = vector.extract_strided_slice %119 {offsets = [0, 0], sizes = [8, 32], strides = [1, 1]} : vector<8x64xf32> to vector<8x32xf32>
    %c0_62 = arith.constant 0 : index
    %c0_63 = arith.constant 0 : index
    %121 = vector.load %arg14[%c0_62, %c0_63] : memref<64x64xf32, #tpu.memory_space<vmem>>, vector<8x32xf32>
    tpu.vector_store %arg14[%c0_62, %c0_63], %120 {strides = array<i32>} : memref<64x64xf32, #tpu.memory_space<vmem>>, vector<8x32xf32>,
    %122 = vector.extract_strided_slice %119 {offsets = [0, 32], sizes = [8, 32], strides = [1, 1]} : vector<8x64xf32> to vector<8x32xf32>
    %c56_64 = arith.constant 56 : index
    %c32_65 = arith.constant 32 : index
    %123 = vector.load %arg14[%c56_64, %c32_65] : memref<64x64xf32, #tpu.memory_space<vmem>>, vector<8x32xf32>
    tpu.vector_store %arg14[%c56_64, %c32_65], %122 {strides = array<i32>} : memref<64x64xf32, #tpu.memory_space<vmem>>, vector<8x32xf32>,
    %c8_66 = arith.constant 8 : index
    %c0_67 = arith.constant 0 : index
    %124 = vector.load %arg13[%c8_66, %c0_67] : memref<64x256xf32, #tpu.memory_space<vmem>>, vector<8x256xf32>
    %c48_68 = arith.constant 48 : index
    %c0_69 = arith.constant 0 : index
    %125 = vector.load %arg13[%c48_68, %c0_69] : memref<64x256xf32, #tpu.memory_space<vmem>>, vector<8x256xf32>
    %126 = arith.select %84, %124, %125 : vector<8x256xi1>, vector<8x256xf32>
    %127 = arith.truncf %119 : vector<8x64xf32> to vector<8x64xbf16>
    %cst_70 = arith.constant dense<0.000000e+00> : vector<8x256xf32>
    %128 = tpu.matmul %127, %93, %cst_70 {dimension_numbers = #tpu.dot_dimension_numbers<[1], [0], [0], [1], [0, 0, 1, 1], [], []>} : vector<8x64xbf16>, vector<64x256xbf16>, vector<8x256xf32> -> vector<8x256xf32>
    %129 = arith.addf %126, %128 : vector<8x256xf32>
    %130 = arith.negf %129 : vector<8x256xf32>
    %131 = math.exp %130 : vector<8x256xf32>
    %cst_71 = arith.constant 1.000000e+00 : f32
    %132 = vector.broadcast %cst_71 : f32 to vector<8x256xf32>
    %133 = arith.addf %132, %131 : vector<8x256xf32>
    %134 = arith.divf %132, %133 : vector<8x256xf32>
    %135 = vector.extract_strided_slice %134 {offsets = [0, 0], sizes = [8, 64], strides = [1, 1]} : vector<8x256xf32> to vector<8x64xf32>
    %136 = vector.extract_strided_slice %134 {offsets = [0, 64], sizes = [8, 64], strides = [1, 1]} : vector<8x256xf32> to vector<8x64xf32>
    %137 = vector.extract_strided_slice %134 {offsets = [0, 128], sizes = [8, 64], strides = [1, 1]} : vector<8x256xf32> to vector<8x64xf32>
    %cst_72 = arith.constant 2.000000e+00 : f32
    %138 = vector.broadcast %cst_72 : f32 to vector<8x64xf32>
    %139 = arith.mulf %138, %137 : vector<8x64xf32>
    %cst_73 = arith.constant 1.000000e+00 : f32
    %140 = vector.broadcast %cst_73 : f32 to vector<8x64xf32>
    %141 = arith.subf %139, %140 : vector<8x64xf32>
    %142 = vector.extract_strided_slice %134 {offsets = [0, 192], sizes = [8, 64], strides = [1, 1]} : vector<8x256xf32> to vector<8x64xf32>
    %143 = arith.mulf %136, %117 : vector<8x64xf32>
    %144 = arith.mulf %135, %141 : vector<8x64xf32>
    %145 = arith.addf %143, %144 : vector<8x64xf32>
    %146 = math.tanh %145 : vector<8x64xf32>
    %147 = arith.mulf %142, %146 : vector<8x64xf32>
    %148 = vector.extract_strided_slice %147 {offsets = [0, 0], sizes = [8, 32], strides = [1, 1]} : vector<8x64xf32> to vector<8x32xf32>
    %c8_74 = arith.constant 8 : index
    %c0_75 = arith.constant 0 : index
    %149 = vector.load %arg14[%c8_74, %c0_75] : memref<64x64xf32, #tpu.memory_space<vmem>>, vector<8x32xf32>
    tpu.vector_store %arg14[%c8_74, %c0_75], %148 {strides = array<i32>} : memref<64x64xf32, #tpu.memory_space<vmem>>, vector<8x32xf32>,
    %150 = vector.extract_strided_slice %147 {offsets = [0, 32], sizes = [8, 32], strides = [1, 1]} : vector<8x64xf32> to vector<8x32xf32>
    %c48_76 = arith.constant 48 : index
    %c32_77 = arith.constant 32 : index
    %151 = vector.load %arg14[%c48_76, %c32_77] : memref<64x64xf32, #tpu.memory_space<vmem>>, vector<8x32xf32>
    tpu.vector_store %arg14[%c48_76, %c32_77], %150 {strides = array<i32>} : memref<64x64xf32, #tpu.memory_space<vmem>>, vector<8x32xf32>,
    %c16_78 = arith.constant 16 : index
    %c0_79 = arith.constant 0 : index
    %152 = vector.load %arg13[%c16_78, %c0_79] : memref<64x256xf32, #tpu.memory_space<vmem>>, vector<8x256xf32>
    %c40_80 = arith.constant 40 : index
    %c0_81 = arith.constant 0 : index
    %153 = vector.load %arg13[%c40_80, %c0_81] : memref<64x256xf32, #tpu.memory_space<vmem>>, vector<8x256xf32>
    %154 = arith.select %84, %152, %153 : vector<8x256xi1>, vector<8x256xf32>
    %155 = arith.truncf %147 : vector<8x64xf32> to vector<8x64xbf16>
    %cst_82 = arith.constant dense<0.000000e+00> : vector<8x256xf32>
    %156 = tpu.matmul %155, %93, %cst_82 {dimension_numbers = #tpu.dot_dimension_numbers<[1], [0], [0], [1], [0, 0, 1, 1], [], []>} : vector<8x64xbf16>, vector<64x256xbf16>, vector<8x256xf32> -> vector<8x256xf32>
    %157 = arith.addf %154, %156 : vector<8x256xf32>
    %158 = arith.negf %157 : vector<8x256xf32>
    %159 = math.exp %158 : vector<8x256xf32>
    %cst_83 = arith.constant 1.000000e+00 : f32
    %160 = vector.broadcast %cst_83 : f32 to vector<8x256xf32>
    %161 = arith.addf %160, %159 : vector<8x256xf32>
    %162 = arith.divf %160, %161 : vector<8x256xf32>
    %163 = vector.extract_strided_slice %162 {offsets = [0, 0], sizes = [8, 64], strides = [1, 1]} : vector<8x256xf32> to vector<8x64xf32>
    %164 = vector.extract_strided_slice %162 {offsets = [0, 64], sizes = [8, 64], strides = [1, 1]} : vector<8x256xf32> to vector<8x64xf32>
    %165 = vector.extract_strided_slice %162 {offsets = [0, 128], sizes = [8, 64], strides = [1, 1]} : vector<8x256xf32> to vector<8x64xf32>
    %cst_84 = arith.constant 2.000000e+00 : f32
    %166 = vector.broadcast %cst_84 : f32 to vector<8x64xf32>
    %167 = arith.mulf %166, %165 : vector<8x64xf32>
    %cst_85 = arith.constant 1.000000e+00 : f32
    %168 = vector.broadcast %cst_85 : f32 to vector<8x64xf32>
    %169 = arith.subf %167, %168 : vector<8x64xf32>
    %170 = vector.extract_strided_slice %162 {offsets = [0, 192], sizes = [8, 64], strides = [1, 1]} : vector<8x256xf32> to vector<8x64xf32>
    %171 = arith.mulf %164, %145 : vector<8x64xf32>
    %172 = arith.mulf %163, %169 : vector<8x64xf32>
    %173 = arith.addf %171, %172 : vector<8x64xf32>
    %174 = math.tanh %173 : vector<8x64xf32>
    %175 = arith.mulf %170, %174 : vector<8x64xf32>
    %176 = vector.extract_strided_slice %175 {offsets = [0, 0], sizes = [8, 32], strides = [1, 1]} : vector<8x64xf32> to vector<8x32xf32>
    %c16_86 = arith.constant 16 : index
    %c0_87 = arith.constant 0 : index
    %177 = vector.load %arg14[%c16_86, %c0_87] : memref<64x64xf32, #tpu.memory_space<vmem>>, vector<8x32xf32>
    tpu.vector_store %arg14[%c16_86, %c0_87], %176 {strides = array<i32>} : memref<64x64xf32, #tpu.memory_space<vmem>>, vector<8x32xf32>,
    %178 = vector.extract_strided_slice %175 {offsets = [0, 32], sizes = [8, 32], strides = [1, 1]} : vector<8x64xf32> to vector<8x32xf32>
    %c40_88 = arith.constant 40 : index
    %c32_89 = arith.constant 32 : index
    %179 = vector.load %arg14[%c40_88, %c32_89] : memref<64x64xf32, #tpu.memory_space<vmem>>, vector<8x32xf32>
    tpu.vector_store %arg14[%c40_88, %c32_89], %178 {strides = array<i32>} : memref<64x64xf32, #tpu.memory_space<vmem>>, vector<8x32xf32>,
    %c24_90 = arith.constant 24 : index
    %c0_91 = arith.constant 0 : index
    %180 = vector.load %arg13[%c24_90, %c0_91] : memref<64x256xf32, #tpu.memory_space<vmem>>, vector<8x256xf32>
    %c32_92 = arith.constant 32 : index
    %c0_93 = arith.constant 0 : index
    %181 = vector.load %arg13[%c32_92, %c0_93] : memref<64x256xf32, #tpu.memory_space<vmem>>, vector<8x256xf32>
    %182 = arith.select %84, %180, %181 : vector<8x256xi1>, vector<8x256xf32>
    %183 = arith.truncf %175 : vector<8x64xf32> to vector<8x64xbf16>
    %cst_94 = arith.constant dense<0.000000e+00> : vector<8x256xf32>
    %184 = tpu.matmul %183, %93, %cst_94 {dimension_numbers = #tpu.dot_dimension_numbers<[1], [0], [0], [1], [0, 0, 1, 1], [], []>} : vector<8x64xbf16>, vector<64x256xbf16>, vector<8x256xf32> -> vector<8x256xf32>
    %185 = arith.addf %182, %184 : vector<8x256xf32>
    %186 = arith.negf %185 : vector<8x256xf32>
    %187 = math.exp %186 : vector<8x256xf32>
    %cst_95 = arith.constant 1.000000e+00 : f32
    %188 = vector.broadcast %cst_95 : f32 to vector<8x256xf32>
    %189 = arith.addf %188, %187 : vector<8x256xf32>
    %190 = arith.divf %188, %189 : vector<8x256xf32>
    %191 = vector.extract_strided_slice %190 {offsets = [0, 0], sizes = [8, 64], strides = [1, 1]} : vector<8x256xf32> to vector<8x64xf32>
    %192 = vector.extract_strided_slice %190 {offsets = [0, 64], sizes = [8, 64], strides = [1, 1]} : vector<8x256xf32> to vector<8x64xf32>
    %193 = vector.extract_strided_slice %190 {offsets = [0, 128], sizes = [8, 64], strides = [1, 1]} : vector<8x256xf32> to vector<8x64xf32>
    %cst_96 = arith.constant 2.000000e+00 : f32
    %194 = vector.broadcast %cst_96 : f32 to vector<8x64xf32>
    %195 = arith.mulf %194, %193 : vector<8x64xf32>
    %cst_97 = arith.constant 1.000000e+00 : f32
    %196 = vector.broadcast %cst_97 : f32 to vector<8x64xf32>
    %197 = arith.subf %195, %196 : vector<8x64xf32>
    %198 = vector.extract_strided_slice %190 {offsets = [0, 192], sizes = [8, 64], strides = [1, 1]} : vector<8x256xf32> to vector<8x64xf32>
    %199 = arith.mulf %192, %173 : vector<8x64xf32>
    %200 = arith.mulf %191, %197 : vector<8x64xf32>
    %201 = arith.addf %199, %200 : vector<8x64xf32>
    %202 = math.tanh %201 : vector<8x64xf32>
    %203 = arith.mulf %198, %202 : vector<8x64xf32>
    %204 = vector.extract_strided_slice %203 {offsets = [0, 0], sizes = [8, 32], strides = [1, 1]} : vector<8x64xf32> to vector<8x32xf32>
    %c24_98 = arith.constant 24 : index
    %c0_99 = arith.constant 0 : index
    %205 = vector.load %arg14[%c24_98, %c0_99] : memref<64x64xf32, #tpu.memory_space<vmem>>, vector<8x32xf32>
    tpu.vector_store %arg14[%c24_98, %c0_99], %204 {strides = array<i32>} : memref<64x64xf32, #tpu.memory_space<vmem>>, vector<8x32xf32>,
    %206 = vector.extract_strided_slice %203 {offsets = [0, 32], sizes = [8, 32], strides = [1, 1]} : vector<8x64xf32> to vector<8x32xf32>
    %c32_100 = arith.constant 32 : index
    %c32_101 = arith.constant 32 : index
    %207 = vector.load %arg14[%c32_100, %c32_101] : memref<64x64xf32, #tpu.memory_space<vmem>>, vector<8x32xf32>
    tpu.vector_store %arg14[%c32_100, %c32_101], %206 {strides = array<i32>} : memref<64x64xf32, #tpu.memory_space<vmem>>, vector<8x32xf32>,
    %c32_102 = arith.constant 32 : index
    %c0_103 = arith.constant 0 : index
    %208 = vector.load %arg13[%c32_102, %c0_103] : memref<64x256xf32, #tpu.memory_space<vmem>>, vector<8x256xf32>
    %c24_104 = arith.constant 24 : index
    %c0_105 = arith.constant 0 : index
    %209 = vector.load %arg13[%c24_104, %c0_105] : memref<64x256xf32, #tpu.memory_space<vmem>>, vector<8x256xf32>
    %210 = arith.select %84, %208, %209 : vector<8x256xi1>, vector<8x256xf32>
    %211 = arith.truncf %203 : vector<8x64xf32> to vector<8x64xbf16>
    %cst_106 = arith.constant dense<0.000000e+00> : vector<8x256xf32>
    %212 = tpu.matmul %211, %93, %cst_106 {dimension_numbers = #tpu.dot_dimension_numbers<[1], [0], [0], [1], [0, 0, 1, 1], [], []>} : vector<8x64xbf16>, vector<64x256xbf16>, vector<8x256xf32> -> vector<8x256xf32>
    %213 = arith.addf %210, %212 : vector<8x256xf32>
    %214 = arith.negf %213 : vector<8x256xf32>
    %215 = math.exp %214 : vector<8x256xf32>
    %cst_107 = arith.constant 1.000000e+00 : f32
    %216 = vector.broadcast %cst_107 : f32 to vector<8x256xf32>
    %217 = arith.addf %216, %215 : vector<8x256xf32>
    %218 = arith.divf %216, %217 : vector<8x256xf32>
    %219 = vector.extract_strided_slice %218 {offsets = [0, 0], sizes = [8, 64], strides = [1, 1]} : vector<8x256xf32> to vector<8x64xf32>
    %220 = vector.extract_strided_slice %218 {offsets = [0, 64], sizes = [8, 64], strides = [1, 1]} : vector<8x256xf32> to vector<8x64xf32>
    %221 = vector.extract_strided_slice %218 {offsets = [0, 128], sizes = [8, 64], strides = [1, 1]} : vector<8x256xf32> to vector<8x64xf32>
    %cst_108 = arith.constant 2.000000e+00 : f32
    %222 = vector.broadcast %cst_108 : f32 to vector<8x64xf32>
    %223 = arith.mulf %222, %221 : vector<8x64xf32>
    %cst_109 = arith.constant 1.000000e+00 : f32
    %224 = vector.broadcast %cst_109 : f32 to vector<8x64xf32>
    %225 = arith.subf %223, %224 : vector<8x64xf32>
    %226 = vector.extract_strided_slice %218 {offsets = [0, 192], sizes = [8, 64], strides = [1, 1]} : vector<8x256xf32> to vector<8x64xf32>
    %227 = arith.mulf %220, %201 : vector<8x64xf32>
    %228 = arith.mulf %219, %225 : vector<8x64xf32>
    %229 = arith.addf %227, %228 : vector<8x64xf32>
    %230 = math.tanh %229 : vector<8x64xf32>
    %231 = arith.mulf %226, %230 : vector<8x64xf32>
    %232 = vector.extract_strided_slice %231 {offsets = [0, 0], sizes = [8, 32], strides = [1, 1]} : vector<8x64xf32> to vector<8x32xf32>
    %c32_110 = arith.constant 32 : index
    %c0_111 = arith.constant 0 : index
    %233 = vector.load %arg14[%c32_110, %c0_111] : memref<64x64xf32, #tpu.memory_space<vmem>>, vector<8x32xf32>
    tpu.vector_store %arg14[%c32_110, %c0_111], %232 {strides = array<i32>} : memref<64x64xf32, #tpu.memory_space<vmem>>, vector<8x32xf32>,
    %234 = vector.extract_strided_slice %231 {offsets = [0, 32], sizes = [8, 32], strides = [1, 1]} : vector<8x64xf32> to vector<8x32xf32>
    %c24_112 = arith.constant 24 : index
    %c32_113 = arith.constant 32 : index
    %235 = vector.load %arg14[%c24_112, %c32_113] : memref<64x64xf32, #tpu.memory_space<vmem>>, vector<8x32xf32>
    tpu.vector_store %arg14[%c24_112, %c32_113], %234 {strides = array<i32>} : memref<64x64xf32, #tpu.memory_space<vmem>>, vector<8x32xf32>,
    %c40_114 = arith.constant 40 : index
    %c0_115 = arith.constant 0 : index
    %236 = vector.load %arg13[%c40_114, %c0_115] : memref<64x256xf32, #tpu.memory_space<vmem>>, vector<8x256xf32>
    %c16_116 = arith.constant 16 : index
    %c0_117 = arith.constant 0 : index
    %237 = vector.load %arg13[%c16_116, %c0_117] : memref<64x256xf32, #tpu.memory_space<vmem>>, vector<8x256xf32>
    %238 = arith.select %84, %236, %237 : vector<8x256xi1>, vector<8x256xf32>
    %239 = arith.truncf %231 : vector<8x64xf32> to vector<8x64xbf16>
    %cst_118 = arith.constant dense<0.000000e+00> : vector<8x256xf32>
    %240 = tpu.matmul %239, %93, %cst_118 {dimension_numbers = #tpu.dot_dimension_numbers<[1], [0], [0], [1], [0, 0, 1, 1], [], []>} : vector<8x64xbf16>, vector<64x256xbf16>, vector<8x256xf32> -> vector<8x256xf32>
    %241 = arith.addf %238, %240 : vector<8x256xf32>
    %242 = arith.negf %241 : vector<8x256xf32>
    %243 = math.exp %242 : vector<8x256xf32>
    %cst_119 = arith.constant 1.000000e+00 : f32
    %244 = vector.broadcast %cst_119 : f32 to vector<8x256xf32>
    %245 = arith.addf %244, %243 : vector<8x256xf32>
    %246 = arith.divf %244, %245 : vector<8x256xf32>
    %247 = vector.extract_strided_slice %246 {offsets = [0, 0], sizes = [8, 64], strides = [1, 1]} : vector<8x256xf32> to vector<8x64xf32>
    %248 = vector.extract_strided_slice %246 {offsets = [0, 64], sizes = [8, 64], strides = [1, 1]} : vector<8x256xf32> to vector<8x64xf32>
    %249 = vector.extract_strided_slice %246 {offsets = [0, 128], sizes = [8, 64], strides = [1, 1]} : vector<8x256xf32> to vector<8x64xf32>
    %cst_120 = arith.constant 2.000000e+00 : f32
    %250 = vector.broadcast %cst_120 : f32 to vector<8x64xf32>
    %251 = arith.mulf %250, %249 : vector<8x64xf32>
    %cst_121 = arith.constant 1.000000e+00 : f32
    %252 = vector.broadcast %cst_121 : f32 to vector<8x64xf32>
    %253 = arith.subf %251, %252 : vector<8x64xf32>
    %254 = vector.extract_strided_slice %246 {offsets = [0, 192], sizes = [8, 64], strides = [1, 1]} : vector<8x256xf32> to vector<8x64xf32>
    %255 = arith.mulf %248, %229 : vector<8x64xf32>
    %256 = arith.mulf %247, %253 : vector<8x64xf32>
    %257 = arith.addf %255, %256 : vector<8x64xf32>
    %258 = math.tanh %257 : vector<8x64xf32>
    %259 = arith.mulf %254, %258 : vector<8x64xf32>
    %260 = vector.extract_strided_slice %259 {offsets = [0, 0], sizes = [8, 32], strides = [1, 1]} : vector<8x64xf32> to vector<8x32xf32>
    %c40_122 = arith.constant 40 : index
    %c0_123 = arith.constant 0 : index
    %261 = vector.load %arg14[%c40_122, %c0_123] : memref<64x64xf32, #tpu.memory_space<vmem>>, vector<8x32xf32>
    tpu.vector_store %arg14[%c40_122, %c0_123], %260 {strides = array<i32>} : memref<64x64xf32, #tpu.memory_space<vmem>>, vector<8x32xf32>,
    %262 = vector.extract_strided_slice %259 {offsets = [0, 32], sizes = [8, 32], strides = [1, 1]} : vector<8x64xf32> to vector<8x32xf32>
    %c16_124 = arith.constant 16 : index
    %c32_125 = arith.constant 32 : index
    %263 = vector.load %arg14[%c16_124, %c32_125] : memref<64x64xf32, #tpu.memory_space<vmem>>, vector<8x32xf32>
    tpu.vector_store %arg14[%c16_124, %c32_125], %262 {strides = array<i32>} : memref<64x64xf32, #tpu.memory_space<vmem>>, vector<8x32xf32>,
    %c48_126 = arith.constant 48 : index
    %c0_127 = arith.constant 0 : index
    %264 = vector.load %arg13[%c48_126, %c0_127] : memref<64x256xf32, #tpu.memory_space<vmem>>, vector<8x256xf32>
    %c8_128 = arith.constant 8 : index
    %c0_129 = arith.constant 0 : index
    %265 = vector.load %arg13[%c8_128, %c0_129] : memref<64x256xf32, #tpu.memory_space<vmem>>, vector<8x256xf32>
    %266 = arith.select %84, %264, %265 : vector<8x256xi1>, vector<8x256xf32>
    %267 = arith.truncf %259 : vector<8x64xf32> to vector<8x64xbf16>
    %cst_130 = arith.constant dense<0.000000e+00> : vector<8x256xf32>
    %268 = tpu.matmul %267, %93, %cst_130 {dimension_numbers = #tpu.dot_dimension_numbers<[1], [0], [0], [1], [0, 0, 1, 1], [], []>} : vector<8x64xbf16>, vector<64x256xbf16>, vector<8x256xf32> -> vector<8x256xf32>
    %269 = arith.addf %266, %268 : vector<8x256xf32>
    %270 = arith.negf %269 : vector<8x256xf32>
    %271 = math.exp %270 : vector<8x256xf32>
    %cst_131 = arith.constant 1.000000e+00 : f32
    %272 = vector.broadcast %cst_131 : f32 to vector<8x256xf32>
    %273 = arith.addf %272, %271 : vector<8x256xf32>
    %274 = arith.divf %272, %273 : vector<8x256xf32>
    %275 = vector.extract_strided_slice %274 {offsets = [0, 0], sizes = [8, 64], strides = [1, 1]} : vector<8x256xf32> to vector<8x64xf32>
    %276 = vector.extract_strided_slice %274 {offsets = [0, 64], sizes = [8, 64], strides = [1, 1]} : vector<8x256xf32> to vector<8x64xf32>
    %277 = vector.extract_strided_slice %274 {offsets = [0, 128], sizes = [8, 64], strides = [1, 1]} : vector<8x256xf32> to vector<8x64xf32>
    %cst_132 = arith.constant 2.000000e+00 : f32
    %278 = vector.broadcast %cst_132 : f32 to vector<8x64xf32>
    %279 = arith.mulf %278, %277 : vector<8x64xf32>
    %cst_133 = arith.constant 1.000000e+00 : f32
    %280 = vector.broadcast %cst_133 : f32 to vector<8x64xf32>
    %281 = arith.subf %279, %280 : vector<8x64xf32>
    %282 = vector.extract_strided_slice %274 {offsets = [0, 192], sizes = [8, 64], strides = [1, 1]} : vector<8x256xf32> to vector<8x64xf32>
    %283 = arith.mulf %276, %257 : vector<8x64xf32>
    %284 = arith.mulf %275, %281 : vector<8x64xf32>
    %285 = arith.addf %283, %284 : vector<8x64xf32>
    %286 = math.tanh %285 : vector<8x64xf32>
    %287 = arith.mulf %282, %286 : vector<8x64xf32>
    %288 = vector.extract_strided_slice %287 {offsets = [0, 0], sizes = [8, 32], strides = [1, 1]} : vector<8x64xf32> to vector<8x32xf32>
    %c48_134 = arith.constant 48 : index
    %c0_135 = arith.constant 0 : index
    %289 = vector.load %arg14[%c48_134, %c0_135] : memref<64x64xf32, #tpu.memory_space<vmem>>, vector<8x32xf32>
    tpu.vector_store %arg14[%c48_134, %c0_135], %288 {strides = array<i32>} : memref<64x64xf32, #tpu.memory_space<vmem>>, vector<8x32xf32>,
    %290 = vector.extract_strided_slice %287 {offsets = [0, 32], sizes = [8, 32], strides = [1, 1]} : vector<8x64xf32> to vector<8x32xf32>
    %c8_136 = arith.constant 8 : index
    %c32_137 = arith.constant 32 : index
    %291 = vector.load %arg14[%c8_136, %c32_137] : memref<64x64xf32, #tpu.memory_space<vmem>>, vector<8x32xf32>
    tpu.vector_store %arg14[%c8_136, %c32_137], %290 {strides = array<i32>} : memref<64x64xf32, #tpu.memory_space<vmem>>, vector<8x32xf32>,
    %c56_138 = arith.constant 56 : index
    %c0_139 = arith.constant 0 : index
    %292 = vector.load %arg13[%c56_138, %c0_139] : memref<64x256xf32, #tpu.memory_space<vmem>>, vector<8x256xf32>
    %c0_140 = arith.constant 0 : index
    %c0_141 = arith.constant 0 : index
    %293 = vector.load %arg13[%c0_140, %c0_141] : memref<64x256xf32, #tpu.memory_space<vmem>>, vector<8x256xf32>
    %294 = arith.select %84, %292, %293 : vector<8x256xi1>, vector<8x256xf32>
    %295 = arith.truncf %287 : vector<8x64xf32> to vector<8x64xbf16>
    %cst_142 = arith.constant dense<0.000000e+00> : vector<8x256xf32>
    %296 = tpu.matmul %295, %93, %cst_142 {dimension_numbers = #tpu.dot_dimension_numbers<[1], [0], [0], [1], [0, 0, 1, 1], [], []>} : vector<8x64xbf16>, vector<64x256xbf16>, vector<8x256xf32> -> vector<8x256xf32>
    %297 = arith.addf %294, %296 : vector<8x256xf32>
    %298 = arith.negf %297 : vector<8x256xf32>
    %299 = math.exp %298 : vector<8x256xf32>
    %cst_143 = arith.constant 1.000000e+00 : f32
    %300 = vector.broadcast %cst_143 : f32 to vector<8x256xf32>
    %301 = arith.addf %300, %299 : vector<8x256xf32>
    %302 = arith.divf %300, %301 : vector<8x256xf32>
    %303 = vector.extract_strided_slice %302 {offsets = [0, 0], sizes = [8, 64], strides = [1, 1]} : vector<8x256xf32> to vector<8x64xf32>
    %304 = vector.extract_strided_slice %302 {offsets = [0, 64], sizes = [8, 64], strides = [1, 1]} : vector<8x256xf32> to vector<8x64xf32>
    %305 = vector.extract_strided_slice %302 {offsets = [0, 128], sizes = [8, 64], strides = [1, 1]} : vector<8x256xf32> to vector<8x64xf32>
    %cst_144 = arith.constant 2.000000e+00 : f32
    %306 = vector.broadcast %cst_144 : f32 to vector<8x64xf32>
    %307 = arith.mulf %306, %305 : vector<8x64xf32>
    %cst_145 = arith.constant 1.000000e+00 : f32
    %308 = vector.broadcast %cst_145 : f32 to vector<8x64xf32>
    %309 = arith.subf %307, %308 : vector<8x64xf32>
    %310 = vector.extract_strided_slice %302 {offsets = [0, 192], sizes = [8, 64], strides = [1, 1]} : vector<8x256xf32> to vector<8x64xf32>
    %311 = arith.mulf %304, %285 : vector<8x64xf32>
    %312 = arith.mulf %303, %309 : vector<8x64xf32>
    %313 = arith.addf %311, %312 : vector<8x64xf32>
    %314 = math.tanh %313 : vector<8x64xf32>
    %315 = arith.mulf %310, %314 : vector<8x64xf32>
    %316 = vector.extract_strided_slice %315 {offsets = [0, 0], sizes = [8, 32], strides = [1, 1]} : vector<8x64xf32> to vector<8x32xf32>
    %c56_146 = arith.constant 56 : index
    %c0_147 = arith.constant 0 : index
    %317 = vector.load %arg14[%c56_146, %c0_147] : memref<64x64xf32, #tpu.memory_space<vmem>>, vector<8x32xf32>
    tpu.vector_store %arg14[%c56_146, %c0_147], %316 {strides = array<i32>} : memref<64x64xf32, #tpu.memory_space<vmem>>, vector<8x32xf32>,
    %318 = vector.extract_strided_slice %315 {offsets = [0, 32], sizes = [8, 32], strides = [1, 1]} : vector<8x64xf32> to vector<8x32xf32>
    %c0_148 = arith.constant 0 : index
    %c32_149 = arith.constant 32 : index
    %319 = vector.load %arg14[%c0_148, %c32_149] : memref<64x64xf32, #tpu.memory_space<vmem>>, vector<8x32xf32>
    tpu.vector_store %arg14[%c0_148, %c32_149], %318 {strides = array<i32>} : memref<64x64xf32, #tpu.memory_space<vmem>>, vector<8x32xf32>,
    %c0_150 = arith.constant 0 : index
    %c0_151 = arith.constant 0 : index
    %320 = vector.load %arg14[%c0_150, %c0_151] : memref<64x64xf32, #tpu.memory_space<vmem>>, vector<64x64xf32>
    %321 = arith.truncf %320 : vector<64x64xf32> to vector<64x64xbf16>
    %c0_152 = arith.constant 0 : index
    %c0_153 = arith.constant 0 : index
    %322 = vector.load %arg6[%c0_152, %c0_153] : memref<64x256xbf16, #tpu.memory_space<vmem>>, vector<64x256xbf16>
    %cst_154 = arith.constant dense<0.000000e+00> : vector<64x256xf32>
    %323 = tpu.matmul %321, %322, %cst_154 {dimension_numbers = #tpu.dot_dimension_numbers<[1], [0], [0], [1], [0, 0, 1, 1], [], []>} : vector<64x64xbf16>, vector<64x256xbf16>, vector<64x256xf32> -> vector<64x256xf32>
    %c0_155 = arith.constant 0 : index
    %c0_156 = arith.constant 0 : index
    %324 = vector.load %arg8[%c0_155, %c0_156] : memref<1x256xf32, #tpu.memory_space<vmem>>, vector<1x256xf32>
    %325 = vector.broadcast %324 : vector<1x256xf32> to vector<64x256xf32>
    %326 = arith.addf %323, %325 : vector<64x256xf32>
    %c0_157 = arith.constant 0 : index
    %c0_158 = arith.constant 0 : index
    %327 = vector.load %arg13[%c0_157, %c0_158] : memref<64x256xf32, #tpu.memory_space<vmem>>, vector<64x256xf32>
    tpu.vector_store %arg13[%c0_157, %c0_158], %326 {strides = array<i32>} : memref<64x256xf32, #tpu.memory_space<vmem>>, vector<64x256xf32>,
    %c0_159 = arith.constant 0 : index
    %c0_160 = arith.constant 0 : index
    %328 = vector.load %arg7[%c0_159, %c0_160] : memref<64x256xbf16, #tpu.memory_space<vmem>>, vector<64x256xbf16>
    %cst_161 = arith.constant 0.000000e+00 : f32
    %329 = vector.broadcast %cst_161 : f32 to vector<8x64xf32>
    %cst_162 = arith.constant 0.000000e+00 : f32
    %330 = vector.broadcast %cst_162 : f32 to vector<8x64xf32>
    %c0_163 = arith.constant 0 : index
    %c0_164 = arith.constant 0 : index
    %331 = vector.load %arg13[%c0_163, %c0_164] : memref<64x256xf32, #tpu.memory_space<vmem>>, vector<8x256xf32>
    %c56_165 = arith.constant 56 : index
    %c0_166 = arith.constant 0 : index
    %332 = vector.load %arg13[%c56_165, %c0_166] : memref<64x256xf32, #tpu.memory_space<vmem>>, vector<8x256xf32>
    %333 = arith.select %84, %331, %332 : vector<8x256xi1>, vector<8x256xf32>
    %334 = arith.truncf %329 : vector<8x64xf32> to vector<8x64xbf16>
    %cst_167 = arith.constant dense<0.000000e+00> : vector<8x256xf32>
    %335 = tpu.matmul %334, %328, %cst_167 {dimension_numbers = #tpu.dot_dimension_numbers<[1], [0], [0], [1], [0, 0, 1, 1], [], []>} : vector<8x64xbf16>, vector<64x256xbf16>, vector<8x256xf32> -> vector<8x256xf32>
    %336 = arith.addf %333, %335 : vector<8x256xf32>
    %337 = arith.negf %336 : vector<8x256xf32>
    %338 = math.exp %337 : vector<8x256xf32>
    %cst_168 = arith.constant 1.000000e+00 : f32
    %339 = vector.broadcast %cst_168 : f32 to vector<8x256xf32>
    %340 = arith.addf %339, %338 : vector<8x256xf32>
    %341 = arith.divf %339, %340 : vector<8x256xf32>
    %342 = vector.extract_strided_slice %341 {offsets = [0, 0], sizes = [8, 64], strides = [1, 1]} : vector<8x256xf32> to vector<8x64xf32>
    %343 = vector.extract_strided_slice %341 {offsets = [0, 64], sizes = [8, 64], strides = [1, 1]} : vector<8x256xf32> to vector<8x64xf32>
    %344 = vector.extract_strided_slice %341 {offsets = [0, 128], sizes = [8, 64], strides = [1, 1]} : vector<8x256xf32> to vector<8x64xf32>
    %cst_169 = arith.constant 2.000000e+00 : f32
    %345 = vector.broadcast %cst_169 : f32 to vector<8x64xf32>
    %346 = arith.mulf %345, %344 : vector<8x64xf32>
    %cst_170 = arith.constant 1.000000e+00 : f32
    %347 = vector.broadcast %cst_170 : f32 to vector<8x64xf32>
    %348 = arith.subf %346, %347 : vector<8x64xf32>
    %349 = vector.extract_strided_slice %341 {offsets = [0, 192], sizes = [8, 64], strides = [1, 1]} : vector<8x256xf32> to vector<8x64xf32>
    %350 = arith.mulf %343, %330 : vector<8x64xf32>
    %351 = arith.mulf %342, %348 : vector<8x64xf32>
    %352 = arith.addf %350, %351 : vector<8x64xf32>
    %353 = math.tanh %352 : vector<8x64xf32>
    %354 = arith.mulf %349, %353 : vector<8x64xf32>
    %c8_171 = arith.constant 8 : index
    %c0_172 = arith.constant 0 : index
    %355 = vector.load %arg13[%c8_171, %c0_172] : memref<64x256xf32, #tpu.memory_space<vmem>>, vector<8x256xf32>
    %c48_173 = arith.constant 48 : index
    %c0_174 = arith.constant 0 : index
    %356 = vector.load %arg13[%c48_173, %c0_174] : memref<64x256xf32, #tpu.memory_space<vmem>>, vector<8x256xf32>
    %357 = arith.select %84, %355, %356 : vector<8x256xi1>, vector<8x256xf32>
    %358 = arith.truncf %354 : vector<8x64xf32> to vector<8x64xbf16>
    %cst_175 = arith.constant dense<0.000000e+00> : vector<8x256xf32>
    %359 = tpu.matmul %358, %328, %cst_175 {dimension_numbers = #tpu.dot_dimension_numbers<[1], [0], [0], [1], [0, 0, 1, 1], [], []>} : vector<8x64xbf16>, vector<64x256xbf16>, vector<8x256xf32> -> vector<8x256xf32>
    %360 = arith.addf %357, %359 : vector<8x256xf32>
    %361 = arith.negf %360 : vector<8x256xf32>
    %362 = math.exp %361 : vector<8x256xf32>
    %cst_176 = arith.constant 1.000000e+00 : f32
    %363 = vector.broadcast %cst_176 : f32 to vector<8x256xf32>
    %364 = arith.addf %363, %362 : vector<8x256xf32>
    %365 = arith.divf %363, %364 : vector<8x256xf32>
    %366 = vector.extract_strided_slice %365 {offsets = [0, 0], sizes = [8, 64], strides = [1, 1]} : vector<8x256xf32> to vector<8x64xf32>
    %367 = vector.extract_strided_slice %365 {offsets = [0, 64], sizes = [8, 64], strides = [1, 1]} : vector<8x256xf32> to vector<8x64xf32>
    %368 = vector.extract_strided_slice %365 {offsets = [0, 128], sizes = [8, 64], strides = [1, 1]} : vector<8x256xf32> to vector<8x64xf32>
    %cst_177 = arith.constant 2.000000e+00 : f32
    %369 = vector.broadcast %cst_177 : f32 to vector<8x64xf32>
    %370 = arith.mulf %369, %368 : vector<8x64xf32>
    %cst_178 = arith.constant 1.000000e+00 : f32
    %371 = vector.broadcast %cst_178 : f32 to vector<8x64xf32>
    %372 = arith.subf %370, %371 : vector<8x64xf32>
    %373 = vector.extract_strided_slice %365 {offsets = [0, 192], sizes = [8, 64], strides = [1, 1]} : vector<8x256xf32> to vector<8x64xf32>
    %374 = arith.mulf %367, %352 : vector<8x64xf32>
    %375 = arith.mulf %366, %372 : vector<8x64xf32>
    %376 = arith.addf %374, %375 : vector<8x64xf32>
    %377 = math.tanh %376 : vector<8x64xf32>
    %378 = arith.mulf %373, %377 : vector<8x64xf32>
    %c16_179 = arith.constant 16 : index
    %c0_180 = arith.constant 0 : index
    %379 = vector.load %arg13[%c16_179, %c0_180] : memref<64x256xf32, #tpu.memory_space<vmem>>, vector<8x256xf32>
    %c40_181 = arith.constant 40 : index
    %c0_182 = arith.constant 0 : index
    %380 = vector.load %arg13[%c40_181, %c0_182] : memref<64x256xf32, #tpu.memory_space<vmem>>, vector<8x256xf32>
    %381 = arith.select %84, %379, %380 : vector<8x256xi1>, vector<8x256xf32>
    %382 = arith.truncf %378 : vector<8x64xf32> to vector<8x64xbf16>
    %cst_183 = arith.constant dense<0.000000e+00> : vector<8x256xf32>
    %383 = tpu.matmul %382, %328, %cst_183 {dimension_numbers = #tpu.dot_dimension_numbers<[1], [0], [0], [1], [0, 0, 1, 1], [], []>} : vector<8x64xbf16>, vector<64x256xbf16>, vector<8x256xf32> -> vector<8x256xf32>
    %384 = arith.addf %381, %383 : vector<8x256xf32>
    %385 = arith.negf %384 : vector<8x256xf32>
    %386 = math.exp %385 : vector<8x256xf32>
    %cst_184 = arith.constant 1.000000e+00 : f32
    %387 = vector.broadcast %cst_184 : f32 to vector<8x256xf32>
    %388 = arith.addf %387, %386 : vector<8x256xf32>
    %389 = arith.divf %387, %388 : vector<8x256xf32>
    %390 = vector.extract_strided_slice %389 {offsets = [0, 0], sizes = [8, 64], strides = [1, 1]} : vector<8x256xf32> to vector<8x64xf32>
    %391 = vector.extract_strided_slice %389 {offsets = [0, 64], sizes = [8, 64], strides = [1, 1]} : vector<8x256xf32> to vector<8x64xf32>
    %392 = vector.extract_strided_slice %389 {offsets = [0, 128], sizes = [8, 64], strides = [1, 1]} : vector<8x256xf32> to vector<8x64xf32>
    %cst_185 = arith.constant 2.000000e+00 : f32
    %393 = vector.broadcast %cst_185 : f32 to vector<8x64xf32>
    %394 = arith.mulf %393, %392 : vector<8x64xf32>
    %cst_186 = arith.constant 1.000000e+00 : f32
    %395 = vector.broadcast %cst_186 : f32 to vector<8x64xf32>
    %396 = arith.subf %394, %395 : vector<8x64xf32>
    %397 = vector.extract_strided_slice %389 {offsets = [0, 192], sizes = [8, 64], strides = [1, 1]} : vector<8x256xf32> to vector<8x64xf32>
    %398 = arith.mulf %391, %376 : vector<8x64xf32>
    %399 = arith.mulf %390, %396 : vector<8x64xf32>
    %400 = arith.addf %398, %399 : vector<8x64xf32>
    %401 = math.tanh %400 : vector<8x64xf32>
    %402 = arith.mulf %397, %401 : vector<8x64xf32>
    %c24_187 = arith.constant 24 : index
    %c0_188 = arith.constant 0 : index
    %403 = vector.load %arg13[%c24_187, %c0_188] : memref<64x256xf32, #tpu.memory_space<vmem>>, vector<8x256xf32>
    %c32_189 = arith.constant 32 : index
    %c0_190 = arith.constant 0 : index
    %404 = vector.load %arg13[%c32_189, %c0_190] : memref<64x256xf32, #tpu.memory_space<vmem>>, vector<8x256xf32>
    %405 = arith.select %84, %403, %404 : vector<8x256xi1>, vector<8x256xf32>
    %406 = arith.truncf %402 : vector<8x64xf32> to vector<8x64xbf16>
    %cst_191 = arith.constant dense<0.000000e+00> : vector<8x256xf32>
    %407 = tpu.matmul %406, %328, %cst_191 {dimension_numbers = #tpu.dot_dimension_numbers<[1], [0], [0], [1], [0, 0, 1, 1], [], []>} : vector<8x64xbf16>, vector<64x256xbf16>, vector<8x256xf32> -> vector<8x256xf32>
    %408 = arith.addf %405, %407 : vector<8x256xf32>
    %409 = arith.negf %408 : vector<8x256xf32>
    %410 = math.exp %409 : vector<8x256xf32>
    %cst_192 = arith.constant 1.000000e+00 : f32
    %411 = vector.broadcast %cst_192 : f32 to vector<8x256xf32>
    %412 = arith.addf %411, %410 : vector<8x256xf32>
    %413 = arith.divf %411, %412 : vector<8x256xf32>
    %414 = vector.extract_strided_slice %413 {offsets = [0, 0], sizes = [8, 64], strides = [1, 1]} : vector<8x256xf32> to vector<8x64xf32>
    %415 = vector.extract_strided_slice %413 {offsets = [0, 64], sizes = [8, 64], strides = [1, 1]} : vector<8x256xf32> to vector<8x64xf32>
    %416 = vector.extract_strided_slice %413 {offsets = [0, 128], sizes = [8, 64], strides = [1, 1]} : vector<8x256xf32> to vector<8x64xf32>
    %cst_193 = arith.constant 2.000000e+00 : f32
    %417 = vector.broadcast %cst_193 : f32 to vector<8x64xf32>
    %418 = arith.mulf %417, %416 : vector<8x64xf32>
    %cst_194 = arith.constant 1.000000e+00 : f32
    %419 = vector.broadcast %cst_194 : f32 to vector<8x64xf32>
    %420 = arith.subf %418, %419 : vector<8x64xf32>
    %421 = vector.extract_strided_slice %413 {offsets = [0, 192], sizes = [8, 64], strides = [1, 1]} : vector<8x256xf32> to vector<8x64xf32>
    %422 = arith.mulf %415, %400 : vector<8x64xf32>
    %423 = arith.mulf %414, %420 : vector<8x64xf32>
    %424 = arith.addf %422, %423 : vector<8x64xf32>
    %425 = math.tanh %424 : vector<8x64xf32>
    %426 = arith.mulf %421, %425 : vector<8x64xf32>
    %c32_195 = arith.constant 32 : index
    %c0_196 = arith.constant 0 : index
    %427 = vector.load %arg13[%c32_195, %c0_196] : memref<64x256xf32, #tpu.memory_space<vmem>>, vector<8x256xf32>
    %c24_197 = arith.constant 24 : index
    %c0_198 = arith.constant 0 : index
    %428 = vector.load %arg13[%c24_197, %c0_198] : memref<64x256xf32, #tpu.memory_space<vmem>>, vector<8x256xf32>
    %429 = arith.select %84, %427, %428 : vector<8x256xi1>, vector<8x256xf32>
    %430 = arith.truncf %426 : vector<8x64xf32> to vector<8x64xbf16>
    %cst_199 = arith.constant dense<0.000000e+00> : vector<8x256xf32>
    %431 = tpu.matmul %430, %328, %cst_199 {dimension_numbers = #tpu.dot_dimension_numbers<[1], [0], [0], [1], [0, 0, 1, 1], [], []>} : vector<8x64xbf16>, vector<64x256xbf16>, vector<8x256xf32> -> vector<8x256xf32>
    %432 = arith.addf %429, %431 : vector<8x256xf32>
    %433 = arith.negf %432 : vector<8x256xf32>
    %434 = math.exp %433 : vector<8x256xf32>
    %cst_200 = arith.constant 1.000000e+00 : f32
    %435 = vector.broadcast %cst_200 : f32 to vector<8x256xf32>
    %436 = arith.addf %435, %434 : vector<8x256xf32>
    %437 = arith.divf %435, %436 : vector<8x256xf32>
    %438 = vector.extract_strided_slice %437 {offsets = [0, 0], sizes = [8, 64], strides = [1, 1]} : vector<8x256xf32> to vector<8x64xf32>
    %439 = vector.extract_strided_slice %437 {offsets = [0, 64], sizes = [8, 64], strides = [1, 1]} : vector<8x256xf32> to vector<8x64xf32>
    %440 = vector.extract_strided_slice %437 {offsets = [0, 128], sizes = [8, 64], strides = [1, 1]} : vector<8x256xf32> to vector<8x64xf32>
    %cst_201 = arith.constant 2.000000e+00 : f32
    %441 = vector.broadcast %cst_201 : f32 to vector<8x64xf32>
    %442 = arith.mulf %441, %440 : vector<8x64xf32>
    %cst_202 = arith.constant 1.000000e+00 : f32
    %443 = vector.broadcast %cst_202 : f32 to vector<8x64xf32>
    %444 = arith.subf %442, %443 : vector<8x64xf32>
    %445 = vector.extract_strided_slice %437 {offsets = [0, 192], sizes = [8, 64], strides = [1, 1]} : vector<8x256xf32> to vector<8x64xf32>
    %446 = arith.mulf %439, %424 : vector<8x64xf32>
    %447 = arith.mulf %438, %444 : vector<8x64xf32>
    %448 = arith.addf %446, %447 : vector<8x64xf32>
    %449 = math.tanh %448 : vector<8x64xf32>
    %450 = arith.mulf %445, %449 : vector<8x64xf32>
    %c40_203 = arith.constant 40 : index
    %c0_204 = arith.constant 0 : index
    %451 = vector.load %arg13[%c40_203, %c0_204] : memref<64x256xf32, #tpu.memory_space<vmem>>, vector<8x256xf32>
    %c16_205 = arith.constant 16 : index
    %c0_206 = arith.constant 0 : index
    %452 = vector.load %arg13[%c16_205, %c0_206] : memref<64x256xf32, #tpu.memory_space<vmem>>, vector<8x256xf32>
    %453 = arith.select %84, %451, %452 : vector<8x256xi1>, vector<8x256xf32>
    %454 = arith.truncf %450 : vector<8x64xf32> to vector<8x64xbf16>
    %cst_207 = arith.constant dense<0.000000e+00> : vector<8x256xf32>
    %455 = tpu.matmul %454, %328, %cst_207 {dimension_numbers = #tpu.dot_dimension_numbers<[1], [0], [0], [1], [0, 0, 1, 1], [], []>} : vector<8x64xbf16>, vector<64x256xbf16>, vector<8x256xf32> -> vector<8x256xf32>
    %456 = arith.addf %453, %455 : vector<8x256xf32>
    %457 = arith.negf %456 : vector<8x256xf32>
    %458 = math.exp %457 : vector<8x256xf32>
    %cst_208 = arith.constant 1.000000e+00 : f32
    %459 = vector.broadcast %cst_208 : f32 to vector<8x256xf32>
    %460 = arith.addf %459, %458 : vector<8x256xf32>
    %461 = arith.divf %459, %460 : vector<8x256xf32>
    %462 = vector.extract_strided_slice %461 {offsets = [0, 0], sizes = [8, 64], strides = [1, 1]} : vector<8x256xf32> to vector<8x64xf32>
    %463 = vector.extract_strided_slice %461 {offsets = [0, 64], sizes = [8, 64], strides = [1, 1]} : vector<8x256xf32> to vector<8x64xf32>
    %464 = vector.extract_strided_slice %461 {offsets = [0, 128], sizes = [8, 64], strides = [1, 1]} : vector<8x256xf32> to vector<8x64xf32>
    %cst_209 = arith.constant 2.000000e+00 : f32
    %465 = vector.broadcast %cst_209 : f32 to vector<8x64xf32>
    %466 = arith.mulf %465, %464 : vector<8x64xf32>
    %cst_210 = arith.constant 1.000000e+00 : f32
    %467 = vector.broadcast %cst_210 : f32 to vector<8x64xf32>
    %468 = arith.subf %466, %467 : vector<8x64xf32>
    %469 = vector.extract_strided_slice %461 {offsets = [0, 192], sizes = [8, 64], strides = [1, 1]} : vector<8x256xf32> to vector<8x64xf32>
    %470 = arith.mulf %463, %448 : vector<8x64xf32>
    %471 = arith.mulf %462, %468 : vector<8x64xf32>
    %472 = arith.addf %470, %471 : vector<8x64xf32>
    %473 = math.tanh %472 : vector<8x64xf32>
    %474 = arith.mulf %469, %473 : vector<8x64xf32>
    %c48_211 = arith.constant 48 : index
    %c0_212 = arith.constant 0 : index
    %475 = vector.load %arg13[%c48_211, %c0_212] : memref<64x256xf32, #tpu.memory_space<vmem>>, vector<8x256xf32>
    %c8_213 = arith.constant 8 : index
    %c0_214 = arith.constant 0 : index
    %476 = vector.load %arg13[%c8_213, %c0_214] : memref<64x256xf32, #tpu.memory_space<vmem>>, vector<8x256xf32>
    %477 = arith.select %84, %475, %476 : vector<8x256xi1>, vector<8x256xf32>
    %478 = arith.truncf %474 : vector<8x64xf32> to vector<8x64xbf16>
    %cst_215 = arith.constant dense<0.000000e+00> : vector<8x256xf32>
    %479 = tpu.matmul %478, %328, %cst_215 {dimension_numbers = #tpu.dot_dimension_numbers<[1], [0], [0], [1], [0, 0, 1, 1], [], []>} : vector<8x64xbf16>, vector<64x256xbf16>, vector<8x256xf32> -> vector<8x256xf32>
    %480 = arith.addf %477, %479 : vector<8x256xf32>
    %481 = arith.negf %480 : vector<8x256xf32>
    %482 = math.exp %481 : vector<8x256xf32>
    %cst_216 = arith.constant 1.000000e+00 : f32
    %483 = vector.broadcast %cst_216 : f32 to vector<8x256xf32>
    %484 = arith.addf %483, %482 : vector<8x256xf32>
    %485 = arith.divf %483, %484 : vector<8x256xf32>
    %486 = vector.extract_strided_slice %485 {offsets = [0, 0], sizes = [8, 64], strides = [1, 1]} : vector<8x256xf32> to vector<8x64xf32>
    %487 = vector.extract_strided_slice %485 {offsets = [0, 64], sizes = [8, 64], strides = [1, 1]} : vector<8x256xf32> to vector<8x64xf32>
    %488 = vector.extract_strided_slice %485 {offsets = [0, 128], sizes = [8, 64], strides = [1, 1]} : vector<8x256xf32> to vector<8x64xf32>
    %cst_217 = arith.constant 2.000000e+00 : f32
    %489 = vector.broadcast %cst_217 : f32 to vector<8x64xf32>
    %490 = arith.mulf %489, %488 : vector<8x64xf32>
    %cst_218 = arith.constant 1.000000e+00 : f32
    %491 = vector.broadcast %cst_218 : f32 to vector<8x64xf32>
    %492 = arith.subf %490, %491 : vector<8x64xf32>
    %493 = vector.extract_strided_slice %485 {offsets = [0, 192], sizes = [8, 64], strides = [1, 1]} : vector<8x256xf32> to vector<8x64xf32>
    %494 = arith.mulf %487, %472 : vector<8x64xf32>
    %495 = arith.mulf %486, %492 : vector<8x64xf32>
    %496 = arith.addf %494, %495 : vector<8x64xf32>
    %497 = math.tanh %496 : vector<8x64xf32>
    %498 = arith.mulf %493, %497 : vector<8x64xf32>
    %c56_219 = arith.constant 56 : index
    %c0_220 = arith.constant 0 : index
    %499 = vector.load %arg13[%c56_219, %c0_220] : memref<64x256xf32, #tpu.memory_space<vmem>>, vector<8x256xf32>
    %c0_221 = arith.constant 0 : index
    %c0_222 = arith.constant 0 : index
    %500 = vector.load %arg13[%c0_221, %c0_222] : memref<64x256xf32, #tpu.memory_space<vmem>>, vector<8x256xf32>
    %501 = arith.select %84, %499, %500 : vector<8x256xi1>, vector<8x256xf32>
    %502 = arith.truncf %498 : vector<8x64xf32> to vector<8x64xbf16>
    %cst_223 = arith.constant dense<0.000000e+00> : vector<8x256xf32>
    %503 = tpu.matmul %502, %328, %cst_223 {dimension_numbers = #tpu.dot_dimension_numbers<[1], [0], [0], [1], [0, 0, 1, 1], [], []>} : vector<8x64xbf16>, vector<64x256xbf16>, vector<8x256xf32> -> vector<8x256xf32>
    %504 = arith.addf %501, %503 : vector<8x256xf32>
    %505 = arith.negf %504 : vector<8x256xf32>
    %506 = math.exp %505 : vector<8x256xf32>
    %cst_224 = arith.constant 1.000000e+00 : f32
    %507 = vector.broadcast %cst_224 : f32 to vector<8x256xf32>
    %508 = arith.addf %507, %506 : vector<8x256xf32>
    %509 = arith.divf %507, %508 : vector<8x256xf32>
    %510 = vector.extract_strided_slice %509 {offsets = [0, 0], sizes = [8, 64], strides = [1, 1]} : vector<8x256xf32> to vector<8x64xf32>
    %511 = vector.extract_strided_slice %509 {offsets = [0, 64], sizes = [8, 64], strides = [1, 1]} : vector<8x256xf32> to vector<8x64xf32>
    %512 = vector.extract_strided_slice %509 {offsets = [0, 128], sizes = [8, 64], strides = [1, 1]} : vector<8x256xf32> to vector<8x64xf32>
    %cst_225 = arith.constant 2.000000e+00 : f32
    %513 = vector.broadcast %cst_225 : f32 to vector<8x64xf32>
    %514 = arith.mulf %513, %512 : vector<8x64xf32>
    %cst_226 = arith.constant 1.000000e+00 : f32
    %515 = vector.broadcast %cst_226 : f32 to vector<8x64xf32>
    %516 = arith.subf %514, %515 : vector<8x64xf32>
    %517 = vector.extract_strided_slice %509 {offsets = [0, 192], sizes = [8, 64], strides = [1, 1]} : vector<8x256xf32> to vector<8x64xf32>
    %518 = arith.mulf %511, %496 : vector<8x64xf32>
    %519 = arith.mulf %510, %516 : vector<8x64xf32>
    %520 = arith.addf %518, %519 : vector<8x64xf32>
    %521 = math.tanh %520 : vector<8x64xf32>
    %522 = arith.mulf %517, %521 : vector<8x64xf32>
    %c0_227 = arith.constant 0 : index
    %c0_228 = arith.constant 0 : index
    %523 = vector.load %arg9[%c0_227, %c0_228] : memref<128x2xbf16, #tpu.memory_space<vmem>>, vector<128x2xbf16>
    %524 = arith.truncf %354 : vector<8x64xf32> to vector<8x64xbf16>
    %525 = vector.extract_strided_slice %523 {offsets = [0, 0], sizes = [64, 2], strides = [1, 1]} : vector<128x2xbf16> to vector<64x2xbf16>
    %cst_229 = arith.constant dense<0.000000e+00> : vector<8x2xf32>
    %526 = tpu.matmul %524, %525, %cst_229 {dimension_numbers = #tpu.dot_dimension_numbers<[1], [0], [0], [1], [0, 0, 1, 1], [], []>} : vector<8x64xbf16>, vector<64x2xbf16>, vector<8x2xf32> -> vector<8x2xf32>
    %527 = arith.truncf %522 : vector<8x64xf32> to vector<8x64xbf16>
    %528 = vector.extract_strided_slice %523 {offsets = [64, 0], sizes = [64, 2], strides = [1, 1]} : vector<128x2xbf16> to vector<64x2xbf16>
    %cst_230 = arith.constant dense<0.000000e+00> : vector<8x2xf32>
    %529 = tpu.matmul %527, %528, %cst_230 {dimension_numbers = #tpu.dot_dimension_numbers<[1], [0], [0], [1], [0, 0, 1, 1], [], []>} : vector<8x64xbf16>, vector<64x2xbf16>, vector<8x2xf32> -> vector<8x2xf32>
    %530 = arith.addf %526, %529 : vector<8x2xf32>
    %c0_231 = arith.constant 0 : index
    %c0_232 = arith.constant 0 : index
    %531 = vector.load %arg10[%c0_231, %c0_232] : memref<1x2xf32, #tpu.memory_space<vmem>>, vector<1x2xf32>
    %532 = vector.broadcast %531 : vector<1x2xf32> to vector<8x2xf32>
    %533 = arith.addf %530, %532 : vector<8x2xf32>
    %534 = vector.extract_strided_slice %533 {offsets = [0, 0], sizes = [2, 2], strides = [1, 1]} : vector<8x2xf32> to vector<2x2xf32>
    %c0_233 = arith.constant 0 : index
    %c0_234 = arith.constant 0 : index
    %535 = vector.load %arg11[%c0_233, %c0_234] : memref<2x2xf32, #tpu.memory_space<vmem>>, vector<2x2xf32>
    tpu.vector_store %arg11[%c0_233, %c0_234], %534 {strides = array<i32>} : memref<2x2xf32, #tpu.memory_space<vmem>>, vector<2x2xf32>,
    return
  }
  func.func @transform_0(%arg0: i32, %arg1: memref<16xi32, #tpu.memory_space<smem>>) -> (i32, i32) {
    %c0_i32 = arith.constant 0 : i32
    %c0_i32_0 = arith.constant 0 : i32
    %c0_i32_1 = arith.constant 0 : i32
    return %c0_i32, %c0_i32_0 : i32, i32
  }
  func.func @transform_1(%arg0: i32, %arg1: memref<16xi32, #tpu.memory_space<smem>>) -> (i32, i32) {
    %c0_i32 = arith.constant 0 : i32
    %c0_i32_0 = arith.constant 0 : i32
    %c0_i32_1 = arith.constant 0 : i32
    return %c0_i32, %c0_i32_0 : i32, i32
  }
  func.func @transform_2(%arg0: i32, %arg1: memref<16xi32, #tpu.memory_space<smem>>) -> (i32, i32) {
    %c0_i32 = arith.constant 0 : i32
    %c0_i32_0 = arith.constant 0 : i32
    %c0_i32_1 = arith.constant 0 : i32
    return %c0_i32, %c0_i32_0 : i32, i32
  }
  func.func @transform_3(%arg0: i32, %arg1: memref<16xi32, #tpu.memory_space<smem>>) -> (i32, i32) {
    %c0_i32 = arith.constant 0 : i32
    %c0_i32_0 = arith.constant 0 : i32
    %c0_i32_1 = arith.constant 0 : i32
    return %c0_i32, %c0_i32_0 : i32, i32
  }
  func.func @transform_4(%arg0: i32, %arg1: memref<16xi32, #tpu.memory_space<smem>>) -> (i32, i32) {
    %c0_i32 = arith.constant 0 : i32
    %c0_i32_0 = arith.constant 0 : i32
    %c0_i32_1 = arith.constant 0 : i32
    return %c0_i32, %c0_i32_0 : i32, i32
  }
  func.func @transform_5(%arg0: i32, %arg1: memref<16xi32, #tpu.memory_space<smem>>) -> (i32, i32) {
    %c0_i32 = arith.constant 0 : i32
    %c0_i32_0 = arith.constant 0 : i32
    %c0_i32_1 = arith.constant 0 : i32
    return %c0_i32, %c0_i32_0 : i32, i32
  }
  func.func @transform_6(%arg0: i32, %arg1: memref<16xi32, #tpu.memory_space<smem>>) -> (i32, i32) {
    %c0_i32 = arith.constant 0 : i32
    %c0_i32_0 = arith.constant 0 : i32
    %c0_i32_1 = arith.constant 0 : i32
    return %c0_i32, %c0_i32_0 : i32, i32
  }
  func.func @transform_7(%arg0: i32, %arg1: memref<16xi32, #tpu.memory_space<smem>>) -> (i32, i32) {
    %c0_i32 = arith.constant 0 : i32
    %c0_i32_0 = arith.constant 0 : i32
    %c0_i32_1 = arith.constant 0 : i32
    return %c0_i32, %c0_i32_0 : i32, i32
  }
  func.func @transform_8(%arg0: i32, %arg1: memref<16xi32, #tpu.memory_space<smem>>) -> (i32, i32) {
    %c0_i32 = arith.constant 0 : i32
    %c0_i32_0 = arith.constant 0 : i32
    %c0_i32_1 = arith.constant 0 : i32
    return %c0_i32, %c0_i32_0 : i32, i32
  }
  func.func @transform_9(%arg0: i32, %arg1: memref<16xi32, #tpu.memory_space<smem>>) -> (i32, i32) {
    %c0_i32 = arith.constant 0 : i32
    %c0_i32_0 = arith.constant 0 : i32
    %c0_i32_1 = arith.constant 0 : i32
    return %c0_i32, %c0_i32_0 : i32, i32
  }
}

</mosaic_0001>

<bundles_post_ra>
// kernel: sentiment_forward.1
= control target key start
LH: loop header
LB: loop body
LE: loop exit
PB: predicated region body
PF: predicated region fallthrough
CT: control target
= control target key end

     0   :  { %s3435_s0 = inlined_call_operand.vmem [shape: s32[16], index: 0, kind: input, shape index: {}]   ;;  %s3436_s1 = inlined_call_operand.vmem [shape: f32[50,32], index: 1, kind: input, shape index: {}]   ;;  %s3437_s2 = inlined_call_operand.vmem [shape: bf16[32,256], index: 2, kind: input, shape index: {}]   ;;  %s3438_s3 = inlined_call_operand.vmem [shape: bf16[64,256], index: 3, kind: input, shape index: {}]   ;;  %s3439_s4 = inlined_call_operand.vmem [shape: f32[1,256], index: 4, kind: input, shape index: {}]   ;;  %s3440_s5 = inlined_call_operand.vmem [shape: bf16[64,256], index: 5, kind: input, shape index: {}]   ;;  %s3441_s6 = inlined_call_operand.hbm [shape: bf16[64,256], index: 6, kind: input, shape index: {}]   ;;  %s3442_s7 = inlined_call_operand.vmem [shape: f32[1,256], index: 7, kind: input, shape index: {}]   ;;  %s3443_s8 = inlined_call_operand.vmem [shape: bf16[128,2], index: 8, kind: input, shape index: {}]   ;;  %s3444_s9 = inlined_call_operand.hbm [shape: f32[1,2], index: 9, kind: input, shape index: {}]   ;;  %s3445_s10 = inlined_call_operand.hbm [shape: f32[2,2], index: 10, kind: output, shape index: {}]  }
   0x1   :  { %s15_s15 = sshll.u32 %s3435_s0, 4  ;;  %s16_s15 = int_to_ptr.vmem [resolvable:$true] %s15_s15 }
   0x2   :  { %s2446_s16 = scalar_lea.vmem %s16_s15, 16  ;;  %p2451_p1 = scmp.lt.s32.totalorder %s16_s15, %s16_s15 }
   0x3   :  { %p2447_p0 = scmp.ne.s32.totalorder %s16_s15, %s2446_s16  ;;  %p2452_p2 = scmp.lt.s32.totalorder %s2446_s16, %s2446_s16 }
   0x5   :  { %p2453_p3 = por %p2452_p2, %p2451_p1 }
   0x7   :  { %p2454_p4 = pnand %p2453_p3, %p2447_p0 }
   0x9   :  { %2457 = shalt.err (!%p2454_p4)  }
   0xa   :  { %s2526_s17 = smov [#allocation6]  }
   0xb   :  { %18 = dma.vmem_to_smem %s16_s15, 16, %s2526_s17, [#allocation5] }
   0xc   :  { %2518 = dma.done.wait [#allocation5], 16 }
   0xd   :  { %2519 = vsyncadd [#allocation5], 4294967280 }
   0xe   :  { %20 = sfence }
   0xf   :  { %21 = vsyncpa [#allocation8], 0 }
  0x10   :  { %22 = vsyncpa [#allocation11], 0 }
  0x11   :  { %23 = vsyncpa [#allocation9], 0  ;;  %s2527_s18 = smov [#allocation7]  }
  0x12   :  { %s39_s19 = sshll.u32 %s2527_s18, 4  ;;  %s40_s19 = int_to_ptr.vmem [resolvable:$true] %s39_s19 }
  0x13   :  { %s2466_s0 = scalar_lea.vmem %s40_s19, 1024  ;;  %p2471_p6 = scmp.lt.s32.totalorder %s40_s19, %s40_s19 }
  0x14   :  { %p2467_p5 = scmp.ne.s32.totalorder %s40_s19, %s2466_s0  ;;  %p2472_p7 = scmp.lt.s32.totalorder %s2466_s0, %s2466_s0 }
  0x16   :  { %p2473_p8 = por %p2472_p7, %p2471_p6 }
  0x18   :  { %p2474_p9 = pnand %p2473_p8, %p2467_p5 }
  0x1a   :  { %2477 = shalt.err (!%p2474_p9)
}
  0x1b   :  { %s2528_s20 = smov 128   ;;  %s2529_s21 = smov 8  }
  0x1c   :  { %45 = dma.hbm_to_vmem [thread:$0]  %s3441_s6, 1024, %s40_s19, [#allocation8], %s2528_s20, %s2528_s20, %s2529_s21  }
  0x1d   :  { %s2530_s24 = smov [#allocation10]  }
  0x1e   :  { %s56_s25 = sshll.u32 %s2530_s24, 4  ;;  %s57_s25 = int_to_ptr.vmem [resolvable:$true] %s56_s25 }
  0x1f   :  { %s2486_s26 = scalar_lea.vmem %s57_s25, 16  ;;  %s2490_s27 = scalar_lea.vmem %s57_s25, 32 }
  0x20   :  { %p2487_p10 = scmp.ne.s32.totalorder %s57_s25, %s2486_s26  ;;  %p2491_p11 = scmp.lt.s32.totalorder %s57_s25, %s57_s25 }
  0x21   :  { %p2492_p12 = scmp.lt.s32.totalorder %s2490_s27, %s2486_s26 }
  0x23   :  { %p2493_p13 = por %p2492_p12, %p2491_p11 }
  0x25   :  { %p2494_p0 = pnand %p2493_p13, %p2487_p10 }
  0x27   :  { %2497 = shalt.err (!%p2494_p0)
}
  0x28   :  { %59 = dma.hbm_to_vmem [thread:$0]  %s3444_s9, 16, %s57_s25, [#allocation11]  }
  0x29   :  { %2520 = dma.done.wait [#allocation8], 1024  }
  0x2a   :  { %2521 = vsyncadd [#allocation8], 4294966272 }
  0x2b   :  { %2522 = dma.done.wait [#allocation11], 16  }
  0x2c   :  { %2523 = vsyncadd [#allocation11], 4294967280  ;;  %vm67_vm0 = vcmask 261120   ;;  %v2531_v0 = vmov 0   ;;  %v2532_v1 = vmov 0.0   ;;  %s76_s6 = sld [smem:[#allocation6]]  ;;  %v141_v42 = vlaneseq }
  0x2d   :  { %262 = vmatprep.mubr.bf16.mxu0 %v2531_v0  ;;  %68 = vst.msk [vmem:[#allocation2] sm:$0xff] %vm67_vm0, %v2532_v1  ;;  %69 = vst.msk [vmem:[#allocation2 + $0x8] sm:$0xff] %vm67_vm0, %v2532_v1  ;;  %409 = vmatprep.mubr.bf16.mxu1 %v2531_v0  ;;  %s2068_s9 = sld [smem:[#allocation6 + $0x8]]  ;;  %vm79_vm1 = vcmask 253952   ;;  %v2236_v2 = vld [vmem:[%s3437_s2 + $0x14] ss:$8 sps:$4 sm:$0xff]  }
  0x2e   :  { %70 = vst.msk [vmem:[#allocation2 + $0x10] sm:$0xff] %vm67_vm0, %v2532_v1  ;;  %71 = vst.msk [vmem:[#allocation2 + $0x18] sm:$0xff] %vm67_vm0, %v2532_v1  ;;  %s2069_s30 = sld [smem:[#allocation6 + $0x1]]  ;;  %v2238_v3 = vld [vmem:[%s3437_s2 + $0x10] ss:$8 sps:$4 sm:$0xff]   ;;  %242 = vmatprep.subr.bf16.mxu0 %v2236_v2  ;;  %v2791_v43 = vshrl.u32 %v141_v42, 7 }
  0x2f   :  { %72 = vst.msk [vmem:[#allocation2 + $0x20] sm:$0xff] %vm67_vm0, %v2532_v1  ;;  %73 = vst.msk [vmem:[#allocation2 + $0x28] sm:$0xff] %vm67_vm0, %v2532_v1  ;;  %s2070_s11 = sld [smem:[#allocation6 + $0x9]]  ;;  %v2239_v4 = vld [vmem:[%s3437_s2 + $0x4] ss:$8 sps:$4 sm:$0xff]   ;;  %243 = vmatpush1.bf16.msra.mxu0 %v2238_v3  ;;  %v142_v53 = vand.u32 127, %v141_v42 }
  0x30   :  { %74 = vst.msk [vmem:[#allocation2 + $0x30] sm:$0xff] %vm67_vm0, %v2532_v1  ;;  %75 = vst.msk [vmem:[#allocation2 + $0x38] sm:$0xff] %vm67_vm0, %v2532_v1  ;;  %s2071_s12 = sld [smem:[#allocation6 + $0x2]]  ;;  %v2241_v5 = vld [vmem:[%s3437_s2] ss:$8 sps:$4 sm:$0xff]   ;;  %244 = vmatprep.subr.bf16.mxu0 %v2239_v4  ;;  %v190_v44 = vsub.s32 0, %v2791_v43 }
  0x31   :  { %s2072_s13 = sld [smem:[#allocation6 + $0xa]]  ;;  %v2655_v10 = vld [vmem:[%s3438_s3 + $0x34] ss:$8 sps:$4 sm:$0xff]   ;;  %v2664_v12 = vld [vmem:[%s3438_s3 + $0x30] ss:$8 sps:$4 sm:$0xff]   ;;  %v194_v47 = vsub.s32 1, %v2791_v43 }
  0x32   :  { %s77_s18 = scalar_lea.vmem %s3436_s1, %s76_s6  ;;  %s2624_s19 = sld [smem:[#allocation6 + $0x3]]  ;;  %385 = vmatprep.subr.bf16.mxu1 %v2655_v10  ;;  %v2675_v14 = vld [vmem:[%s3438_s3 + $0x24] ss:$8 sps:$4 sm:$0xff]   ;;  %v2686_v16 = vld [vmem:[%s3438_s3 + $0x20] ss:$8 sps:$4 sm:$0xff]   ;;  %v143_v60 = vadd.s32 128, %v142_v53 }
  0x33   :  { %s82_s23 = scalar_lea.vmem %s3436_s1, %s2068_s9  ;;  %s2632_s24 = sld [smem:[#allocation6 + $0xb]]  ;;  %v78_v6 = vld [vmem:[%s77_s18] sm:$0x1]  ;;  %245 = vmatpush1.bf16.msra.mxu0 %v2241_v5  ;;  %386 = vmatpush1.bf16.msra.mxu1 %v2664_v12  ;;  %v2695_v18 = vld [vmem:[%s3438_s3 + $0x14] ss:$8 sps:$4 sm:$0xff]   ;;  %v148_v2 = vand.u32 63, %v142_v53 }
  0x34   :  { %s86_s14 = scalar_lea.vmem %s3436_s1, %s2069_s30  ;;  %80 = vst.msk [vmem:[#allocation2] sm:$0x1] %vm79_vm1, %v78_v6  ;;  %v83_v7 = vld [vmem:[%s82_s23] sm:$0x1]  ;;  %387 = vmatprep.subr.bf16.mxu1 %v2675_v14  ;;  %s2076_s15 = sld [smem:[#allocation6 + $0xc]]  ;;  %556 = vmatprep.subr.bf16.mxu0 %v2655_v10  ;;  %v155_v6 = vand.u32 63, %v143_v60 }
  0x35   :  { %v87_v8 = vld [vmem:[%s86_s14] sm:$0x1]  ;;  %s90_s16 = scalar_lea.vmem %s3436_s1, %s2070_s11  ;;  %84 = vst.msk [vmem:[#allocation2 + $0x1] sm:$0x1] %vm79_vm1, %v83_v7  ;;  %s2697_s17 = sld [smem:[#allocation6 + $0xd]]  ;;  %vm2814_vm2 = vcmp.lt.s32.totalorder %v148_v2, 32 }
  0x36   :  { %88 = vst.msk [vmem:[#allocation2 + $0x8] sm:$0x1] %vm79_vm1, %v87_v8  ;;  %v91_v9 = vld [vmem:[%s90_s16] sm:$0x1]  ;;  %s94_s30 = scalar_lea.vmem %s3436_s1, %s2071_s12  ;;  %s2077_s16 = sld [smem:[#allocation6 + $0x5]]  ;;  %vm2820_vm3 = vcmp.lt.s32.totalorder %v155_v6, 32 }
  0x37   :  { %92 = vst.msk [vmem:[#allocation2 + $0x9] sm:$0x1] %vm79_vm1, %v91_v9  ;;  %v95_v11 = vld [vmem:[%s94_s30] sm:$0x1]  ;;  %s98_s21 = scalar_lea.vmem %s3436_s1, %s2072_s13  ;;  %388 = vmatpush1.bf16.msra.mxu1 %v2686_v16  ;;  %v2703_v20 = vld [vmem:[%s3438_s3 + $0x10] ss:$8 sps:$4 sm:$0xff]  }
  0x38   :  { %96 = vst.msk [vmem:[#allocation2 + $0x10] sm:$0x1] %vm79_vm1, %v95_v11  ;;  %v99_v13 = vld [vmem:[%s98_s21] sm:$0x1]  ;;  %s102_s26 = scalar_lea.vmem %s3436_s1, %s2624_s19  ;;  %s2075_s19 = sld [smem:[#allocation6 + $0x4]]  ;;  %389 = vmatprep.subr.bf16.mxu1 %v2695_v18  ;;  %vm373_vm4 = vcmask 523264  }
  0x39   :  { %100 = vst.msk [vmem:[#allocation2 + $0x11] sm:$0x1] %vm79_vm1, %v99_v13  ;;  %v103_v15 = vld [vmem:[%s102_s26] sm:$0x1]  ;;  %s106_s6 = scalar_lea.vmem %s3436_s1, %s2632_s24  ;;  %s2705_s0 = sld [smem:[#allocation6 + $0x6]]  ;;  %vm448_vm5 = vcmask 523520  }
  0x3a   :  { %104 = vst.msk [vmem:[#allocation2 + $0x18] sm:$0x1] %vm79_vm1, %v103_v15  ;;  %v107_v17 = vld [vmem:[%s106_s6] sm:$0x1]  ;;  %v2711_v22 = vld [vmem:[%s3438_s3 + $0x4] ss:$8 sps:$4 sm:$0xff]   ;;  %s114_s29 = scalar_lea.vmem %s3436_s1, %s2076_s15 }
  0x3b   :  { %108 = vst.msk [vmem:[#allocation2 + $0x19] sm:$0x1] %vm79_vm1, %v107_v17  ;;  %s2713_s21 = sld [smem:[#allocation6 + $0xe]]  ;;  %v2721_v24 = vld [vmem:[%s3438_s3] ss:$8 sps:$4 sm:$0xff]   ;;  %390 = vmatpush1.bf16.msra.mxu1 %v2703_v20  ;;  %s122_s24 = scalar_lea.vmem %s3436_s1, %s2697_s17  ;;  %vm2534_vm6 = vmmov 0  }
  0x3c   :  { %v170_v19 = vld [vmem:[#allocation2] sm:$0xff]  ;;  %s2723_s27 = sld [smem:[#allocation6 + $0x7]]  ;;  %s118_s9 = scalar_lea.vmem %s3436_s1, %s2077_s16  ;;  %391 = vmatprep.subr.bf16.mxu1 %v2711_v22  ;;  %vm2034_vm7 = vcmask 9216  }
  0x3d   :  { %s2728_s6 = sld [smem:[#allocation6 + $0xf]]  ;;  %v115_v27 = vld [vmem:[%s114_s29] sm:$0x1]  ;;  %s2535_s14 = smov [#allocation12]  }
  0x3e   :  { %v171_v21 = vld [vmem:[#allocation2 + $0x8] sm:$0xff]  ;;  %s110_s12 = scalar_lea.vmem %s3436_s1, %s2075_s19  ;;  %116 = vst.msk [vmem:[#allocation2 + $0x21] sm:$0x1] %vm79_vm1, %v115_v27  ;;  %v119_v29 = vld [vmem:[%s118_s9] sm:$0x1]  ;;  %s2042_s3 = sshll.u32 %s2535_s14, 4  ;;  %s2043_s3 = int_to_ptr.vmem [resolvable:$true] %s2042_s3 }
  0x3f   :  { %v178_v23 = vpack.c.bf16 %v171_v21, %v170_v19  ;;  %v111_v26 = vld [vmem:[%s110_s12] sm:$0x1]  ;;  %120 = vst.msk [vmem:[#allocation2 + $0x28] sm:$0x1] %vm79_vm1, %v119_v29  ;;  %s126_s30 = scalar_lea.vmem %s3436_s1, %s2705_s0  ;;  %392 = vmatpush1.bf16.msra.mxu1 %v2721_v24  ;;  %p2503_p2 = scmp.lt.s32.totalorder %s2043_s3, %s2043_s3 }
  0x40   :  { %v172_v25 = vld [vmem:[#allocation2 + $0x10] sm:$0xff]  ;;  %112 = vst.msk [vmem:[#allocation2 + $0x20] sm:$0x1] %vm79_vm1, %v111_v26  ;;  %v123_v30 = vld [vmem:[%s122_s24] sm:$0x1]  ;;  %471 = vmatprep.subr.bf16.mxu1 %v2655_v10 }
  0x41   :  { %2087 = vmatmul.mubr.msk.bf16.vlgmr.msra.gmra.mxu0 %vm67_vm0, %v178_v23  ;;  %124 = vst.msk [vmem:[#allocation2 + $0x29] sm:$0x1] %vm79_vm1, %v123_v30  ;;  %v127_v31 = vld [vmem:[%s126_s30] sm:$0x1]  ;;  %s130_s20 = scalar_lea.vmem %s3436_s1, %s2713_s21 }
  0x42   :  { %272 = vmatprep.mubr.bf16.mxu0 %v2531_v0  ;;  %v173_v28 = vld [vmem:[#allocation2 + $0x18] sm:$0xff]  ;;  %557 = vmatpush1.bf16.msra.mxu0 %v2664_v12  ;;  %128 = vst.msk [vmem:[#allocation2 + $0x30] sm:$0x1] %vm79_vm1, %v127_v31  ;;  %v131_v33 = vld [vmem:[%s130_s20] sm:$0x1]  ;;  %s134_s0 = scalar_lea.vmem %s3436_s1, %s2723_s27 }
  0x43   :  { %558 = vmatprep.subr.bf16.mxu0 %v2675_v14  ;;  %v179_v32 = vpack.c.bf16 %v173_v28, %v172_v25  ;;  %132 = vst.msk [vmem:[#allocation2 + $0x31] sm:$0x1] %vm79_vm1, %v131_v33  ;;  %v135_v34 = vld [vmem:[%s134_s0] sm:$0x1]  ;;  %s138_s25 = scalar_lea.vmem %s3436_s1, %s2728_s6  ;;  %410 = vmatmul.mubr.bf16.vlgmr.msra.gmra.mxu1 %v2531_v0 }
  0x44   :  { %136 = vst.msk [vmem:[#allocation2 + $0x38] sm:$0x1] %vm79_vm1, %v135_v34  ;;  %v139_v35 = vld [vmem:[%s138_s25] sm:$0x1]  ;;  %472 = vmatpush1.bf16.msra.mxu1 %v2664_v12  ;;  %495 = vmatprep.mubr.bf16.mxu1 %v2531_v0 }
  0x45   :  { %140 = vst.msk [vmem:[#allocation2 + $0x39] sm:$0x1] %vm79_vm1, %v139_v35  ;;  %473 = vmatprep.subr.bf16.mxu1 %v2675_v14  ;;  %v186_v45 = vld [vmem:[%s3439_s4] sm:$0x3]  ;;  %s2533_s4 = smov 64  }
  0x46   :  { %559 = vmatpush1.bf16.msra.mxu0 %v2686_v16  ;;  %v191_v49 = vrot.slane %v186_v45, %v190_v44  ;;  %v195_v51 = vrot.slane %v186_v45, %v194_v47 }
  0x47   :  { %560 = vmatprep.subr.bf16.mxu0 %v2695_v18  ;;  %v174_v36 = vld [vmem:[#allocation2 + $0x20] sm:$0xff] }
  0x48   :  { %v175_v37 = vld [vmem:[#allocation2 + $0x28] sm:$0xff]  ;;  %474 = vmatpush1.bf16.msra.mxu1 %v2686_v16 }
  0x49   :  { %2088 = vmatmul.mubr.msk.bf16.gmra.mxu0 %vm67_vm0, %v179_v32  ;;  %v180_v38 = vpack.c.bf16 %v175_v37, %v174_v36  ;;  %475 = vmatprep.subr.bf16.mxu1 %v2695_v18 }
  0x4a   :  { %282 = vmatprep.mubr.bf16.mxu0 %v2531_v0  ;;  %561 = vmatpush1.bf16.msra.mxu0 %v2703_v20  ;;  %v176_v39 = vld [vmem:[#allocation2 + $0x30] sm:$0xff] }
  0x4b   :  { %562 = vmatprep.subr.bf16.mxu0 %v2711_v22 }
  0x4c   :  { %476 = vmatpush1.bf16.msra.mxu1 %v2703_v20  ;;  %v177_v40 = vld [vmem:[#allocation2 + $0x38] sm:$0xff] }
  0x4d   :  { %477 = vmatprep.subr.bf16.mxu1 %v2711_v22  ;;  %v181_v41 = vpack.c.bf16 %v177_v40, %v176_v39 }
  0x4e   :  { %563 = vmatpush1.bf16.msra.mxu0 %v2721_v24 }
  0x4f   :  { %726 = vmatprep.subr.bf16.mxu0 %v2655_v10 }
  0x50   :  { %478 = vmatpush1.bf16.msra.mxu1 %v2721_v24 }
  0x51   :  { %2089 = vmatmul.mubr.msk.bf16.gmra.mxu0 %vm67_vm0, %v180_v38  ;;  %641 = vmatprep.subr.bf16.mxu1 %v2655_v10 }
  0x52   :  { %292 = vmatprep.mubr.bf16.mxu0 %v2531_v0 }
  0x59   :  { %2090 = vmatmul.mubr.msk.bf16.gmra.mxu0 %vm67_vm0, %v181_v41 }
  0x5a   :  { %580 = vmatprep.mubr.bf16.mxu0 %v2531_v0 }
 0x101   :  { %v264_v46 = vpop.f32.mrf.mxu0 }
 0x102   :  { %v2874_v42 = vadd.f32 %v264_v46, %v191_v49 }
 0x103   :  { %v266_v48 = vpop.f32.mrf.mxu0  ;;  %v411_v56 = vpop.f32.mrf.mxu1 }
 0x105   :  { %v268_v50 = vpop.f32.mrf.mxu0  ;;  %v413_v59 = vpop.f32.mrf.mxu1 }
 0x106   :  { %v2802_v52 = vadd.f32 %v268_v50, %v191_v49 }
 0x107   :  { %v270_v54 = vpop.f32.mrf.mxu0  ;;  %v415_v63 = vpop.f32.mrf.mxu1 }
 0x108   :  { %v2804_v55 = vadd.f32 %v270_v54, %v195_v51 }
 0x109   :  { %v274_v57 = vpop.f32.mrf.mxu0  ;;  %v416_v5 = vpop.f32.mrf.mxu1 }
 0x10a   :  { %v2806_v58 = vadd.f32 %v274_v57, %v191_v49  ;;  %v2886_v57 = vadd.f32 %v266_v48, %v195_v51 }
 0x10b   :  { %v276_v61 = vpop.f32.mrf.mxu0 }
 0x10c   :  { %v2808_v62 = vadd.f32 %v276_v61, %v195_v51 }
 0x10d   :  { %v278_v3 = vpop.f32.mrf.mxu0 }
 0x10e   :  { %v2810_v4 = vadd.f32 %v278_v3, %v191_v49 }
 0x10f   :  { %v280_v7 = vpop.f32.mrf.mxu0 }
 0x110   :  { %v2812_v8 = vadd.f32 %v280_v7, %v195_v51 }
 0x111   :  { %v284_v11 = vpop.f32.mrf.mxu0 }
 0x112   :  { %v2818_v13 = vadd.f32 %v284_v11, %v191_v49 }
 0x113   :  { %v286_v17 = vpop.f32.mrf.mxu0 }
 0x114   :  { %v2824_v19 = vadd.f32 %v286_v17, %v195_v51  ;;  %v624_v21 = vsel %vm2814_vm2, %v2810_v4, %v2818_v13  ;;  %v709_v23 = vsel %vm2814_vm2, %v2818_v13, %v2810_v4 }
 0x115   :  { %v288_v25 = vpop.f32.mrf.mxu0 }
 0x116   :  { %v2834_v26 = vadd.f32 %v288_v25, %v191_v49  ;;  %v625_v27 = vsel %vm2820_vm3, %v2812_v8, %v2824_v19  ;;  %v710_v28 = vsel %vm2820_vm3, %v2824_v19, %v2812_v8 }
 0x117   :  { %v290_v29 = vpop.f32.mrf.mxu0 }
 0x118   :  { %v2844_v30 = vadd.f32 %v290_v29, %v195_v51  ;;  %v539_v31 = vsel %vm2814_vm2, %v2806_v58, %v2834_v26  ;;  %v794_v32 = vsel %vm2814_vm2, %v2834_v26, %v2806_v58 }
 0x119   :  { %v294_v33 = vpop.f32.mrf.mxu0 }
 0x11a   :  { %v2854_v34 = vadd.f32 %v294_v33, %v191_v49  ;;  %v540_v35 = vsel %vm2820_vm3, %v2808_v62, %v2844_v30  ;;  %v795_v36 = vsel %vm2820_vm3, %v2844_v30, %v2808_v62 }
 0x11b   :  { %v296_v37 = vpop.f32.mrf.mxu0 }
 0x11c   :  { %v2864_v38 = vadd.f32 %v296_v37, %v195_v51  ;;  %v454_v39 = vsel %vm2814_vm2, %v2802_v52, %v2854_v34  ;;  %v879_v40 = vsel %vm2814_vm2, %v2854_v34, %v2802_v52 }
 0x11d   :  { %v298_v41 = vpop.f32.mrf.mxu0 }
 0x11e   :  { %v2876_v45 = vadd.f32 %v298_v41, %v191_v49  ;;  %v455_v50 = vsel %vm2820_vm3, %v2804_v55, %v2864_v38  ;;  %v880_v53 = vsel %vm2820_vm3, %v2864_v38, %v2804_v55 }
 0x11f   :  { %v300_v54 = vpop.f32.mrf.mxu0 }
 0x120   :  { %v331_v46 = vsel %vm2814_vm2, %v2874_v42, %v2876_v45  ;;  %v2892_v49 = vadd.f32 %v300_v54, %v195_v51  ;;  %v964_v60 = vsel %vm2814_vm2, %v2876_v45, %v2874_v42 }
 0x121   :  { %v418_v61 = vadd.f32 %v411_v56, %v331_v46 }
 0x122   :  { %v332_v63 = vsel %vm2820_vm3, %v2886_v57, %v2892_v49  ;;  %v965_v48 = vsel %vm2820_vm3, %v2892_v49, %v2886_v57  ;;  %v2254_v57 = vld [vmem:[%s3440_s5 + $0x30] ss:$8 sps:$4 sm:$0xff]   ;;  %v2256_v49 = vld [vmem:[%s3440_s5 + $0x34] ss:$8 sps:$4 sm:$0xff]  }
 0x123   :  { %v2099_v2 = vmul.f32 -1.442695, %v418_v61  ;;  %v419_v3 = vadd.f32 %v413_v59, %v332_v63 }
 0x125   :  { %v2100_v51 = vmul.f32 -1.442695, %v419_v3  ;;  %2286 = vpow2.f32 %v2099_v2 }
 0x127   :  { %2288 = vpow2.f32 %v2100_v51 }
 0x132   :  { %v2287_v5 = vpop.eup %2286 }
 0x133   :  { %v426_v11 = vadd.f32 1.0, %v2287_v5 }
 0x134   :  { %v2289_v6 = vpop.eup %2288 }
 0x135   :  { %v427_v7 = vadd.f32 1.0, %v2289_v6 }
 0x137   :  { %2290 = vrcp.f32 %v427_v7 }
 0x138   :  { %2292 = vrcp.f32 %v426_v11 }
 0x144   :  { %v2291_v56 = vpop.eup %2290 }
 0x145   :  { %v432_v17 = vmul.f32 2.0, %v2291_v56  ;;  %v2293_v29 = vpop.eup %2292 }
 0x146   :  { %v434_v37 = vmul.f32 0.0, %v2293_v29 }
 0x147   :  { %v2101_v25 = vadd.f32 -1.0, %v432_v17 }
 0x149   :  { %v435_v33 = vmul.f32 %v2293_v29, %v2101_v25 }
 0x14b   :  { %437 = vrot.lane.b32.xlu0 %v435_v33, %s2533_s4 }
 0x1bd   :  { %v438_v41 = vpop.permute.xlu0 %437 }
 0x1be   :  { %v440_v59 = vadd.f32 %v438_v41, %v434_v37 }
 0x1c0   :  { %2294 = vtanh.f32 %v440_v59 }
 0x1cd   :  { %v2295_v54 = vpop.eup %2294 }
 0x1ce   :  { %v2907_v46 = vmul.f32 %v2295_v54, %v2291_v56 }
 0x1d0   :  { %v456_v61 = vpack.c.bf16 %v2907_v46, %v2907_v46 }
 0x1d2   :  { %458 = vrot.lane.b32.xlu0 %v456_v61, %s2533_s4 }
 0x244   :  { %v459_v63 = vpop.permute.xlu0 %458 }
 0x245   :  { %2102 = vmatmul.mubr.msk.bf16.vlgmr.msra.gmra.mxu1 %vm373_vm4, %v459_v63 }
 0x246   :  { %642 = vmatpush1.bf16.msra.mxu1 %v2664_v12  ;;  %665 = vmatprep.mubr.bf16.mxu1 %v2531_v0 }
 0x247   :  { %643 = vmatprep.subr.bf16.mxu1 %v2675_v14 }
 0x24a   :  { %644 = vmatpush1.bf16.msra.mxu1 %v2686_v16 }
 0x24b   :  { %645 = vmatprep.subr.bf16.mxu1 %v2695_v18 }
 0x24e   :  { %646 = vmatpush1.bf16.msra.mxu1 %v2703_v20 }
 0x24f   :  { %647 = vmatprep.subr.bf16.mxu1 %v2711_v22 }
 0x252   :  { %648 = vmatpush1.bf16.msra.mxu1 %v2721_v24 }
 0x253   :  { %811 = vmatprep.subr.bf16.mxu1 %v2655_v10 }
 0x305   :  { %v497_v2 = vpop.f32.mrf.mxu1 }
 0x306   :  { %v504_v3 = vadd.f32 %v497_v2, %v454_v39 }
 0x307   :  { %v499_v51 = vpop.f32.mrf.mxu1 }
 0x308   :  { %v2103_v5 = vmul.f32 -1.442695, %v504_v3  ;;  %v505_v6 = vadd.f32 %v499_v51, %v455_v50 }
 0x309   :  { %v501_v7 = vpop.f32.mrf.mxu1 }
 0x30a   :  { %v2104_v11 = vmul.f32 -1.442695, %v505_v6  ;;  %2296 = vpow2.f32 %v2103_v5 }
 0x30b   :  { %v502_v56 = vpop.f32.mrf.mxu1 }
 0x30c   :  { %2298 = vpow2.f32 %v2104_v11 }
 0x317   :  { %v2297_v17 = vpop.eup %2296 }
 0x318   :  { %v512_v33 = vadd.f32 1.0, %v2297_v17 }
 0x319   :  { %v2299_v25 = vpop.eup %2298 }
 0x31a   :  { %v513_v29 = vadd.f32 1.0, %v2299_v25 }
 0x31c   :  { %2300 = vrcp.f32 %v513_v29 }
 0x31d   :  { %2302 = vrcp.f32 %v512_v33 }
 0x329   :  { %v2301_v37 = vpop.eup %2300 }
 0x32a   :  { %v518_v41 = vmul.f32 2.0, %v2301_v37  ;;  %v2303_v61 = vpop.eup %2302 }
 0x32b   :  { %v520_v39 = vmul.f32 %v2303_v61, %v440_v59 }
 0x32c   :  { %v2105_v54 = vadd.f32 -1.0, %v518_v41 }
 0x32e   :  { %v521_v63 = vmul.f32 %v2303_v61, %v2105_v54 }
 0x330   :  { %523 = vrot.lane.b32.xlu1 %v521_v63, %s2533_s4 }
 0x3a2   :  { %v524_v50 = vpop.permute.xlu1 %523 }
 0x3a3   :  { %v526_v2 = vadd.f32 %v524_v50, %v520_v39 }
 0x3a5   :  { %2304 = vtanh.f32 %v526_v2 }
 0x3b2   :  { %v2305_v3 = vpop.eup %2304 }
 0x3b3   :  { %v2923_v51 = vmul.f32 %v2305_v3, %v2301_v37 }
 0x3b5   :  { %v541_v5 = vpack.c.bf16 %v2923_v51, %v2923_v51 }
 0x3b7   :  { %543 = vrot.lane.b32.xlu1 %v541_v5, %s2533_s4 }
 0x429   :  { %v544_v6 = vpop.permute.xlu1 %543 }
 0x42a   :  { %2106 = vmatmul.mubr.msk.bf16.vlgmr.msra.gmra.mxu0 %vm373_vm4, %v544_v6 }
 0x42b   :  { %727 = vmatpush1.bf16.msra.mxu0 %v2664_v12  ;;  %750 = vmatprep.mubr.bf16.mxu0 %v2531_v0 }
 0x42c   :  { %728 = vmatprep.subr.bf16.mxu0 %v2675_v14 }
 0x42f   :  { %729 = vmatpush1.bf16.msra.mxu0 %v2686_v16 }
 0x430   :  { %730 = vmatprep.subr.bf16.mxu0 %v2695_v18 }
 0x433   :  { %731 = vmatpush1.bf16.msra.mxu0 %v2703_v20 }
 0x434   :  { %732 = vmatprep.subr.bf16.mxu0 %v2711_v22 }
 0x437   :  { %733 = vmatpush1.bf16.msra.mxu0 %v2721_v24 }
 0x438   :  { %896 = vmatprep.subr.bf16.mxu0 %v2655_v10 }
 0x4ea   :  { %v582_v59 = vpop.f32.mrf.mxu0 }
 0x4eb   :  { %v589_v7 = vadd.f32 %v582_v59, %v539_v31 }
 0x4ec   :  { %v584_v11 = vpop.f32.mrf.mxu0 }
 0x4ed   :  { %v2107_v56 = vmul.f32 -1.442695, %v589_v7  ;;  %v590_v17 = vadd.f32 %v584_v11, %v540_v35 }
 0x4ee   :  { %v586_v25 = vpop.f32.mrf.mxu0 }
 0x4ef   :  { %v2108_v29 = vmul.f32 -1.442695, %v590_v17  ;;  %2306 = vpow2.f32 %v2107_v56 }
 0x4f0   :  { %v587_v33 = vpop.f32.mrf.mxu0 }
 0x4f1   :  { %2308 = vpow2.f32 %v2108_v29 }
 0x4fc   :  { %v2307_v37 = vpop.eup %2306 }
 0x4fd   :  { %v597_v61 = vadd.f32 1.0, %v2307_v37 }
 0x4fe   :  { %v2309_v41 = vpop.eup %2308 }
 0x4ff   :  { %v598_v54 = vadd.f32 1.0, %v2309_v41 }
 0x501   :  { %2310 = vrcp.f32 %v598_v54 }
 0x502   :  { %2312 = vrcp.f32 %v597_v61 }
 0x50e   :  { %v2311_v31 = vpop.eup %2310 }
 0x50f   :  { %v603_v63 = vmul.f32 2.0, %v2311_v31  ;;  %v2313_v50 = vpop.eup %2312 }
 0x510   :  { %v605_v5 = vmul.f32 %v2313_v50, %v526_v2 }
 0x511   :  { %v2109_v39 = vadd.f32 -1.0, %v603_v63 }
 0x513   :  { %v606_v3 = vmul.f32 %v2313_v50, %v2109_v39 }
 0x515   :  { %608 = vrot.lane.b32.xlu0 %v606_v3, %s2533_s4 }
 0x587   :  { %v609_v35 = vpop.permute.xlu0 %608 }
 0x588   :  { %v611_v6 = vadd.f32 %v609_v35, %v605_v5 }
 0x58a   :  { %2314 = vtanh.f32 %v611_v6 }
 0x597   :  { %v2315_v59 = vpop.eup %2314 }
 0x598   :  { %v2949_v7 = vmul.f32 %v2315_v59, %v2311_v31 }
 0x59a   :  { %v626_v11 = vpack.c.bf16 %v2949_v7, %v2949_v7 }
 0x59c   :  { %628 = vrot.lane.b32.xlu1 %v626_v11, %s2533_s4 }
 0x60e   :  { %v629_v56 = vpop.permute.xlu1 %628 }
 0x60f   :  { %2110 = vmatmul.mubr.msk.bf16.vlgmr.msra.gmra.mxu1 %vm373_vm4, %v629_v56 }
 0x610   :  { %812 = vmatpush1.bf16.msra.mxu1 %v2664_v12  ;;  %835 = vmatprep.mubr.bf16.mxu1 %v2531_v0 }
 0x611   :  { %813 = vmatprep.subr.bf16.mxu1 %v2675_v14 }
 0x614   :  { %814 = vmatpush1.bf16.msra.mxu1 %v2686_v16 }
 0x615   :  { %815 = vmatprep.subr.bf16.mxu1 %v2695_v18 }
 0x618   :  { %816 = vmatpush1.bf16.msra.mxu1 %v2703_v20 }
 0x619   :  { %817 = vmatprep.subr.bf16.mxu1 %v2711_v22 }
 0x61c   :  { %818 = vmatpush1.bf16.msra.mxu1 %v2721_v24 }
 0x61d   :  { %981 = vmatprep.subr.bf16.mxu1 %v2655_v10 }
 0x6cf   :  { %v667_v2 = vpop.f32.mrf.mxu1 }
 0x6d0   :  { %v674_v17 = vadd.f32 %v667_v2, %v624_v21 }
 0x6d1   :  { %v669_v25 = vpop.f32.mrf.mxu1 }
 0x6d2   :  { %v2111_v29 = vmul.f32 -1.442695, %v674_v17  ;;  %v675_v33 = vadd.f32 %v669_v25, %v625_v27 }
 0x6d3   :  { %v671_v37 = vpop.f32.mrf.mxu1 }
 0x6d4   :  { %v2112_v41 = vmul.f32 -1.442695, %v675_v33  ;;  %2316 = vpow2.f32 %v2111_v29 }
 0x6d5   :  { %v672_v54 = vpop.f32.mrf.mxu1 }
 0x6d6   :  { %2318 = vpow2.f32 %v2112_v41 }
 0x6e1   :  { %v2317_v10 = vpop.eup %2316 }
 0x6e2   :  { %v682_v63 = vadd.f32 1.0, %v2317_v10 }
 0x6e3   :  { %v2319_v61 = vpop.eup %2318 }
 0x6e4   :  { %v683_v31 = vadd.f32 1.0, %v2319_v61 }
 0x6e6   :  { %2320 = vrcp.f32 %v683_v31 }
 0x6e7   :  { %2322 = vrcp.f32 %v682_v63 }
 0x6f3   :  { %v2321_v21 = vpop.eup %2320 }
 0x6f4   :  { %v688_v39 = vmul.f32 2.0, %v2321_v21  ;;  %v2323_v3 = vpop.eup %2322 }
 0x6f5   :  { %v690_v35 = vmul.f32 %v2323_v3, %v611_v6 }
 0x6f6   :  { %v2113_v50 = vadd.f32 -1.0, %v688_v39 }
 0x6f8   :  { %v691_v5 = vmul.f32 %v2323_v3, %v2113_v50 }
 0x6fa   :  { %693 = vrot.lane.b32.xlu0 %v691_v5, %s2533_s4 }
 0x76c   :  { %v694_v27 = vpop.permute.xlu0 %693 }
 0x76d   :  { %v696_v59 = vadd.f32 %v694_v27, %v690_v35 }
 0x76f   :  { %2324 = vtanh.f32 %v696_v59 }
 0x77c   :  { %v2325_v11 = vpop.eup %2324 }
 0x77d   :  { %v2975_v56 = vmul.f32 %v2325_v11, %v2321_v21 }
 0x77f   :  { %v711_v2 = vpack.c.bf16 %v2975_v56, %v2975_v56 }
 0x781   :  { %713 = vrot.lane.b32.xlu1 %v711_v2, %s2533_s4 }
 0x7f3   :  { %v714_v17 = vpop.permute.xlu1 %713 }
 0x7f4   :  { %2114 = vmatmul.mubr.msk.bf16.vlgmr.msra.gmra.mxu0 %vm373_vm4, %v714_v17 }
 0x7f5   :  { %897 = vmatpush1.bf16.msra.mxu0 %v2664_v12  ;;  %920 = vmatprep.mubr.bf16.mxu0 %v2531_v0 }
 0x7f6   :  { %898 = vmatprep.subr.bf16.mxu0 %v2675_v14 }
 0x7f9   :  { %899 = vmatpush1.bf16.msra.mxu0 %v2686_v16 }
 0x7fa   :  { %900 = vmatprep.subr.bf16.mxu0 %v2695_v18 }
 0x7fd   :  { %901 = vmatpush1.bf16.msra.mxu0 %v2703_v20 }
 0x7fe   :  { %902 = vmatprep.subr.bf16.mxu0 %v2711_v22 }
 0x801   :  { %903 = vmatpush1.bf16.msra.mxu0 %v2721_v24 }
 0x802   :  { %1137 = vmatprep.subr.bf16.mxu0 %v2256_v49 }
 0x8b4   :  { %v752_v6 = vpop.f32.mrf.mxu0 }
 0x8b5   :  { %v759_v25 = vadd.f32 %v752_v6, %v709_v23 }
 0x8b6   :  { %v754_v29 = vpop.f32.mrf.mxu0 }
 0x8b7   :  { %v2115_v33 = vmul.f32 -1.442695, %v759_v25  ;;  %v760_v37 = vadd.f32 %v754_v29, %v710_v28 }
 0x8b8   :  { %v756_v41 = vpop.f32.mrf.mxu0 }
 0x8b9   :  { %v2116_v54 = vmul.f32 -1.442695, %v760_v37  ;;  %2326 = vpow2.f32 %v2115_v33 }
 0x8ba   :  { %v757_v10 = vpop.f32.mrf.mxu0 }
 0x8bb   :  { %2328 = vpow2.f32 %v2116_v54 }
 0x8c6   :  { %v2327_v61 = vpop.eup %2326 }
 0x8c7   :  { %v767_v21 = vadd.f32 1.0, %v2327_v61 }
 0x8c8   :  { %v2329_v31 = vpop.eup %2328 }
 0x8c9   :  { %v768_v63 = vadd.f32 1.0, %v2329_v31 }
 0x8cb   :  { %2330 = vrcp.f32 %v768_v63 }
 0x8cc   :  { %2332 = vrcp.f32 %v767_v21 }
 0x8d8   :  { %v2331_v4 = vpop.eup %2330 }
 0x8d9   :  { %v773_v13 = vmul.f32 2.0, %v2331_v4  ;;  %v2333_v39 = vpop.eup %2332 }
 0x8da   :  { %v775_v8 = vmul.f32 %v2333_v39, %v696_v59 }
 0x8db   :  { %v2117_v23 = vadd.f32 -1.0, %v773_v13 }
 0x8dd   :  { %v776_v50 = vmul.f32 %v2333_v39, %v2117_v23 }
 0x8df   :  { %778 = vrot.lane.b32.xlu0 %v776_v50, %s2533_s4 }
 0x951   :  { %v779_v19 = vpop.permute.xlu0 %778 }
 0x952   :  { %v781_v28 = vadd.f32 %v779_v19, %v775_v8 }
 0x954   :  { %2334 = vtanh.f32 %v781_v28 }
 0x961   :  { %v2335_v3 = vpop.eup %2334 }
 0x962   :  { %v3000_v5 = vmul.f32 %v2335_v3, %v2331_v4 }
 0x964   :  { %v796_v35 = vpack.c.bf16 %v3000_v5, %v3000_v5 }
 0x966   :  { %798 = vrot.lane.b32.xlu1 %v796_v35, %s2533_s4 }
 0x9d8   :  { %v799_v27 = vpop.permute.xlu1 %798 }
 0x9d9   :  { %2118 = vmatmul.mubr.msk.bf16.vlgmr.msra.gmra.mxu1 %vm373_vm4, %v799_v27 }
 0x9da   :  { %982 = vmatpush1.bf16.msra.mxu1 %v2664_v12  ;;  %1005 = vmatprep.mubr.bf16.mxu1 %v2531_v0 }
 0x9db   :  { %983 = vmatprep.subr.bf16.mxu1 %v2675_v14 }
 0x9de   :  { %984 = vmatpush1.bf16.msra.mxu1 %v2686_v16 }
 0x9df   :  { %985 = vmatprep.subr.bf16.mxu1 %v2695_v18 }
 0x9e2   :  { %986 = vmatpush1.bf16.msra.mxu1 %v2703_v20 }
 0x9e3   :  { %987 = vmatprep.subr.bf16.mxu1 %v2711_v22 }
 0x9e6   :  { %988 = vmatpush1.bf16.msra.mxu1 %v2721_v24 }
 0xa99   :  { %v837_v59 = vpop.f32.mrf.mxu1 }
 0xa9a   :  { %v844_v12 = vadd.f32 %v837_v59, %v794_v32 }
 0xa9b   :  { %v839_v11 = vpop.f32.mrf.mxu1 }
 0xa9c   :  { %v2119_v2 = vmul.f32 -1.442695, %v844_v12  ;;  %v845_v14 = vadd.f32 %v839_v11, %v795_v36 }
 0xa9d   :  { %v841_v16 = vpop.f32.mrf.mxu1 }
 0xa9e   :  { %v2120_v18 = vmul.f32 -1.442695, %v845_v14  ;;  %2336 = vpow2.f32 %v2119_v2 }
 0xa9f   :  { %v842_v20 = vpop.f32.mrf.mxu1 }
 0xaa0   :  { %2338 = vpow2.f32 %v2120_v18 }
 0xaab   :  { %v2337_v22 = vpop.eup %2336 }
 0xaac   :  { %v852_v6 = vadd.f32 1.0, %v2337_v22 }
 0xaad   :  { %v2339_v24 = vpop.eup %2338 }
 0xaae   :  { %v853_v17 = vadd.f32 1.0, %v2339_v24 }
 0xab0   :  { %2340 = vrcp.f32 %v853_v17 }
 0xab1   :  { %2342 = vrcp.f32 %v852_v6 }
 0xabd   :  { %v2341_v58 = vpop.eup %2340 }
 0xabe   :  { %v858_v26 = vmul.f32 2.0, %v2341_v58  ;;  %v2343_v25 = vpop.eup %2342 }
 0xabf   :  { %v860_v62 = vmul.f32 %v2343_v25, %v781_v28 }
 0xac0   :  { %v2121_v32 = vadd.f32 -1.0, %v858_v26 }
 0xac2   :  { %v861_v29 = vmul.f32 %v2343_v25, %v2121_v32 }
 0xac4   :  { %863 = vrot.lane.b32.xlu0 %v861_v29, %s2533_s4  ;;  %v2257_v29 = vld [vmem:[%s3440_s5 + $0x20] ss:$8 sps:$4 sm:$0xff]  }
 0xb36   :  { %v864_v30 = vpop.permute.xlu0 %863 }
 0xb37   :  { %v866_v36 = vadd.f32 %v864_v30, %v860_v62 }
 0xb39   :  { %2344 = vtanh.f32 %v866_v36 }
 0xb46   :  { %v2345_v33 = vpop.eup %2344 }
 0xb47   :  { %v3025_v37 = vmul.f32 %v2345_v33, %v2341_v58  ;;  %v2260_v33 = vld [vmem:[%s3440_s5 + $0x10] ss:$8 sps:$4 sm:$0xff]  }
 0xb49   :  { %v881_v41 = vpack.c.bf16 %v3025_v37, %v3025_v37 }
 0xb4b   :  { %883 = vrot.lane.b32.xlu1 %v881_v41, %s2533_s4  ;;  %v2262_v41 = vld [vmem:[%s3440_s5 + $0x14] ss:$8 sps:$4 sm:$0xff]  }
 0xbbd   :  { %v884_v54 = vpop.permute.xlu1 %883 }
 0xbbe   :  { %2122 = vmatmul.mubr.msk.bf16.vlgmr.msra.gmra.mxu0 %vm373_vm4, %v884_v54  ;;  %v2265_v54 = vld [vmem:[%s3440_s5 + $0x4] ss:$8 sps:$4 sm:$0xff]  }
 0xbbf   :  { %1161 = vmatprep.mubr.bf16.mxu0 %v2531_v0  ;;  %1138 = vmatpush1.bf16.msra.mxu0 %v2254_v57 }
 0xc7e   :  { %v922_v10 = vpop.f32.mrf.mxu0 }
 0xc7f   :  { %v929_v61 = vadd.f32 %v922_v10, %v879_v40  ;;  %v2263_v10 = vld [vmem:[%s3440_s5] ss:$8 sps:$4 sm:$0xff]  }
 0xc80   :  { %v924_v31 = vpop.f32.mrf.mxu0 }
 0xc81   :  { %v2123_v63 = vmul.f32 -1.442695, %v929_v61  ;;  %v930_v21 = vadd.f32 %v924_v31, %v880_v53 }
 0xc82   :  { %v926_v4 = vpop.f32.mrf.mxu0 }
 0xc83   :  { %v2124_v13 = vmul.f32 -1.442695, %v930_v21  ;;  %2346 = vpow2.f32 %v2123_v63  ;;  %v3101_v63 = vld [vmem:[#allocation7 + $0x34] ss:$8 sps:$4 sm:$0xff]   ;;  %v3103_v21 = vld [vmem:[#allocation7 + $0x30] ss:$8 sps:$4 sm:$0xff]  }
 0xc84   :  { %v927_v23 = vpop.f32.mrf.mxu0  ;;  %v3105_v4 = vld [vmem:[#allocation7 + $0x24] ss:$8 sps:$4 sm:$0xff]   ;;  %1280 = vmatprep.subr.bf16.mxu1 %v3101_v63 }
 0xc85   :  { %2348 = vpow2.f32 %v2124_v13  ;;  %v3110_v13 = vld [vmem:[#allocation7 + $0x20] ss:$8 sps:$4 sm:$0xff]   ;;  %v3118_v23 = vld [vmem:[#allocation7 + $0x10] ss:$8 sps:$4 sm:$0xff]  }
 0xc90   :  { %v2347_v39 = vpop.eup %2346 }
 0xc91   :  { %v937_v19 = vadd.f32 1.0, %v2347_v39  ;;  %v3120_v39 = vld [vmem:[#allocation7 + $0x4] ss:$8 sps:$4 sm:$0xff]  }
 0xc92   :  { %v2349_v50 = vpop.eup %2348 }
 0xc93   :  { %v938_v8 = vadd.f32 1.0, %v2349_v50  ;;  %v3124_v50 = vld [vmem:[#allocation7] ss:$8 sps:$4 sm:$0xff]  }
 0xc95   :  { %2350 = vrcp.f32 %v938_v8 }
 0xc96   :  { %2352 = vrcp.f32 %v937_v19 }
 0xca2   :  { %v2351_v52 = vpop.eup %2350 }
 0xca3   :  { %v943_v34 = vmul.f32 2.0, %v2351_v52  ;;  %v2353_v28 = vpop.eup %2352 }
 0xca4   :  { %v945_v55 = vmul.f32 %v2353_v28, %v866_v36 }
 0xca5   :  { %v2125_v40 = vadd.f32 -1.0, %v943_v34 }
 0xca7   :  { %v946_v3 = vmul.f32 %v2353_v28, %v2125_v40 }
 0xca9   :  { %948 = vrot.lane.b32.xlu0 %v946_v3, %s2533_s4 }
 0xd1b   :  { %v949_v38 = vpop.permute.xlu0 %948 }
 0xd1c   :  { %v951_v53 = vadd.f32 %v949_v38, %v945_v55 }
 0xd1e   :  { %2354 = vtanh.f32 %v951_v53 }
 0xd2b   :  { %v2355_v35 = vpop.eup %2354 }
 0xd2c   :  { %v953_v27 = vmul.f32 %v2355_v35, %v2351_v52 }
 0xd2e   :  { %v966_v59 = vpack.c.bf16 %v953_v27, %v953_v27 }
 0xd30   :  { %968 = vrot.lane.b32.xlu1 %v966_v59, %s2533_s4 }
 0xd34   :  { %444 = vrot.lane.b32.xlu1 %v2907_v46, %s2533_s4 }
 0xd38   :  { %955 = vrot.lane.b32.xlu1 %v953_v27, %s2533_s4 }
 0xd3c   :  { %615 = vrot.lane.b32.xlu1 %v2949_v7, %s2533_s4 }
 0xd40   :  { %785 = vrot.lane.b32.xlu1 %v3000_v5, %s2533_s4 }
 0xda2   :  { %v969_v12 = vpop.permute.xlu1 %968 }
 0xda3   :  { %2126 = vmatmul.mubr.msk.bf16.vlgmr.msra.gmra.mxu1 %vm373_vm4, %v969_v12 }
 0xda4   :  { %1304 = vmatprep.mubr.bf16.mxu1 %v2531_v0  ;;  %1281 = vmatpush1.bf16.msra.mxu1 %v3103_v21 }
 0xda5   :  { %1282 = vmatprep.subr.bf16.mxu1 %v3105_v4 }
 0xda6   :  { %v445_v11 = vpop.permute.xlu1 %444 }
 0xda7   :  { %447 = vst.msk [vmem:[#allocation4] sm:$0xff] %vm67_vm0, %v445_v11 }
 0xda8   :  { %449 = vst.msk [vmem:[#allocation4 + $0x38] sm:$0xff] %vm448_vm5, %v445_v11  ;;  %1283 = vmatpush1.bf16.msra.mxu1 %v3110_v13 }
 0xdaa   :  { %v956_v46 = vpop.permute.xlu1 %955 }
 0xdae   :  { %v616_v2 = vpop.permute.xlu1 %615 }
 0xdaf   :  { %618 = vst.msk [vmem:[#allocation4 + $0x10] sm:$0xff] %vm67_vm0, %v616_v2 }
 0xdb0   :  { %619 = vst.msk [vmem:[#allocation4 + $0x28] sm:$0xff] %vm448_vm5, %v616_v2 }
 0xdb2   :  { %v786_v19 = vpop.permute.xlu1 %785 }
 0xe63   :  { %v1007_v7 = vpop.f32.mrf.mxu1 }
 0xe64   :  { %v1014_v5 = vadd.f32 %v1007_v7, %v964_v60 }
 0xe65   :  { %v1009_v14 = vpop.f32.mrf.mxu1 }
 0xe66   :  { %v2127_v16 = vmul.f32 -1.442695, %v1014_v5  ;;  %v1015_v18 = vadd.f32 %v1009_v14, %v965_v48  ;;  %v2259_v48 = vld [vmem:[%s3440_s5 + $0x24] ss:$8 sps:$4 sm:$0xff]   ;;  %v1065_v14 = vld [vmem:[%s3442_s7] sm:$0x3] }
 0xe67   :  { %v1011_v20 = vpop.f32.mrf.mxu1  ;;  %1139 = vmatprep.subr.bf16.mxu0 %v2259_v48 }
 0xe68   :  { %v2128_v22 = vmul.f32 -1.442695, %v1015_v18  ;;  %2356 = vpow2.f32 %v2127_v16  ;;  %1140 = vmatpush1.bf16.msra.mxu0 %v2257_v29  ;;  %v1070_v20 = vrot.slane %v1065_v14, %v190_v44 }
 0xe69   :  { %v1012_v24 = vpop.f32.mrf.mxu1  ;;  %1141 = vmatprep.subr.bf16.mxu0 %v2262_v41 }
 0xe6a   :  { %2358 = vpow2.f32 %v2128_v22  ;;  %v1074_v24 = vrot.slane %v1065_v14, %v194_v47 }
 0xe6c   :  { %1142 = vmatpush1.bf16.msra.mxu0 %v2260_v33 }
 0xe6d   :  { %1143 = vmatprep.subr.bf16.mxu0 %v2265_v54 }
 0xe70   :  { %1144 = vmatpush1.bf16.msra.mxu0 %v2263_v10 }
 0xe71   :  { %1438 = vmatprep.subr.bf16.mxu0 %v3101_v63 }
 0xe75   :  { %v2357_v17 = vpop.eup %2356 }
 0xe76   :  { %v1022_v26 = vadd.f32 1.0, %v2357_v17 }
 0xe77   :  { %v2359_v6 = vpop.eup %2358 }
 0xe78   :  { %v1023_v58 = vadd.f32 1.0, %v2359_v6 }
 0xe7a   :  { %2360 = vrcp.f32 %v1023_v58 }
 0xe7b   :  { %2362 = vrcp.f32 %v1022_v26 }
 0xe87   :  { %v2361_v42 = vpop.eup %2360 }
 0xe88   :  { %v1028_v45 = vmul.f32 2.0, %v2361_v42  ;;  %v2363_v32 = vpop.eup %2362 }
 0xe8a   :  { %v2129_v60 = vadd.f32 -1.0, %v1028_v45 }
 0xe8c   :  { %v1031_v25 = vmul.f32 %v2363_v32, %v2129_v60 }
 0xe8e   :  { %1033 = vrot.lane.b32.xlu0 %v1031_v25, %s2533_s4 }
 0xe92   :  { %530 = vrot.lane.b32.xlu0 %v2923_v51, %s2533_s4  ;;  %v1030_v51 = vmul.f32 %v2363_v32, %v951_v53 }
 0xf00   :  { %v1034_v62 = vpop.permute.xlu0 %1033 }
 0xf01   :  { %v1036_v30 = vadd.f32 %v1034_v62, %v1030_v51 }
 0xf03   :  { %2364 = vtanh.f32 %v1036_v30 }
 0xf04   :  { %v531_v36 = vpop.permute.xlu0 %530 }
 0xf05   :  { %533 = vst.msk [vmem:[#allocation4 + $0x8] sm:$0xff] %vm67_vm0, %v531_v36 }
 0xf06   :  { %534 = vst.msk [vmem:[#allocation4 + $0x30] sm:$0xff] %vm448_vm5, %v531_v36  ;;  %959 = vst.msk [vmem:[#allocation4 + $0x8] sm:$0xff] %vm448_vm5, %v956_v46 }
 0xf07   :  { %958 = vst.msk [vmem:[#allocation4 + $0x30] sm:$0xff] %vm67_vm0, %v956_v46 }
 0xf0d   :  { %v1046_v40 = vld [vmem:[#allocation4 + $0x8] sm:$0xff] }
 0xf0e   :  { %v1051_v12 = vld [vmem:[#allocation4 + $0x30] sm:$0xff] }
 0xf10   :  { %v2365_v61 = vpop.eup %2364 }
 0xf11   :  { %v1038_v31 = vmul.f32 %v2365_v61, %v2361_v42 }
 0xf13   :  { %1040 = vrot.lane.b32.xlu0 %v1038_v31, %s2533_s4 }
 0xf17   :  { %700 = vrot.lane.b32.xlu0 %v2975_v56, %s2533_s4  ;;  %v3116_v56 = vld [vmem:[#allocation7 + $0x14] ss:$8 sps:$4 sm:$0xff]  }
 0xf18   :  { %1284 = vmatprep.subr.bf16.mxu1 %v3116_v56 }
 0xf19   :  { %1285 = vmatpush1.bf16.msra.mxu1 %v3118_v23 }
 0xf1a   :  { %1286 = vmatprep.subr.bf16.mxu1 %v3120_v39 }
 0xf1b   :  { %870 = vrot.lane.b32.xlu0 %v3025_v37, %s2533_s4 }
 0xf1d   :  { %1287 = vmatpush1.bf16.msra.mxu1 %v3124_v50 }
 0xf1e   :  { %1359 = vmatprep.subr.bf16.mxu1 %v3101_v63 }
 0xf20   :  { %1305 = vmatmul.mubr.bf16.vlgmr.msra.gmra.mxu1 %v2531_v0 }
 0xf21   :  { %1360 = vmatpush1.bf16.msra.mxu1 %v3103_v21  ;;  %1383 = vmatprep.mubr.bf16.mxu1 %v2531_v0 }
 0xf22   :  { %1361 = vmatprep.subr.bf16.mxu1 %v3105_v4 }
 0xf25   :  { %1362 = vmatpush1.bf16.msra.mxu1 %v3110_v13 }
 0xf26   :  { %1363 = vmatprep.subr.bf16.mxu1 %v3116_v56 }
 0xf29   :  { %1364 = vmatpush1.bf16.msra.mxu1 %v3118_v23 }
 0xf2a   :  { %1365 = vmatprep.subr.bf16.mxu1 %v3120_v39 }
 0xf2d   :  { %1366 = vmatpush1.bf16.msra.mxu1 %v3124_v50 }
 0xf2e   :  { %1517 = vmatprep.subr.bf16.mxu1 %v3101_v63 }
 0xf85   :  { %v1041_v37 = vpop.permute.xlu0 %1040 }
 0xf86   :  { %1043 = vst.msk [vmem:[#allocation4 + $0x38] sm:$0xff] %vm67_vm0, %v1041_v37 }
 0xf87   :  { %1044 = vst.msk [vmem:[#allocation4] sm:$0xff] %vm448_vm5, %v1041_v37 }
 0xf89   :  { %v701_v8 = vpop.permute.xlu0 %700 }
 0xf8a   :  { %703 = vst.msk [vmem:[#allocation4 + $0x18] sm:$0xff] %vm67_vm0, %v701_v8 }
 0xf8b   :  { %704 = vst.msk [vmem:[#allocation4 + $0x20] sm:$0xff] %vm448_vm5, %v701_v8  ;;  %789 = vst.msk [vmem:[#allocation4 + $0x18] sm:$0xff] %vm448_vm5, %v786_v19 }
 0xf8c   :  { %788 = vst.msk [vmem:[#allocation4 + $0x20] sm:$0xff] %vm67_vm0, %v786_v19 }
 0xf8d   :  { %v871_v52 = vpop.permute.xlu0 %870  ;;  %v1052_v59 = vld [vmem:[#allocation4 + $0x38] sm:$0xff] }
 0xf8e   :  { %v1045_v34 = vld [vmem:[#allocation4] sm:$0xff]  ;;  %873 = vst.msk [vmem:[#allocation4 + $0x28] sm:$0xff] %vm67_vm0, %v871_v52  ;;  %v1056_v11 = vpack.c.bf16 %v1052_v59, %v1051_v12 }
 0xf8f   :  { %874 = vst.msk [vmem:[#allocation4 + $0x10] sm:$0xff] %vm448_vm5, %v871_v52  ;;  %v1053_v28 = vpack.c.bf16 %v1046_v40, %v1045_v34 }
 0xf91   :  { %2138 = vmatmul.mubr.msk.bf16.vlgmr.msra.gmra.mxu0 %vm373_vm4, %v1053_v28 }
 0xf92   :  { %1171 = vmatprep.mubr.bf16.mxu0 %v2531_v0  ;;  %1439 = vmatpush1.bf16.msra.mxu0 %v3103_v21  ;;  %v1048_v55 = vld [vmem:[#allocation4 + $0x18] sm:$0xff] }
 0xf93   :  { %1440 = vmatprep.subr.bf16.mxu0 %v3105_v4  ;;  %v1049_v35 = vld [vmem:[#allocation4 + $0x20] sm:$0xff] }
 0xf95   :  { %v1050_v53 = vld [vmem:[#allocation4 + $0x28] sm:$0xff] }
 0xf96   :  { %v1047_v3 = vld [vmem:[#allocation4 + $0x10] sm:$0xff]  ;;  %1441 = vmatpush1.bf16.msra.mxu0 %v3110_v13  ;;  %v1055_v27 = vpack.c.bf16 %v1050_v53, %v1049_v35 }
 0xf97   :  { %v1054_v38 = vpack.c.bf16 %v1048_v55, %v1047_v3  ;;  %1442 = vmatprep.subr.bf16.mxu0 %v3116_v56 }
 0xf99   :  { %2139 = vmatmul.mubr.msk.bf16.gmra.mxu0 %vm373_vm4, %v1054_v38 }
 0xf9a   :  { %1181 = vmatprep.mubr.bf16.mxu0 %v2531_v0  ;;  %1443 = vmatpush1.bf16.msra.mxu0 %v3118_v23 }
 0xf9b   :  { %1444 = vmatprep.subr.bf16.mxu0 %v3120_v39 }
 0xf9e   :  { %1445 = vmatpush1.bf16.msra.mxu0 %v3124_v50 }
 0xf9f   :  { %1592 = vmatprep.subr.bf16.mxu0 %v3101_v63 }
 0xfa1   :  { %2140 = vmatmul.mubr.msk.bf16.gmra.mxu0 %vm373_vm4, %v1055_v27 }
 0xfa2   :  { %1191 = vmatprep.mubr.bf16.mxu0 %v2531_v0 }
 0xfa9   :  { %2141 = vmatmul.mubr.msk.bf16.gmra.mxu0 %vm373_vm4, %v1056_v11 }
 0xfaa   :  { %1462 = vmatprep.mubr.bf16.mxu0 %v2531_v0 }
 0xfe0   :  { %v1306_v46 = vpop.f32.mrf.mxu1 }
 0xfe2   :  { %v1308_v2 = vpop.f32.mrf.mxu1 }
 0xfe4   :  { %v1310_v7 = vpop.f32.mrf.mxu1 }
 0xfe6   :  { %v1311_v5 = vpop.f32.mrf.mxu1 }
0x1051   :  { %v1163_v16 = vpop.f32.mrf.mxu0 }
0x1052   :  { %v3234_v55 = vadd.f32 %v1163_v16, %v1070_v20 }
0x1053   :  { %v1165_v18 = vpop.f32.mrf.mxu0 }
0x1054   :  { %v3246_v59 = vadd.f32 %v1165_v18, %v1074_v24 }
0x1055   :  { %v1167_v22 = vpop.f32.mrf.mxu0 }
0x1056   :  { %v3170_v17 = vadd.f32 %v1167_v22, %v1070_v20 }
0x1057   :  { %v1169_v6 = vpop.f32.mrf.mxu0 }
0x1058   :  { %v3172_v58 = vadd.f32 %v1169_v6, %v1074_v24 }
0x1059   :  { %v1173_v26 = vpop.f32.mrf.mxu0 }
0x105a   :  { %v3174_v42 = vadd.f32 %v1173_v26, %v1070_v20 }
0x105b   :  { %v1175_v45 = vpop.f32.mrf.mxu0 }
0x105c   :  { %v3176_v60 = vadd.f32 %v1175_v45, %v1074_v24 }
0x105d   :  { %v1177_v32 = vpop.f32.mrf.mxu0 }
0x105e   :  { %v3178_v25 = vadd.f32 %v1177_v32, %v1070_v20 }
0x105f   :  { %v1179_v57 = vpop.f32.mrf.mxu0 }
0x1060   :  { %v3180_v44 = vadd.f32 %v1179_v57, %v1074_v24 }
0x1061   :  { %v1183_v49 = vpop.f32.mrf.mxu0 }
0x1062   :  { %v3182_v43 = vadd.f32 %v1183_v49, %v1070_v20 }
0x1063   :  { %v1185_v47 = vpop.f32.mrf.mxu0 }
0x1064   :  { %v3184_v48 = vadd.f32 %v1185_v47, %v1074_v24  ;;  %v1500_v29 = vsel %vm2814_vm2, %v3178_v25, %v3182_v43  ;;  %v1575_v51 = vsel %vm2814_vm2, %v3182_v43, %v3178_v25 }
0x1065   :  { %v1187_v62 = vpop.f32.mrf.mxu0 }
0x1066   :  { %v3194_v30 = vadd.f32 %v1187_v62, %v1070_v20  ;;  %v1501_v36 = vsel %vm2820_vm3, %v3180_v44, %v3184_v48  ;;  %v1576_v33 = vsel %vm2820_vm3, %v3184_v48, %v3180_v44 }
0x1067   :  { %v1189_v41 = vpop.f32.mrf.mxu0 }
0x1068   :  { %v3204_v54 = vadd.f32 %v1189_v41, %v1074_v24  ;;  %v1421_v10 = vsel %vm2814_vm2, %v3174_v42, %v3194_v30  ;;  %v1650_v61 = vsel %vm2814_vm2, %v3194_v30, %v3174_v42 }
0x1069   :  { %v1193_v31 = vpop.f32.mrf.mxu0 }
0x106a   :  { %v3214_v37 = vadd.f32 %v1193_v31, %v1070_v20  ;;  %v1422_v8 = vsel %vm2820_vm3, %v3176_v60, %v3204_v54  ;;  %v1651_v19 = vsel %vm2820_vm3, %v3204_v54, %v3176_v60 }
0x106b   :  { %v1195_v52 = vpop.f32.mrf.mxu0 }
0x106c   :  { %v3224_v34 = vadd.f32 %v1195_v52, %v1074_v24  ;;  %v1342_v40 = vsel %vm2814_vm2, %v3170_v17, %v3214_v37  ;;  %v1725_v28 = vsel %vm2814_vm2, %v3214_v37, %v3170_v17 }
0x106d   :  { %v1197_v3 = vpop.f32.mrf.mxu0 }
0x106e   :  { %v3236_v38 = vadd.f32 %v1197_v3, %v1070_v20  ;;  %v1343_v53 = vsel %vm2820_vm3, %v3172_v58, %v3224_v34  ;;  %v1726_v35 = vsel %vm2820_vm3, %v3224_v34, %v3172_v58 }
0x106f   :  { %v1199_v27 = vpop.f32.mrf.mxu0 }
0x1070   :  { %v1230_v12 = vsel %vm2814_vm2, %v3234_v55, %v3236_v38  ;;  %v3252_v11 = vadd.f32 %v1199_v27, %v1074_v24  ;;  %v1800_v7 = vsel %vm2814_vm2, %v3236_v38, %v3234_v55 }
0x1071   :  { %v1313_v5 = vadd.f32 %v1306_v46, %v1230_v12 }
0x1072   :  { %v1231_v14 = vsel %vm2820_vm3, %v3246_v59, %v3252_v11  ;;  %v1801_v16 = vsel %vm2820_vm3, %v3252_v11, %v3246_v59 }
0x1073   :  { %v2150_v18 = vmul.f32 -1.442695, %v1313_v5  ;;  %v1314_v20 = vadd.f32 %v1308_v2, %v1231_v14 }
0x1075   :  { %v2151_v22 = vmul.f32 -1.442695, %v1314_v20  ;;  %2366 = vpow2.f32 %v2150_v18 }
0x1077   :  { %2368 = vpow2.f32 %v2151_v22 }
0x1082   :  { %v2367_v24 = vpop.eup %2366 }
0x1083   :  { %v1321_v45 = vadd.f32 1.0, %v2367_v24 }
0x1084   :  { %v2369_v6 = vpop.eup %2368 }
0x1085   :  { %v1322_v26 = vadd.f32 1.0, %v2369_v6 }
0x1087   :  { %2370 = vrcp.f32 %v1322_v26 }
0x1088   :  { %2372 = vrcp.f32 %v1321_v45 }
0x1094   :  { %v2371_v46 = vpop.eup %2370 }
0x1095   :  { %v1327_v32 = vmul.f32 2.0, %v2371_v46  ;;  %v2373_v49 = vpop.eup %2372 }
0x1096   :  { %v1329_v62 = vmul.f32 0.0, %v2373_v49 }
0x1097   :  { %v2152_v57 = vadd.f32 -1.0, %v1327_v32 }
0x1099   :  { %v1330_v47 = vmul.f32 %v2373_v49, %v2152_v57 }
0x109b   :  { %1332 = vrot.lane.b32.xlu1 %v1330_v47, %s2533_s4 }
0x110d   :  { %v1333_v41 = vpop.permute.xlu1 %1332 }
0x110e   :  { %v1335_v31 = vadd.f32 %v1333_v41, %v1329_v62 }
0x1110   :  { %2374 = vtanh.f32 %v1335_v31 }
0x111d   :  { %v2375_v2 = vpop.eup %2374 }
0x111e   :  { %v1337_v52 = vmul.f32 %v2375_v2, %v2371_v46 }
0x1120   :  { %v1344_v3 = vpack.c.bf16 %v1337_v52, %v1337_v52 }
0x1122   :  { %1346 = vrot.lane.b32.xlu0 %v1344_v3, %s2533_s4 }
0x1194   :  { %v3268_v27 = vpop.permute.xlu0 %1346 }
0x1195   :  { %2153 = vmatmul.mubr.msk.bf16.vlgmr.msra.gmra.mxu1 %vm373_vm4, %v3268_v27 }
0x1196   :  { %1518 = vmatpush1.bf16.msra.mxu1 %v3103_v21  ;;  %1541 = vmatprep.mubr.bf16.mxu1 %v2531_v0 }
0x1197   :  { %1519 = vmatprep.subr.bf16.mxu1 %v3105_v4 }
0x119a   :  { %1520 = vmatpush1.bf16.msra.mxu1 %v3110_v13 }
0x119b   :  { %1521 = vmatprep.subr.bf16.mxu1 %v3116_v56 }
0x119e   :  { %1522 = vmatpush1.bf16.msra.mxu1 %v3118_v23 }
0x119f   :  { %1523 = vmatprep.subr.bf16.mxu1 %v3120_v39 }
0x11a2   :  { %1524 = vmatpush1.bf16.msra.mxu1 %v3124_v50 }
0x11a3   :  { %1667 = vmatprep.subr.bf16.mxu1 %v3101_v63 }
0x1255   :  { %v1385_v12 = vpop.f32.mrf.mxu1 }
0x1256   :  { %v1392_v5 = vadd.f32 %v1385_v12, %v1342_v40 }
0x1257   :  { %v1387_v14 = vpop.f32.mrf.mxu1 }
0x1258   :  { %v2154_v18 = vmul.f32 -1.442695, %v1392_v5  ;;  %v1393_v20 = vadd.f32 %v1387_v14, %v1343_v53 }
0x1259   :  { %v1389_v22 = vpop.f32.mrf.mxu1 }
0x125a   :  { %v2155_v24 = vmul.f32 -1.442695, %v1393_v20  ;;  %2376 = vpow2.f32 %v2154_v18 }
0x125b   :  { %v1390_v6 = vpop.f32.mrf.mxu1 }
0x125c   :  { %2378 = vpow2.f32 %v2155_v24 }
0x1267   :  { %v2377_v26 = vpop.eup %2376 }
0x1268   :  { %v1400_v32 = vadd.f32 1.0, %v2377_v26 }
0x1269   :  { %v2379_v45 = vpop.eup %2378 }
0x126a   :  { %v1401_v46 = vadd.f32 1.0, %v2379_v45 }
0x126c   :  { %2380 = vrcp.f32 %v1401_v46 }
0x126d   :  { %2382 = vrcp.f32 %v1400_v32 }
0x1279   :  { %v2381_v57 = vpop.eup %2380 }
0x127a   :  { %v1406_v49 = vmul.f32 2.0, %v2381_v57  ;;  %v2383_v62 = vpop.eup %2382 }
0x127b   :  { %v1408_v40 = vmul.f32 %v2383_v62, %v1335_v31 }
0x127c   :  { %v2156_v47 = vadd.f32 -1.0, %v1406_v49 }
0x127e   :  { %v1409_v41 = vmul.f32 %v2383_v62, %v2156_v47 }
0x1280   :  { %1411 = vrot.lane.b32.xlu1 %v1409_v41, %s2533_s4 }
0x12f2   :  { %v1412_v53 = vpop.permute.xlu1 %1411 }
0x12f3   :  { %v1414_v2 = vadd.f32 %v1412_v53, %v1408_v40 }
0x12f5   :  { %2384 = vtanh.f32 %v1414_v2 }
0x1302   :  { %v2385_v52 = vpop.eup %2384 }
0x1303   :  { %v1416_v3 = vmul.f32 %v2385_v52, %v2381_v57 }
0x1305   :  { %v1423_v12 = vpack.c.bf16 %v1416_v3, %v1416_v3 }
0x1307   :  { %1425 = vrot.lane.b32.xlu0 %v1423_v12, %s2533_s4 }
0x1379   :  { %v1426_v5 = vpop.permute.xlu0 %1425 }
0x137a   :  { %2157 = vmatmul.mubr.msk.bf16.vlgmr.msra.gmra.mxu0 %vm373_vm4, %v1426_v5 }
0x137b   :  { %1593 = vmatpush1.bf16.msra.mxu0 %v3103_v21  ;;  %1616 = vmatprep.mubr.bf16.mxu0 %v2531_v0 }
0x137c   :  { %1594 = vmatprep.subr.bf16.mxu0 %v3105_v4 }
0x137f   :  { %1595 = vmatpush1.bf16.msra.mxu0 %v3110_v13 }
0x1380   :  { %1596 = vmatprep.subr.bf16.mxu0 %v3116_v56 }
0x1383   :  { %1597 = vmatpush1.bf16.msra.mxu0 %v3118_v23 }
0x1384   :  { %1598 = vmatprep.subr.bf16.mxu0 %v3120_v39 }
0x1387   :  { %1599 = vmatpush1.bf16.msra.mxu0 %v3124_v50 }
0x1388   :  { %1742 = vmatprep.subr.bf16.mxu0 %v3101_v63 }
0x143a   :  { %v1464_v31 = vpop.f32.mrf.mxu0 }
0x143b   :  { %v1471_v14 = vadd.f32 %v1464_v31, %v1421_v10 }
0x143c   :  { %v1466_v18 = vpop.f32.mrf.mxu0 }
0x143d   :  { %v2158_v20 = vmul.f32 -1.442695, %v1471_v14  ;;  %v1472_v22 = vadd.f32 %v1466_v18, %v1422_v8 }
0x143e   :  { %v1468_v24 = vpop.f32.mrf.mxu0 }
0x143f   :  { %v2159_v6 = vmul.f32 -1.442695, %v1472_v22  ;;  %2386 = vpow2.f32 %v2158_v20 }
0x1440   :  { %v1469_v26 = vpop.f32.mrf.mxu0 }
0x1441   :  { %2388 = vpow2.f32 %v2159_v6 }
0x144c   :  { %v2387_v45 = vpop.eup %2386 }
0x144d   :  { %v1479_v57 = vadd.f32 1.0, %v2387_v45 }
0x144e   :  { %v2389_v46 = vpop.eup %2388 }
0x144f   :  { %v1480_v32 = vadd.f32 1.0, %v2389_v46 }
0x1451   :  { %2390 = vrcp.f32 %v1480_v32 }
0x1452   :  { %2392 = vrcp.f32 %v1479_v57 }
0x145e   :  { %v2391_v10 = vpop.eup %2390 }
0x145f   :  { %v1485_v49 = vmul.f32 2.0, %v2391_v10  ;;  %v2393_v62 = vpop.eup %2392 }
0x1460   :  { %v1487_v40 = vmul.f32 %v2393_v62, %v1414_v2 }
0x1461   :  { %v2160_v47 = vadd.f32 -1.0, %v1485_v49 }
0x1463   :  { %v1488_v41 = vmul.f32 %v2393_v62, %v2160_v47 }
0x1465   :  { %1490 = vrot.lane.b32.xlu1 %v1488_v41, %s2533_s4 }
0x14d7   :  { %v1491_v8 = vpop.permute.xlu1 %1490 }
0x14d8   :  { %v1493_v53 = vadd.f32 %v1491_v8, %v1487_v40 }
0x14da   :  { %2394 = vtanh.f32 %v1493_v53 }
0x14e7   :  { %v2395_v52 = vpop.eup %2394 }
0x14e8   :  { %v1495_v3 = vmul.f32 %v2395_v52, %v2391_v10 }
0x14ea   :  { %v1502_v12 = vpack.c.bf16 %v1495_v3, %v1495_v3 }
0x14ec   :  { %1504 = vrot.lane.b32.xlu0 %v1502_v12, %s2533_s4 }
0x155e   :  { %v1505_v5 = vpop.permute.xlu0 %1504 }
0x155f   :  { %2161 = vmatmul.mubr.msk.bf16.vlgmr.msra.gmra.mxu1 %vm373_vm4, %v1505_v5 }
0x1560   :  { %1668 = vmatpush1.bf16.msra.mxu1 %v3103_v21  ;;  %1691 = vmatprep.mubr.bf16.mxu1 %v2531_v0 }
0x1561   :  { %1669 = vmatprep.subr.bf16.mxu1 %v3105_v4 }
0x1564   :  { %1670 = vmatpush1.bf16.msra.mxu1 %v3110_v13 }
0x1565   :  { %1671 = vmatprep.subr.bf16.mxu1 %v3116_v56 }
0x1568   :  { %1672 = vmatpush1.bf16.msra.mxu1 %v3118_v23 }
0x1569   :  { %1673 = vmatprep.subr.bf16.mxu1 %v3120_v39 }
0x156c   :  { %1674 = vmatpush1.bf16.msra.mxu1 %v3124_v50 }
0x156d   :  { %1817 = vmatprep.subr.bf16.mxu1 %v3101_v63 }
0x161f   :  { %v1543_v2 = vpop.f32.mrf.mxu1 }
0x1620   :  { %v1550_v31 = vadd.f32 %v1543_v2, %v1500_v29 }
0x1621   :  { %v1545_v14 = vpop.f32.mrf.mxu1 }
0x1622   :  { %v2162_v18 = vmul.f32 -1.442695, %v1550_v31  ;;  %v1551_v20 = vadd.f32 %v1545_v14, %v1501_v36 }
0x1623   :  { %v1547_v22 = vpop.f32.mrf.mxu1 }
0x1624   :  { %v2163_v24 = vmul.f32 -1.442695, %v1551_v20  ;;  %2396 = vpow2.f32 %v2162_v18 }
0x1625   :  { %v1548_v6 = vpop.f32.mrf.mxu1 }
0x1626   :  { %2398 = vpow2.f32 %v2163_v24 }
0x1631   :  { %v2397_v63 = vpop.eup %2396 }
0x1632   :  { %v1558_v46 = vadd.f32 1.0, %v2397_v63 }
0x1633   :  { %v2399_v26 = vpop.eup %2398 }
0x1634   :  { %v1559_v45 = vadd.f32 1.0, %v2399_v26 }
0x1636   :  { %2400 = vrcp.f32 %v1559_v45 }
0x1637   :  { %2402 = vrcp.f32 %v1558_v46 }
0x1643   :  { %v2401_v29 = vpop.eup %2400 }
0x1644   :  { %v1564_v32 = vmul.f32 2.0, %v2401_v29  ;;  %v2403_v10 = vpop.eup %2402 }
0x1645   :  { %v1566_v47 = vmul.f32 %v2403_v10, %v1493_v53 }
0x1646   :  { %v2164_v57 = vadd.f32 -1.0, %v1564_v32 }
0x1648   :  { %v1567_v49 = vmul.f32 %v2403_v10, %v2164_v57 }
0x164a   :  { %1569 = vrot.lane.b32.xlu1 %v1567_v49, %s2533_s4 }
0x16bc   :  { %v1570_v36 = vpop.permute.xlu1 %1569 }
0x16bd   :  { %v1572_v62 = vadd.f32 %v1570_v36, %v1566_v47 }
0x16bf   :  { %2404 = vtanh.f32 %v1572_v62 }
0x16cc   :  { %v2405_v41 = vpop.eup %2404 }
0x16cd   :  { %v1574_v40 = vmul.f32 %v2405_v41, %v2401_v29 }
0x16cf   :  { %v1577_v8 = vpack.c.bf16 %v1574_v40, %v1574_v40 }
0x16d1   :  { %1579 = vrot.lane.b32.xlu0 %v1577_v8, %s2533_s4 }
0x1743   :  { %v1580_v52 = vpop.permute.xlu0 %1579 }
0x1744   :  { %2165 = vmatmul.mubr.msk.bf16.vlgmr.msra.gmra.mxu0 %vm373_vm4, %v1580_v52 }
0x1745   :  { %1743 = vmatpush1.bf16.msra.mxu0 %v3103_v21  ;;  %1766 = vmatprep.mubr.bf16.mxu0 %v2531_v0 }
0x1746   :  { %1744 = vmatprep.subr.bf16.mxu0 %v3105_v4 }
0x1749   :  { %1745 = vmatpush1.bf16.msra.mxu0 %v3110_v13 }
0x174a   :  { %1746 = vmatprep.subr.bf16.mxu0 %v3116_v56 }
0x174d   :  { %1747 = vmatpush1.bf16.msra.mxu0 %v3118_v23 }
0x174e   :  { %1748 = vmatprep.subr.bf16.mxu0 %v3120_v39 }
0x1751   :  { %1749 = vmatpush1.bf16.msra.mxu0 %v3124_v50 }
0x1752   :  { %2202 = vmatprep.subr.bf16.mxu0 %v2532_v1 }
0x1804   :  { %v1618_v53 = vpop.f32.mrf.mxu0 }
0x1805   :  { %v1625_v3 = vadd.f32 %v1618_v53, %v1575_v51 }
0x1806   :  { %v1620_v12 = vpop.f32.mrf.mxu0 }
0x1807   :  { %v2166_v5 = vmul.f32 -1.442695, %v1625_v3  ;;  %v1626_v2 = vadd.f32 %v1620_v12, %v1576_v33 }
0x1808   :  { %v1622_v31 = vpop.f32.mrf.mxu0 }
0x1809   :  { %v2167_v14 = vmul.f32 -1.442695, %v1626_v2  ;;  %2406 = vpow2.f32 %v2166_v5 }
0x180a   :  { %v1623_v18 = vpop.f32.mrf.mxu0 }
0x180b   :  { %2408 = vpow2.f32 %v2167_v14 }
0x1816   :  { %v2407_v20 = vpop.eup %2406 }
0x1817   :  { %v1633_v6 = vadd.f32 1.0, %v2407_v20 }
0x1818   :  { %v2409_v22 = vpop.eup %2408 }
0x1819   :  { %v1634_v24 = vadd.f32 1.0, %v2409_v22 }
0x181b   :  { %2410 = vrcp.f32 %v1634_v24 }
0x181c   :  { %2412 = vrcp.f32 %v1633_v6 }
0x1828   :  { %v2411_v25 = vpop.eup %2410 }
0x1829   :  { %v1639_v43 = vmul.f32 2.0, %v2411_v25  ;;  %v2413_v63 = vpop.eup %2412 }
0x182a   :  { %v1641_v44 = vmul.f32 %v2413_v63, %v1572_v62 }
0x182b   :  { %v2168_v51 = vadd.f32 -1.0, %v1639_v43 }
0x182d   :  { %v1642_v26 = vmul.f32 %v2413_v63, %v2168_v51 }
0x182f   :  { %1644 = vrot.lane.b32.xlu1 %v1642_v26, %s2533_s4 }
0x18a1   :  { %v1645_v48 = vpop.permute.xlu1 %1644 }
0x18a2   :  { %v1647_v33 = vadd.f32 %v1645_v48, %v1641_v44  ;;  %v2278_v44 = vld [vmem:[%s3443_s8 + $0x18] sm:$0xff]  }
0x18a4   :  { %2414 = vtanh.f32 %v1647_v33 }
0x18b1   :  { %v2415_v45 = vpop.eup %2414 }
0x18b2   :  { %v1649_v46 = vmul.f32 %v2415_v45, %v2411_v25  ;;  %v2280_v45 = vld [vmem:[%s3443_s8 + $0x8] sm:$0xff]  }
0x18b4   :  { %v1652_v29 = vpack.c.bf16 %v1649_v46, %v1649_v46  ;;  %v2281_v46 = vld [vmem:[%s3443_s8] sm:$0xff]  }
0x18b6   :  { %1654 = vrot.lane.b32.xlu0 %v1652_v29, %s2533_s4 }
0x1928   :  { %v1655_v32 = vpop.permute.xlu0 %1654 }
0x1929   :  { %2169 = vmatmul.mubr.msk.bf16.vlgmr.msra.gmra.mxu1 %vm373_vm4, %v1655_v32 }
0x192a   :  { %1818 = vmatpush1.bf16.msra.mxu1 %v3103_v21  ;;  %1841 = vmatprep.mubr.bf16.mxu1 %v2531_v0 }
0x192b   :  { %1819 = vmatprep.subr.bf16.mxu1 %v3105_v4 }
0x192e   :  { %1820 = vmatpush1.bf16.msra.mxu1 %v3110_v13 }
0x192f   :  { %1821 = vmatprep.subr.bf16.mxu1 %v3116_v56 }
0x1932   :  { %1822 = vmatpush1.bf16.msra.mxu1 %v3118_v23 }
0x1933   :  { %1823 = vmatprep.subr.bf16.mxu1 %v3120_v39 }
0x1936   :  { %1824 = vmatpush1.bf16.msra.mxu1 %v3124_v50 }
0x1937   :  { %2214 = vmatprep.subr.bf16.mxu1 %v2532_v1 }
0x19e9   :  { %v1693_v57 = vpop.f32.mrf.mxu1 }
0x19ea   :  { %v1700_v0 = vadd.f32 %v1693_v57, %v1650_v61 }
0x19eb   :  { %v1695_v21 = vpop.f32.mrf.mxu1 }
0x19ec   :  { %v2170_v4 = vmul.f32 -1.442695, %v1700_v0  ;;  %v1701_v13 = vadd.f32 %v1695_v21, %v1651_v19 }
0x19ed   :  { %v1697_v56 = vpop.f32.mrf.mxu1 }
0x19ee   :  { %v2171_v23 = vmul.f32 -1.442695, %v1701_v13  ;;  %2416 = vpow2.f32 %v2170_v4 }
0x19ef   :  { %v1698_v39 = vpop.f32.mrf.mxu1 }
0x19f0   :  { %2418 = vpow2.f32 %v2171_v23 }
0x19fb   :  { %v2417_v50 = vpop.eup %2416 }
0x19fc   :  { %v1708_v47 = vadd.f32 1.0, %v2417_v50 }
0x19fd   :  { %v2419_v10 = vpop.eup %2418 }
0x19fe   :  { %v1709_v49 = vadd.f32 1.0, %v2419_v10 }
0x1a00   :  { %2420 = vrcp.f32 %v1709_v49 }
0x1a01   :  { %2422 = vrcp.f32 %v1708_v47  ;;  %v2283_v47 = vld [vmem:[%s3443_s8 + $0x30] sm:$0xff]  }
0x1a0d   :  { %v2421_v42 = vpop.eup %2420 }
0x1a0e   :  { %v1714_v30 = vmul.f32 2.0, %v2421_v42  ;;  %v2423_v36 = vpop.eup %2422 }
0x1a0f   :  { %v1716_v60 = vmul.f32 %v2423_v36, %v1647_v33  ;;  %v2279_v33 = vld [vmem:[%s3443_s8 + $0x10] sm:$0xff]  }
0x1a10   :  { %v2172_v61 = vadd.f32 -1.0, %v1714_v30  ;;  %v2285_v30 = vld [vmem:[%s3443_s8 + $0x20] sm:$0xff]  }
0x1a12   :  { %v1717_v62 = vmul.f32 %v2423_v36, %v2172_v61 }
0x1a14   :  { %1719 = vrot.lane.b32.xlu1 %v1717_v62, %s2533_s4 }
0x1a86   :  { %v1720_v54 = vpop.permute.xlu1 %1719 }
0x1a87   :  { %v1722_v19 = vadd.f32 %v1720_v54, %v1716_v60 }
0x1a89   :  { %2424 = vtanh.f32 %v1722_v19 }
0x1a96   :  { %v2425_v41 = vpop.eup %2424 }
0x1a97   :  { %v1724_v40 = vmul.f32 %v2425_v41, %v2421_v42  ;;  %v2284_v42 = vld [vmem:[%s3443_s8 + $0x28] sm:$0xff]  }
0x1a99   :  { %v1727_v8 = vpack.c.bf16 %v1724_v40, %v1724_v40 }
0x1a9b   :  { %1729 = vrot.lane.b32.xlu0 %v1727_v8, %s2533_s4  ;;  %v2191_v8 = vld [vmem:[#allocation10] ss:$0 sm:$0xff] }
0x1b0d   :  { %v1730_v52 = vpop.permute.xlu0 %1729 }
0x1b0e   :  { %2173 = vmatmul.mubr.msk.bf16.vlgmr.msra.gmra.mxu0 %vm373_vm4, %v1730_v52 }
0x1b0f   :  { %2210 = vmatprep.mubr.msk.bf16.mxu0 %vm2534_vm6, %v2532_v1 }
0x1bce   :  { %v1768_v53 = vpop.f32.mrf.mxu0 }
0x1bcf   :  { %v1775_v3 = vadd.f32 %v1768_v53, %v1725_v28 }
0x1bd0   :  { %v1770_v12 = vpop.f32.mrf.mxu0 }
0x1bd1   :  { %v2174_v5 = vmul.f32 -1.442695, %v1775_v3  ;;  %v1776_v2 = vadd.f32 %v1770_v12, %v1726_v35 }
0x1bd2   :  { %v1772_v31 = vpop.f32.mrf.mxu0 }
0x1bd3   :  { %v2175_v14 = vmul.f32 -1.442695, %v1776_v2  ;;  %2426 = vpow2.f32 %v2174_v5 }
0x1bd4   :  { %v1773_v18 = vpop.f32.mrf.mxu0 }
0x1bd5   :  { %2428 = vpow2.f32 %v2175_v14 }
0x1be0   :  { %v2427_v20 = vpop.eup %2426 }
0x1be1   :  { %v1783_v6 = vadd.f32 1.0, %v2427_v20 }
0x1be2   :  { %v2429_v22 = vpop.eup %2428 }
0x1be3   :  { %v1784_v24 = vadd.f32 1.0, %v2429_v22 }
0x1be5   :  { %2430 = vrcp.f32 %v1784_v24 }
0x1be6   :  { %2432 = vrcp.f32 %v1783_v6 }
0x1bf2   :  { %v2431_v17 = vpop.eup %2430 }
0x1bf3   :  { %v1789_v37 = vmul.f32 2.0, %v2431_v17  ;;  %v2433_v25 = vpop.eup %2432 }
0x1bf4   :  { %v1791_v58 = vmul.f32 %v2433_v25, %v1722_v19 }
0x1bf5   :  { %v2176_v28 = vadd.f32 -1.0, %v1789_v37 }
0x1bf7   :  { %v1792_v43 = vmul.f32 %v2433_v25, %v2176_v28 }
0x1bf9   :  { %1794 = vrot.lane.b32.xlu1 %v1792_v43, %s2533_s4 }
0x1c6b   :  { %v1795_v34 = vpop.permute.xlu1 %1794 }
0x1c6c   :  { %v1797_v35 = vadd.f32 %v1795_v34, %v1791_v58 }
0x1c6e   :  { %2434 = vtanh.f32 %v1797_v35 }
0x1c7b   :  { %v2435_v51 = vpop.eup %2434 }
0x1c7c   :  { %v1799_v63 = vmul.f32 %v2435_v51, %v2431_v17 }
0x1c7e   :  { %v1802_v26 = vpack.c.bf16 %v1799_v63, %v1799_v63 }
0x1c80   :  { %1804 = vrot.lane.b32.xlu0 %v1802_v26, %s2533_s4 }
0x1cf2   :  { %v1805_v48 = vpop.permute.xlu0 %1804 }
0x1cf3   :  { %2177 = vmatmul.mubr.msk.bf16.vlgmr.msra.gmra.mxu1 %vm373_vm4, %v1805_v48 }
0x1cf4   :  { %2215 = vmatpush3.bf16.msra.mxu1 %v2278_v44  ;;  %2222 = vmatprep.mubr.msk.bf16.mxu1 %vm2534_vm6, %v2532_v1 }
0x1cf5   :  { %2216 = vmatprep.subr.bf16.mxu1 %v2532_v1 }
0x1cf8   :  { %2217 = vmatpush3.bf16.msra.mxu1 %v2279_v33 }
0x1cf9   :  { %2218 = vmatprep.subr.bf16.mxu1 %v2532_v1 }
0x1cfc   :  { %2219 = vmatpush3.bf16.msra.mxu1 %v2280_v45 }
0x1cfd   :  { %2220 = vmatprep.subr.bf16.mxu1 %v2532_v1 }
0x1d00   :  { %2221 = vmatpush3.bf16.msra.mxu1 %v2281_v46 }
0x1d03   :  { %2223 = vmatmul.mubr.msk.bf16.vlgmr.msra.gmra.mxu1 %vm373_vm4, %v3268_v27 }
0x1db3   :  { %v1843_v29 = vpop.f32.mrf.mxu1 }
0x1db4   :  { %v1850_v32 = vadd.f32 %v1843_v29, %v1800_v7 }
0x1db5   :  { %v1845_v57 = vpop.f32.mrf.mxu1 }
0x1db6   :  { %v2178_v0 = vmul.f32 -1.442695, %v1850_v32  ;;  %v1851_v21 = vadd.f32 %v1845_v57, %v1801_v16  ;;  %v2282_v16 = vld [vmem:[%s3443_s8 + $0x38] sm:$0xff]   ;;  %s2498_s8 = scalar_lea.vmem %s2043_s3, 32 }
0x1db7   :  { %v1847_v4 = vpop.f32.mrf.mxu1  ;;  %2203 = vmatpush3.bf16.msra.mxu0 %v2282_v16  ;;  %p2499_p1 = scmp.ne.s32.totalorder %s2043_s3, %s2498_s8  ;;  %p2504_p3 = scmp.lt.s32.totalorder %s2498_s8, %s2498_s8 }
0x1db8   :  { %v2179_v13 = vmul.f32 -1.442695, %v1851_v21  ;;  %2436 = vpow2.f32 %v2178_v0  ;;  %2204 = vmatprep.subr.bf16.mxu0 %v2532_v1 }
0x1db9   :  { %v1848_v56 = vpop.f32.mrf.mxu1  ;;  %p2505_p4 = por %p2504_p3, %p2503_p2 }
0x1dba   :  { %2438 = vpow2.f32 %v2179_v13 }
0x1dbb   :  { %2205 = vmatpush3.bf16.msra.mxu0 %v2283_v47  ;;  %p2506_p5 = pnand %p2505_p4, %p2499_p1 }
0x1dbc   :  { %2206 = vmatprep.subr.bf16.mxu0 %v2532_v1 }
0x1dbf   :  { %2207 = vmatpush3.bf16.msra.mxu0 %v2284_v42 }
0x1dc0   :  { %2208 = vmatprep.subr.bf16.mxu0 %v2532_v1 }
0x1dc3   :  { %v2020_v27 = vpop.f32.mrf.mxu1  ;;  %2209 = vmatpush3.bf16.msra.mxu0 %v2285_v30 }
0x1dc5   :  { %v2224_v23 = vpop.f32.mrf.mxu1  ;;  %v2437_v9 = vpop.eup %2436 }
0x1dc6   :  { %v1858_v7 = vadd.f32 1.0, %v2437_v9 }
0x1dc7   :  { %v2439_v39 = vpop.eup %2438  ;;  %v2023_v50 = vpop.f32.mrf.mxu1 }
0x1dc8   :  { %v1859_v55 = vadd.f32 1.0, %v2439_v39 }
0x1dc9   :  { %v2225_v38 = vpop.f32.mrf.mxu1 }
0x1dca   :  { %2440 = vrcp.f32 %v1859_v55 }
0x1dcb   :  { %2442 = vrcp.f32 %v1858_v7 }
0x1dd7   :  { %v2441_v15 = vpop.eup %2440 }
0x1dd8   :  { %v1864_v10 = vmul.f32 2.0, %v2441_v15  ;;  %v2443_v59 = vpop.eup %2442 }
0x1dd9   :  { %v1866_v61 = vmul.f32 %v2443_v59, %v1797_v35 }
0x1dda   :  { %v2180_v49 = vadd.f32 -1.0, %v1864_v10 }
0x1ddc   :  { %v1867_v11 = vmul.f32 %v2443_v59, %v2180_v49 }
0x1dde   :  { %1869 = vrot.lane.b32.xlu1 %v1867_v11, %s2533_s4 }
0x1e50   :  { %v1870_v36 = vpop.permute.xlu1 %1869 }
0x1e51   :  { %v1872_v62 = vadd.f32 %v1870_v36, %v1866_v61 }
0x1e53   :  { %2444 = vtanh.f32 %v1872_v62 }
0x1e60   :  { %v2445_v60 = vpop.eup %2444 }
0x1e61   :  { %v1874_v54 = vmul.f32 %v2445_v60, %v2441_v15 }
0x1e63   :  { %v1891_v19 = vpack.c.bf16 %v1874_v54, %v1874_v54 }
0x1e65   :  { %1893 = vrot.lane.b32.xlu0 %v1891_v19, %s2533_s4 }
0x1ed7   :  { %v1894_v41 = vpop.permute.xlu0 %1893 }
0x1ed8   :  { %2211 = vmatmul.mubr.msk.bf16.vlgmr.msra.gmra.mxu0 %vm373_vm4, %v1894_v41 }
0x1f98   :  { %v1956_v40 = vpop.f32.mrf.mxu0 }
0x1f99   :  { %v2021_v52 = vadd.f32 %v2020_v27, %v1956_v40 }
0x1f9a   :  { %v2212_v53 = vpop.f32.mrf.mxu0 }
0x1f9b   :  { %v2033_v1 = vadd.f32 %v2191_v8, %v2021_v52 }
0x1f9c   :  { %v1959_v3 = vpop.f32.mrf.mxu0 }
0x1f9d   :  { %2035 = vst.msk [vmem:[#allocation12] sm:$0x3] %vm2034_vm7, %v2033_v1 }
0x1f9e   :  { %v2213_v12 = vpop.f32.mrf.mxu0 }
0x1f9f   :  { %2509 = shalt.err (!%p2506_p5)
}
0x1fa0   :  { %2045 = dma.vmem_to_hbm [thread:$0]  %s2043_s3, 32, %s3445_s10, [#allocation9]  }
0x1fa1   :  { %2524 = dma.done.wait [#allocation9], 32  }
0x1fa2   :  { %2525 = vsyncadd [#allocation9], 4294967264 }
0x1fa3   :  { %2049 = vsyncpa [#allocation8], 1 }
0x1fa4   :  { %2050 = vsyncpa [#allocation11], 1 }
0x1fa5   :  { %2051 = vsyncpa [#allocation9], 1 }

</bundles_post_ra>
